<compile_context>
chip_gen: v6e
topology: v6e:2x2x1
jax: 0.10.0
libtpu: 0.0.40
codegen_flags: <defaults>
</compile_context>

<pallas_src>
import functools

import numpy as np
import jax
import jax.numpy as jnp
from jax import lax
from jax.experimental import pallas as pl
from jax.experimental.pallas import tpu as pltpu


def gru_kernel(x2d_ref, wih_ref, bfold_ref, whh_ref, bhn_ref, wl_ref, bl_ref,
               pred_ref, xg_scr, hs_scr, *, bp, t_steps, l_pred):
    """Full GRU forward in one kernel.

    x2d_ref:  (T*Bp, Ip)  time-major, batch-padded, flattened input (bf16)
    wih_ref:  (Ip, Gp)    fused+padded input gate weights [Wir|Wiz|Win|0] (bf16)
    bfold_ref:(1, Gp)     folded biases [b_ir+b_hr | b_iz+b_hz | b_in | 0] (f32)
    whh_ref:  (H, Gp)     fused+padded hidden gate weights [Whr|Whz|Whn|0] (bf16)
    bhn_ref:  (1, H)      hidden bias of the n gate (multiplied by r)  (f32)
    wl_ref:   (H, O)      linear head weight (transposed)              (f32)
    bl_ref:   (1, O)      linear head bias                             (f32)
    pred_ref: (L*Bp, O)   output
    xg_scr:   (T*Bp, Gp)  VMEM scratch: precomputed input gate pre-activations
    hs_scr:   (L*Bp, H)   VMEM scratch: hidden states of the last L timesteps
    """
    H = whh_ref.shape[0]

    # (1) Input-side gate pre-activations for all timesteps: one big bf16 MXU
    #     matmul (f32 accumulation), completely off the recurrence critical path.
    xg_scr[...] = (jnp.dot(x2d_ref[...], wih_ref[...],
                           preferred_element_type=jnp.float32)
                   + bfold_ref[...])

    whh = whh_ref[...]                                   # (H, Gp) bf16, vreg-resident
    b_hn_b = jnp.broadcast_to(bhn_ref[...], (bp, H))     # hoisted: single broadcast

    start = t_steps - l_pred                             # first step whose h feeds the head

    def step(t, h):
        row = pl.multiple_of(t * bp, bp)
        xg_t = xg_scr[pl.ds(row, bp), :]                 # (Bp, Gp) f32, full-lane load
        # bf16 operands, f32 accumulation -> single-pass MXU on the critical path.
        hg = jnp.dot(h.astype(jnp.bfloat16), whh,
                     preferred_element_type=jnp.float32)  # (Bp, Gp) f32

        rz = jax.nn.sigmoid(xg_t[:, :2 * H] + hg[:, :2 * H])   # fused r|z (f32 VPU/EUP)
        r = rz[:, :H]
        z = rz[:, H:]
        n = jnp.tanh(xg_t[:, 2 * H:3 * H] + r * (hg[:, 2 * H:3 * H] + b_hn_b))
        h_new = (1.0 - z) * n + z * h

        # Store only the hidden states the head actually consumes.
        @pl.when(t >= start)
        def _():
            out_row = pl.multiple_of((t - start) * bp, bp)
            hs_scr[pl.ds(out_row, bp), :] = h_new

        return h_new

    h0 = jnp.zeros((bp, H), jnp.float32)
    lax.fori_loop(0, t_steps, step, h0, unroll=True)

    # (2) Linear head over the last L timesteps: one matmul after the loop.
    pred_ref[...] = (jnp.dot(hs_scr[...], wl_ref[...],
                             preferred_element_type=jnp.float32)
                     + bl_ref[...])


def prepare_params(params):
    """One-time weight fusion / bias folding / padding / bf16 cast (cache this)."""
    I, H = params["wir"].shape
    Gp = ((3 * H + 127) // 128) * 128          # pad fused gate width to full lanes
    Ip = ((I + 15) // 16) * 16                 # pad input features for bf16 packing

    wih = jnp.concatenate([params["wir"], params["wiz"], params["win"]], axis=1)
    whh = jnp.concatenate([params["whr"], params["whz"], params["whn"]], axis=1)
    bi, bh = params["bi"], params["bh"]
    bfold = jnp.concatenate([bi[0] + bh[0], bi[1] + bh[1], bi[2]], axis=0)

    return {
        "wih": jnp.zeros((Ip, Gp), jnp.bfloat16).at[:I, :3 * H].set(
            wih.astype(jnp.bfloat16)),
        "whh": jnp.zeros((H, Gp), jnp.bfloat16).at[:, :3 * H].set(
            whh.astype(jnp.bfloat16)),
        "bfold": jnp.zeros((1, Gp), jnp.float32).at[0, :3 * H].set(
            bfold.astype(jnp.float32)),
        "bhn": bh[2].reshape(1, H).astype(jnp.float32),
        "wl": params["wl"].astype(jnp.float32),
        "bl": params["bl"].astype(jnp.float32),
    }


@functools.partial(jax.jit, static_argnames=("length_prediction",))
def gru_forward(x, prep, length_prediction):
    """x: (B, T, I) float32 -> (B, L, O) float32."""
    B, T, I = x.shape
    Ip, Gp = prep["wih"].shape
    H = prep["whh"].shape[0]
    O = prep["wl"].shape[1]
    L = length_prediction
    Bp = max(8, ((B + 7) // 8) * 8)            # pad batch to a sublane multiple

    # Pad batch + features, go time-major, flatten (T, Bp, Ip) -> (T*Bp, Ip).
    xp = jnp.zeros((Bp, T, Ip), jnp.bfloat16).at[:B, :, :I].set(
        x.astype(jnp.bfloat16))
    x2d = jnp.transpose(xp, (1, 0, 2)).reshape(T * Bp, Ip)

    inputs = [x2d, prep["wih"], prep["bfold"], prep["whh"], prep["bhn"],
              prep["wl"], prep["bl"]]

    def full_spec(shape):
        nd = len(shape)
        return pl.BlockSpec(shape, lambda i, _nd=nd: (0,) * _nd)

    kern = functools.partial(gru_kernel, bp=Bp, t_steps=T, l_pred=L)

    pred2d = pl.pallas_call(
        kern,
        out_shape=jax.ShapeDtypeStruct((L * Bp, O), jnp.float32),
        grid=(1,),
        in_specs=[full_spec(a.shape) for a in inputs],
        out_specs=full_spec((L * Bp, O)),
        scratch_shapes=[pltpu.VMEM((T * Bp, Gp), jnp.float32),
                        pltpu.VMEM((L * Bp, H), jnp.float32)],
        compiler_params=pltpu.CompilerParams(
            dimension_semantics=("arbitrary",)),
    )(*inputs)

    pred = pred2d.reshape(L, Bp, O)[:, :B, :]      # drop batch padding
    return jnp.transpose(pred, (1, 0, 2))          # (B, L, O)


def gru_reference(x, p, L):
    """Pure-JAX f32 reference matching torch.nn.GRU + Linear semantics."""
    B, T, I = x.shape
    H = p["whr"].shape[0]
    h = jnp.zeros((B, H), jnp.float32)
    outs = []
    for t in range(T):
        xt = x[:, t, :]
        r = jax.nn.sigmoid(xt @ p["wir"] + p["bi"][0] + h @ p["whr"] + p["bh"][0])
        z = jax.nn.sigmoid(xt @ p["wiz"] + p["bi"][1] + h @ p["whz"] + p["bh"][1])
        n = jnp.tanh(xt @ p["win"] + p["bi"][2] + r * (h @ p["whn"] + p["bh"][2]))
        h = (1.0 - z) * n + z * h
        outs.append(h)
    out = jnp.stack(outs, axis=1)                     # (B, T, H)
    return out[:, -L:, :] @ p["wl"] + p["bl"][0]      # (B, L, O)


def init_params(key, input_size, hidden_size, out_size):
    """Deterministic init mirroring nn.GRU/nn.Linear U(-1/sqrt(H), 1/sqrt(H))."""
    k = 1.0 / np.sqrt(hidden_size)
    keys = jax.random.split(key, 11)
    u = lambda kk, shape: jax.random.uniform(kk, shape, jnp.float32, -k, k)
    return {
        # gate weights stored transposed for right-multiplication
        "wir": u(keys[0], (input_size, hidden_size)),
        "wiz": u(keys[1], (input_size, hidden_size)),
        "win": u(keys[2], (input_size, hidden_size)),
        "whr": u(keys[3], (hidden_size, hidden_size)),
        "whz": u(keys[4], (hidden_size, hidden_size)),
        "whn": u(keys[5], (hidden_size, hidden_size)),
        "bi":  u(keys[6], (3, hidden_size)),   # [b_ir, b_iz, b_in]
        "bh":  u(keys[7], (3, hidden_size)),   # [b_hr, b_hz, b_hn]
        "wl":  u(keys[8], (hidden_size, out_size)),
        "bl":  u(keys[9], (1, out_size)),
    }


if __name__ == "__main__":
    INPUT_SIZE = 14
    HIDDEN_SIZE = 32
    OUT_SIZE = 1
    LENGTH_PREDICTION = 24
    B, T = 2, 32   # seq length must cover the 24-step prediction window

    root = jax.random.PRNGKey(0)
    k_x, k_p = jax.random.split(root)
    x = jax.random.normal(k_x, (B, T, INPUT_SIZE), jnp.float32)
    params = init_params(k_p, INPUT_SIZE, HIDDEN_SIZE, OUT_SIZE)

    prep = prepare_params(params)            # one-time weight prep (cacheable)

    pred = gru_forward(x, prep, LENGTH_PREDICTION)
    pred = jax.block_until_ready(pred)

    ref = gru_reference(x, params, LENGTH_PREDICTION)
    # bf16 MXU operands -> tolerance loosened vs the f32 reference.
    np.testing.assert_allclose(np.asarray(pred), np.asarray(ref),
                               rtol=2e-2, atol=2e-2)
    assert pred.shape == (B, LENGTH_PREDICTION, OUT_SIZE)

    print("KERNEL_OK")
</pallas_src>

<mosaic_0001>
module attributes {stable_mosaic.version = 11 : i64} {
  func.func @gru_kernel(%arg0: i32, %arg1: memref<256x16xbf16, #tpu.memory_space<vmem>>, %arg2: memref<16x128xbf16, #tpu.memory_space<vmem>>, %arg3: memref<1x128xf32, #tpu.memory_space<vmem>>, %arg4: memref<32x128xbf16, #tpu.memory_space<vmem>>, %arg5: memref<1x32xf32, #tpu.memory_space<vmem>>, %arg6: memref<32x1xf32, #tpu.memory_space<vmem>>, %arg7: memref<1x1xf32, #tpu.memory_space<vmem>>, %arg8: memref<192x1xf32, #tpu.memory_space<vmem>>, %arg9: memref<256x128xf32, #tpu.memory_space<vmem>>, %arg10: memref<192x32xf32, #tpu.memory_space<vmem>>) attributes {dimension_semantics = [#tpu.dimension_semantics<arbitrary>], iteration_bounds = array<i64: 1>, scalar_prefetch = 0 : i64, scratch_operands = 2 : i64, tpu.core_type = #tpu.core_type<tc>, window_params = [{pipeline_mode = #tpu.pipeline_mode<synchronous>, transform_indices = @transform_0, window_bounds = array<i64: 256, 16>}, {pipeline_mode = #tpu.pipeline_mode<synchronous>, transform_indices = @transform_1, window_bounds = array<i64: 16, 128>}, {pipeline_mode = #tpu.pipeline_mode<synchronous>, transform_indices = @transform_2, window_bounds = array<i64: 1, 128>}, {pipeline_mode = #tpu.pipeline_mode<synchronous>, transform_indices = @transform_3, window_bounds = array<i64: 32, 128>}, {pipeline_mode = #tpu.pipeline_mode<synchronous>, transform_indices = @transform_4, window_bounds = array<i64: 1, 32>}, {pipeline_mode = #tpu.pipeline_mode<synchronous>, transform_indices = @transform_5, window_bounds = array<i64: 32, 1>}, {pipeline_mode = #tpu.pipeline_mode<synchronous>, transform_indices = @transform_6, window_bounds = array<i64: 1, 1>}, {pipeline_mode = #tpu.pipeline_mode<synchronous>, transform_indices = @transform_7, window_bounds = array<i64: 192, 1>}]} {
    %c0 = arith.constant 0 : index
    %c0_0 = arith.constant 0 : index
    %0 = vector.load %arg1[%c0, %c0_0] : memref<256x16xbf16, #tpu.memory_space<vmem>>, vector<256x16xbf16>
    %c0_1 = arith.constant 0 : index
    %c0_2 = arith.constant 0 : index
    %1 = vector.load %arg2[%c0_1, %c0_2] : memref<16x128xbf16, #tpu.memory_space<vmem>>, vector<16x128xbf16>
    %cst = arith.constant dense<0.000000e+00> : vector<256x128xf32>
    %2 = tpu.matmul %0, %1, %cst {dimension_numbers = #tpu.dot_dimension_numbers<[1], [0], [0], [1], [0, 0, 1, 1], [], []>} : vector<256x16xbf16>, vector<16x128xbf16>, vector<256x128xf32> -> vector<256x128xf32>
    %c0_3 = arith.constant 0 : index
    %c0_4 = arith.constant 0 : index
    %3 = vector.load %arg3[%c0_3, %c0_4] : memref<1x128xf32, #tpu.memory_space<vmem>>, vector<1x128xf32>
    %4 = vector.broadcast %3 : vector<1x128xf32> to vector<256x128xf32>
    %5 = arith.addf %2, %4 : vector<256x128xf32>
    %c0_5 = arith.constant 0 : index
    %c0_6 = arith.constant 0 : index
    %6 = vector.load %arg9[%c0_5, %c0_6] : memref<256x128xf32, #tpu.memory_space<vmem>>, vector<256x128xf32>
    tpu.vector_store %arg9[%c0_5, %c0_6], %5 {strides = array<i32>} : memref<256x128xf32, #tpu.memory_space<vmem>>, vector<256x128xf32>,
    %c0_7 = arith.constant 0 : index
    %c0_8 = arith.constant 0 : index
    %7 = vector.load %arg4[%c0_7, %c0_8] : memref<32x128xbf16, #tpu.memory_space<vmem>>, vector<32x128xbf16>
    %c0_9 = arith.constant 0 : index
    %c0_10 = arith.constant 0 : index
    %8 = vector.load %arg5[%c0_9, %c0_10] : memref<1x32xf32, #tpu.memory_space<vmem>>, vector<1x32xf32>
    %9 = vector.shape_cast %8 : vector<1x32xf32> to vector<1x32xf32>
    %10 = vector.broadcast %9 : vector<1x32xf32> to vector<8x32xf32>
    %cst_11 = arith.constant 0.000000e+00 : f32
    %11 = vector.broadcast %cst_11 : f32 to vector<8x32xf32>
    %c0_i32 = arith.constant 0 : i32
    %c8_i32 = arith.constant 8 : i32
    %12 = arith.muli %c0_i32, %c8_i32 : i32
    %13 = tpu.assume_multiple %12, 8 : i32
    %14 = arith.index_cast %13 : i32 to index
    %c0_12 = arith.constant 0 : index
    %15 = vector.load %arg9[%14, %c0_12] : memref<256x128xf32, #tpu.memory_space<vmem>>, vector<8x128xf32>
    %16 = arith.truncf %11 : vector<8x32xf32> to vector<8x32xbf16>
    %cst_13 = arith.constant dense<0.000000e+00> : vector<8x128xf32>
    %17 = tpu.matmul %16, %7, %cst_13 {dimension_numbers = #tpu.dot_dimension_numbers<[1], [0], [0], [1], [0, 0, 1, 1], [], []>} : vector<8x32xbf16>, vector<32x128xbf16>, vector<8x128xf32> -> vector<8x128xf32>
    %18 = vector.extract_strided_slice %15 {offsets = [0, 0], sizes = [8, 64], strides = [1, 1]} : vector<8x128xf32> to vector<8x64xf32>
    %19 = vector.extract_strided_slice %17 {offsets = [0, 0], sizes = [8, 64], strides = [1, 1]} : vector<8x128xf32> to vector<8x64xf32>
    %20 = arith.addf %18, %19 : vector<8x64xf32>
    %21 = arith.negf %20 : vector<8x64xf32>
    %22 = math.exp %21 : vector<8x64xf32>
    %cst_14 = arith.constant 1.000000e+00 : f32
    %23 = vector.broadcast %cst_14 : f32 to vector<8x64xf32>
    %24 = arith.addf %23, %22 : vector<8x64xf32>
    %25 = arith.divf %23, %24 : vector<8x64xf32>
    %26 = vector.extract_strided_slice %25 {offsets = [0, 0], sizes = [8, 32], strides = [1, 1]} : vector<8x64xf32> to vector<8x32xf32>
    %27 = vector.extract_strided_slice %25 {offsets = [0, 32], sizes = [8, 32], strides = [1, 1]} : vector<8x64xf32> to vector<8x32xf32>
    %28 = vector.extract_strided_slice %15 {offsets = [0, 64], sizes = [8, 32], strides = [1, 1]} : vector<8x128xf32> to vector<8x32xf32>
    %29 = vector.extract_strided_slice %17 {offsets = [0, 64], sizes = [8, 32], strides = [1, 1]} : vector<8x128xf32> to vector<8x32xf32>
    %30 = arith.addf %29, %10 : vector<8x32xf32>
    %31 = arith.mulf %26, %30 : vector<8x32xf32>
    %32 = arith.addf %28, %31 : vector<8x32xf32>
    %33 = math.tanh %32 : vector<8x32xf32>
    %cst_15 = arith.constant 1.000000e+00 : f32
    %34 = vector.broadcast %cst_15 : f32 to vector<8x32xf32>
    %35 = arith.subf %34, %27 : vector<8x32xf32>
    %36 = arith.mulf %35, %33 : vector<8x32xf32>
    %37 = arith.mulf %27, %11 : vector<8x32xf32>
    %38 = arith.addf %36, %37 : vector<8x32xf32>
    %c8_i32_16 = arith.constant 8 : i32
    %39 = arith.cmpi sge, %c0_i32, %c8_i32_16 : i32
    %40 = arith.extui %39 : i1 to i32
    %c0_i32_17 = arith.constant 0 : i32
    %41 = arith.cmpi ne, %40, %c0_i32_17 : i32
    scf.if %41 {
      %c8_i32_245 = arith.constant 8 : i32
      %979 = arith.subi %c0_i32, %c8_i32_245 : i32
      %c8_i32_246 = arith.constant 8 : i32
      %980 = arith.muli %979, %c8_i32_246 : i32
      %981 = tpu.assume_multiple %980, 8 : i32
      %982 = arith.index_cast %981 : i32 to index
      %c0_247 = arith.constant 0 : index
      %983 = vector.load %arg10[%982, %c0_247] : memref<192x32xf32, #tpu.memory_space<vmem>>, vector<8x32xf32>
      tpu.vector_store %arg10[%982, %c0_247], %38 {strides = array<i32>} : memref<192x32xf32, #tpu.memory_space<vmem>>, vector<8x32xf32>,
    } else {
    }
    %c1_i32 = arith.constant 1 : i32
    %c8_i32_18 = arith.constant 8 : i32
    %42 = arith.muli %c1_i32, %c8_i32_18 : i32
    %43 = tpu.assume_multiple %42, 8 : i32
    %44 = arith.index_cast %43 : i32 to index
    %c0_19 = arith.constant 0 : index
    %45 = vector.load %arg9[%44, %c0_19] : memref<256x128xf32, #tpu.memory_space<vmem>>, vector<8x128xf32>
    %46 = arith.truncf %38 : vector<8x32xf32> to vector<8x32xbf16>
    %cst_20 = arith.constant dense<0.000000e+00> : vector<8x128xf32>
    %47 = tpu.matmul %46, %7, %cst_20 {dimension_numbers = #tpu.dot_dimension_numbers<[1], [0], [0], [1], [0, 0, 1, 1], [], []>} : vector<8x32xbf16>, vector<32x128xbf16>, vector<8x128xf32> -> vector<8x128xf32>
    %48 = vector.extract_strided_slice %45 {offsets = [0, 0], sizes = [8, 64], strides = [1, 1]} : vector<8x128xf32> to vector<8x64xf32>
    %49 = vector.extract_strided_slice %47 {offsets = [0, 0], sizes = [8, 64], strides = [1, 1]} : vector<8x128xf32> to vector<8x64xf32>
    %50 = arith.addf %48, %49 : vector<8x64xf32>
    %51 = arith.negf %50 : vector<8x64xf32>
    %52 = math.exp %51 : vector<8x64xf32>
    %cst_21 = arith.constant 1.000000e+00 : f32
    %53 = vector.broadcast %cst_21 : f32 to vector<8x64xf32>
    %54 = arith.addf %53, %52 : vector<8x64xf32>
    %55 = arith.divf %53, %54 : vector<8x64xf32>
    %56 = vector.extract_strided_slice %55 {offsets = [0, 0], sizes = [8, 32], strides = [1, 1]} : vector<8x64xf32> to vector<8x32xf32>
    %57 = vector.extract_strided_slice %55 {offsets = [0, 32], sizes = [8, 32], strides = [1, 1]} : vector<8x64xf32> to vector<8x32xf32>
    %58 = vector.extract_strided_slice %45 {offsets = [0, 64], sizes = [8, 32], strides = [1, 1]} : vector<8x128xf32> to vector<8x32xf32>
    %59 = vector.extract_strided_slice %47 {offsets = [0, 64], sizes = [8, 32], strides = [1, 1]} : vector<8x128xf32> to vector<8x32xf32>
    %60 = arith.addf %59, %10 : vector<8x32xf32>
    %61 = arith.mulf %56, %60 : vector<8x32xf32>
    %62 = arith.addf %58, %61 : vector<8x32xf32>
    %63 = math.tanh %62 : vector<8x32xf32>
    %cst_22 = arith.constant 1.000000e+00 : f32
    %64 = vector.broadcast %cst_22 : f32 to vector<8x32xf32>
    %65 = arith.subf %64, %57 : vector<8x32xf32>
    %66 = arith.mulf %65, %63 : vector<8x32xf32>
    %67 = arith.mulf %57, %38 : vector<8x32xf32>
    %68 = arith.addf %66, %67 : vector<8x32xf32>
    %c8_i32_23 = arith.constant 8 : i32
    %69 = arith.cmpi sge, %c1_i32, %c8_i32_23 : i32
    %70 = arith.extui %69 : i1 to i32
    %c0_i32_24 = arith.constant 0 : i32
    %71 = arith.cmpi ne, %70, %c0_i32_24 : i32
    scf.if %71 {
      %c8_i32_245 = arith.constant 8 : i32
      %979 = arith.subi %c1_i32, %c8_i32_245 : i32
      %c8_i32_246 = arith.constant 8 : i32
      %980 = arith.muli %979, %c8_i32_246 : i32
      %981 = tpu.assume_multiple %980, 8 : i32
      %982 = arith.index_cast %981 : i32 to index
      %c0_247 = arith.constant 0 : index
      %983 = vector.load %arg10[%982, %c0_247] : memref<192x32xf32, #tpu.memory_space<vmem>>, vector<8x32xf32>
      tpu.vector_store %arg10[%982, %c0_247], %68 {strides = array<i32>} : memref<192x32xf32, #tpu.memory_space<vmem>>, vector<8x32xf32>,
    } else {
    }
    %c2_i32 = arith.constant 2 : i32
    %c8_i32_25 = arith.constant 8 : i32
    %72 = arith.muli %c2_i32, %c8_i32_25 : i32
    %73 = tpu.assume_multiple %72, 8 : i32
    %74 = arith.index_cast %73 : i32 to index
    %c0_26 = arith.constant 0 : index
    %75 = vector.load %arg9[%74, %c0_26] : memref<256x128xf32, #tpu.memory_space<vmem>>, vector<8x128xf32>
    %76 = arith.truncf %68 : vector<8x32xf32> to vector<8x32xbf16>
    %cst_27 = arith.constant dense<0.000000e+00> : vector<8x128xf32>
    %77 = tpu.matmul %76, %7, %cst_27 {dimension_numbers = #tpu.dot_dimension_numbers<[1], [0], [0], [1], [0, 0, 1, 1], [], []>} : vector<8x32xbf16>, vector<32x128xbf16>, vector<8x128xf32> -> vector<8x128xf32>
    %78 = vector.extract_strided_slice %75 {offsets = [0, 0], sizes = [8, 64], strides = [1, 1]} : vector<8x128xf32> to vector<8x64xf32>
    %79 = vector.extract_strided_slice %77 {offsets = [0, 0], sizes = [8, 64], strides = [1, 1]} : vector<8x128xf32> to vector<8x64xf32>
    %80 = arith.addf %78, %79 : vector<8x64xf32>
    %81 = arith.negf %80 : vector<8x64xf32>
    %82 = math.exp %81 : vector<8x64xf32>
    %cst_28 = arith.constant 1.000000e+00 : f32
    %83 = vector.broadcast %cst_28 : f32 to vector<8x64xf32>
    %84 = arith.addf %83, %82 : vector<8x64xf32>
    %85 = arith.divf %83, %84 : vector<8x64xf32>
    %86 = vector.extract_strided_slice %85 {offsets = [0, 0], sizes = [8, 32], strides = [1, 1]} : vector<8x64xf32> to vector<8x32xf32>
    %87 = vector.extract_strided_slice %85 {offsets = [0, 32], sizes = [8, 32], strides = [1, 1]} : vector<8x64xf32> to vector<8x32xf32>
    %88 = vector.extract_strided_slice %75 {offsets = [0, 64], sizes = [8, 32], strides = [1, 1]} : vector<8x128xf32> to vector<8x32xf32>
    %89 = vector.extract_strided_slice %77 {offsets = [0, 64], sizes = [8, 32], strides = [1, 1]} : vector<8x128xf32> to vector<8x32xf32>
    %90 = arith.addf %89, %10 : vector<8x32xf32>
    %91 = arith.mulf %86, %90 : vector<8x32xf32>
    %92 = arith.addf %88, %91 : vector<8x32xf32>
    %93 = math.tanh %92 : vector<8x32xf32>
    %cst_29 = arith.constant 1.000000e+00 : f32
    %94 = vector.broadcast %cst_29 : f32 to vector<8x32xf32>
    %95 = arith.subf %94, %87 : vector<8x32xf32>
    %96 = arith.mulf %95, %93 : vector<8x32xf32>
    %97 = arith.mulf %87, %68 : vector<8x32xf32>
    %98 = arith.addf %96, %97 : vector<8x32xf32>
    %c8_i32_30 = arith.constant 8 : i32
    %99 = arith.cmpi sge, %c2_i32, %c8_i32_30 : i32
    %100 = arith.extui %99 : i1 to i32
    %c0_i32_31 = arith.constant 0 : i32
    %101 = arith.cmpi ne, %100, %c0_i32_31 : i32
    scf.if %101 {
      %c8_i32_245 = arith.constant 8 : i32
      %979 = arith.subi %c2_i32, %c8_i32_245 : i32
      %c8_i32_246 = arith.constant 8 : i32
      %980 = arith.muli %979, %c8_i32_246 : i32
      %981 = tpu.assume_multiple %980, 8 : i32
      %982 = arith.index_cast %981 : i32 to index
      %c0_247 = arith.constant 0 : index
      %983 = vector.load %arg10[%982, %c0_247] : memref<192x32xf32, #tpu.memory_space<vmem>>, vector<8x32xf32>
      tpu.vector_store %arg10[%982, %c0_247], %98 {strides = array<i32>} : memref<192x32xf32, #tpu.memory_space<vmem>>, vector<8x32xf32>,
    } else {
    }
    %c3_i32 = arith.constant 3 : i32
    %c8_i32_32 = arith.constant 8 : i32
    %102 = arith.muli %c3_i32, %c8_i32_32 : i32
    %103 = tpu.assume_multiple %102, 8 : i32
    %104 = arith.index_cast %103 : i32 to index
    %c0_33 = arith.constant 0 : index
    %105 = vector.load %arg9[%104, %c0_33] : memref<256x128xf32, #tpu.memory_space<vmem>>, vector<8x128xf32>
    %106 = arith.truncf %98 : vector<8x32xf32> to vector<8x32xbf16>
    %cst_34 = arith.constant dense<0.000000e+00> : vector<8x128xf32>
    %107 = tpu.matmul %106, %7, %cst_34 {dimension_numbers = #tpu.dot_dimension_numbers<[1], [0], [0], [1], [0, 0, 1, 1], [], []>} : vector<8x32xbf16>, vector<32x128xbf16>, vector<8x128xf32> -> vector<8x128xf32>
    %108 = vector.extract_strided_slice %105 {offsets = [0, 0], sizes = [8, 64], strides = [1, 1]} : vector<8x128xf32> to vector<8x64xf32>
    %109 = vector.extract_strided_slice %107 {offsets = [0, 0], sizes = [8, 64], strides = [1, 1]} : vector<8x128xf32> to vector<8x64xf32>
    %110 = arith.addf %108, %109 : vector<8x64xf32>
    %111 = arith.negf %110 : vector<8x64xf32>
    %112 = math.exp %111 : vector<8x64xf32>
    %cst_35 = arith.constant 1.000000e+00 : f32
    %113 = vector.broadcast %cst_35 : f32 to vector<8x64xf32>
    %114 = arith.addf %113, %112 : vector<8x64xf32>
    %115 = arith.divf %113, %114 : vector<8x64xf32>
    %116 = vector.extract_strided_slice %115 {offsets = [0, 0], sizes = [8, 32], strides = [1, 1]} : vector<8x64xf32> to vector<8x32xf32>
    %117 = vector.extract_strided_slice %115 {offsets = [0, 32], sizes = [8, 32], strides = [1, 1]} : vector<8x64xf32> to vector<8x32xf32>
    %118 = vector.extract_strided_slice %105 {offsets = [0, 64], sizes = [8, 32], strides = [1, 1]} : vector<8x128xf32> to vector<8x32xf32>
    %119 = vector.extract_strided_slice %107 {offsets = [0, 64], sizes = [8, 32], strides = [1, 1]} : vector<8x128xf32> to vector<8x32xf32>
    %120 = arith.addf %119, %10 : vector<8x32xf32>
    %121 = arith.mulf %116, %120 : vector<8x32xf32>
    %122 = arith.addf %118, %121 : vector<8x32xf32>
    %123 = math.tanh %122 : vector<8x32xf32>
    %cst_36 = arith.constant 1.000000e+00 : f32
    %124 = vector.broadcast %cst_36 : f32 to vector<8x32xf32>
    %125 = arith.subf %124, %117 : vector<8x32xf32>
    %126 = arith.mulf %125, %123 : vector<8x32xf32>
    %127 = arith.mulf %117, %98 : vector<8x32xf32>
    %128 = arith.addf %126, %127 : vector<8x32xf32>
    %c8_i32_37 = arith.constant 8 : i32
    %129 = arith.cmpi sge, %c3_i32, %c8_i32_37 : i32
    %130 = arith.extui %129 : i1 to i32
    %c0_i32_38 = arith.constant 0 : i32
    %131 = arith.cmpi ne, %130, %c0_i32_38 : i32
    scf.if %131 {
      %c8_i32_245 = arith.constant 8 : i32
      %979 = arith.subi %c3_i32, %c8_i32_245 : i32
      %c8_i32_246 = arith.constant 8 : i32
      %980 = arith.muli %979, %c8_i32_246 : i32
      %981 = tpu.assume_multiple %980, 8 : i32
      %982 = arith.index_cast %981 : i32 to index
      %c0_247 = arith.constant 0 : index
      %983 = vector.load %arg10[%982, %c0_247] : memref<192x32xf32, #tpu.memory_space<vmem>>, vector<8x32xf32>
      tpu.vector_store %arg10[%982, %c0_247], %128 {strides = array<i32>} : memref<192x32xf32, #tpu.memory_space<vmem>>, vector<8x32xf32>,
    } else {
    }
    %c4_i32 = arith.constant 4 : i32
    %c8_i32_39 = arith.constant 8 : i32
    %132 = arith.muli %c4_i32, %c8_i32_39 : i32
    %133 = tpu.assume_multiple %132, 8 : i32
    %134 = arith.index_cast %133 : i32 to index
    %c0_40 = arith.constant 0 : index
    %135 = vector.load %arg9[%134, %c0_40] : memref<256x128xf32, #tpu.memory_space<vmem>>, vector<8x128xf32>
    %136 = arith.truncf %128 : vector<8x32xf32> to vector<8x32xbf16>
    %cst_41 = arith.constant dense<0.000000e+00> : vector<8x128xf32>
    %137 = tpu.matmul %136, %7, %cst_41 {dimension_numbers = #tpu.dot_dimension_numbers<[1], [0], [0], [1], [0, 0, 1, 1], [], []>} : vector<8x32xbf16>, vector<32x128xbf16>, vector<8x128xf32> -> vector<8x128xf32>
    %138 = vector.extract_strided_slice %135 {offsets = [0, 0], sizes = [8, 64], strides = [1, 1]} : vector<8x128xf32> to vector<8x64xf32>
    %139 = vector.extract_strided_slice %137 {offsets = [0, 0], sizes = [8, 64], strides = [1, 1]} : vector<8x128xf32> to vector<8x64xf32>
    %140 = arith.addf %138, %139 : vector<8x64xf32>
    %141 = arith.negf %140 : vector<8x64xf32>
    %142 = math.exp %141 : vector<8x64xf32>
    %cst_42 = arith.constant 1.000000e+00 : f32
    %143 = vector.broadcast %cst_42 : f32 to vector<8x64xf32>
    %144 = arith.addf %143, %142 : vector<8x64xf32>
    %145 = arith.divf %143, %144 : vector<8x64xf32>
    %146 = vector.extract_strided_slice %145 {offsets = [0, 0], sizes = [8, 32], strides = [1, 1]} : vector<8x64xf32> to vector<8x32xf32>
    %147 = vector.extract_strided_slice %145 {offsets = [0, 32], sizes = [8, 32], strides = [1, 1]} : vector<8x64xf32> to vector<8x32xf32>
    %148 = vector.extract_strided_slice %135 {offsets = [0, 64], sizes = [8, 32], strides = [1, 1]} : vector<8x128xf32> to vector<8x32xf32>
    %149 = vector.extract_strided_slice %137 {offsets = [0, 64], sizes = [8, 32], strides = [1, 1]} : vector<8x128xf32> to vector<8x32xf32>
    %150 = arith.addf %149, %10 : vector<8x32xf32>
    %151 = arith.mulf %146, %150 : vector<8x32xf32>
    %152 = arith.addf %148, %151 : vector<8x32xf32>
    %153 = math.tanh %152 : vector<8x32xf32>
    %cst_43 = arith.constant 1.000000e+00 : f32
    %154 = vector.broadcast %cst_43 : f32 to vector<8x32xf32>
    %155 = arith.subf %154, %147 : vector<8x32xf32>
    %156 = arith.mulf %155, %153 : vector<8x32xf32>
    %157 = arith.mulf %147, %128 : vector<8x32xf32>
    %158 = arith.addf %156, %157 : vector<8x32xf32>
    %c8_i32_44 = arith.constant 8 : i32
    %159 = arith.cmpi sge, %c4_i32, %c8_i32_44 : i32
    %160 = arith.extui %159 : i1 to i32
    %c0_i32_45 = arith.constant 0 : i32
    %161 = arith.cmpi ne, %160, %c0_i32_45 : i32
    scf.if %161 {
      %c8_i32_245 = arith.constant 8 : i32
      %979 = arith.subi %c4_i32, %c8_i32_245 : i32
      %c8_i32_246 = arith.constant 8 : i32
      %980 = arith.muli %979, %c8_i32_246 : i32
      %981 = tpu.assume_multiple %980, 8 : i32
      %982 = arith.index_cast %981 : i32 to index
      %c0_247 = arith.constant 0 : index
      %983 = vector.load %arg10[%982, %c0_247] : memref<192x32xf32, #tpu.memory_space<vmem>>, vector<8x32xf32>
      tpu.vector_store %arg10[%982, %c0_247], %158 {strides = array<i32>} : memref<192x32xf32, #tpu.memory_space<vmem>>, vector<8x32xf32>,
    } else {
    }
    %c5_i32 = arith.constant 5 : i32
    %c8_i32_46 = arith.constant 8 : i32
    %162 = arith.muli %c5_i32, %c8_i32_46 : i32
    %163 = tpu.assume_multiple %162, 8 : i32
    %164 = arith.index_cast %163 : i32 to index
    %c0_47 = arith.constant 0 : index
    %165 = vector.load %arg9[%164, %c0_47] : memref<256x128xf32, #tpu.memory_space<vmem>>, vector<8x128xf32>
    %166 = arith.truncf %158 : vector<8x32xf32> to vector<8x32xbf16>
    %cst_48 = arith.constant dense<0.000000e+00> : vector<8x128xf32>
    %167 = tpu.matmul %166, %7, %cst_48 {dimension_numbers = #tpu.dot_dimension_numbers<[1], [0], [0], [1], [0, 0, 1, 1], [], []>} : vector<8x32xbf16>, vector<32x128xbf16>, vector<8x128xf32> -> vector<8x128xf32>
    %168 = vector.extract_strided_slice %165 {offsets = [0, 0], sizes = [8, 64], strides = [1, 1]} : vector<8x128xf32> to vector<8x64xf32>
    %169 = vector.extract_strided_slice %167 {offsets = [0, 0], sizes = [8, 64], strides = [1, 1]} : vector<8x128xf32> to vector<8x64xf32>
    %170 = arith.addf %168, %169 : vector<8x64xf32>
    %171 = arith.negf %170 : vector<8x64xf32>
    %172 = math.exp %171 : vector<8x64xf32>
    %cst_49 = arith.constant 1.000000e+00 : f32
    %173 = vector.broadcast %cst_49 : f32 to vector<8x64xf32>
    %174 = arith.addf %173, %172 : vector<8x64xf32>
    %175 = arith.divf %173, %174 : vector<8x64xf32>
    %176 = vector.extract_strided_slice %175 {offsets = [0, 0], sizes = [8, 32], strides = [1, 1]} : vector<8x64xf32> to vector<8x32xf32>
    %177 = vector.extract_strided_slice %175 {offsets = [0, 32], sizes = [8, 32], strides = [1, 1]} : vector<8x64xf32> to vector<8x32xf32>
    %178 = vector.extract_strided_slice %165 {offsets = [0, 64], sizes = [8, 32], strides = [1, 1]} : vector<8x128xf32> to vector<8x32xf32>
    %179 = vector.extract_strided_slice %167 {offsets = [0, 64], sizes = [8, 32], strides = [1, 1]} : vector<8x128xf32> to vector<8x32xf32>
    %180 = arith.addf %179, %10 : vector<8x32xf32>
    %181 = arith.mulf %176, %180 : vector<8x32xf32>
    %182 = arith.addf %178, %181 : vector<8x32xf32>
    %183 = math.tanh %182 : vector<8x32xf32>
    %cst_50 = arith.constant 1.000000e+00 : f32
    %184 = vector.broadcast %cst_50 : f32 to vector<8x32xf32>
    %185 = arith.subf %184, %177 : vector<8x32xf32>
    %186 = arith.mulf %185, %183 : vector<8x32xf32>
    %187 = arith.mulf %177, %158 : vector<8x32xf32>
    %188 = arith.addf %186, %187 : vector<8x32xf32>
    %c8_i32_51 = arith.constant 8 : i32
    %189 = arith.cmpi sge, %c5_i32, %c8_i32_51 : i32
    %190 = arith.extui %189 : i1 to i32
    %c0_i32_52 = arith.constant 0 : i32
    %191 = arith.cmpi ne, %190, %c0_i32_52 : i32
    scf.if %191 {
      %c8_i32_245 = arith.constant 8 : i32
      %979 = arith.subi %c5_i32, %c8_i32_245 : i32
      %c8_i32_246 = arith.constant 8 : i32
      %980 = arith.muli %979, %c8_i32_246 : i32
      %981 = tpu.assume_multiple %980, 8 : i32
      %982 = arith.index_cast %981 : i32 to index
      %c0_247 = arith.constant 0 : index
      %983 = vector.load %arg10[%982, %c0_247] : memref<192x32xf32, #tpu.memory_space<vmem>>, vector<8x32xf32>
      tpu.vector_store %arg10[%982, %c0_247], %188 {strides = array<i32>} : memref<192x32xf32, #tpu.memory_space<vmem>>, vector<8x32xf32>,
    } else {
    }
    %c6_i32 = arith.constant 6 : i32
    %c8_i32_53 = arith.constant 8 : i32
    %192 = arith.muli %c6_i32, %c8_i32_53 : i32
    %193 = tpu.assume_multiple %192, 8 : i32
    %194 = arith.index_cast %193 : i32 to index
    %c0_54 = arith.constant 0 : index
    %195 = vector.load %arg9[%194, %c0_54] : memref<256x128xf32, #tpu.memory_space<vmem>>, vector<8x128xf32>
    %196 = arith.truncf %188 : vector<8x32xf32> to vector<8x32xbf16>
    %cst_55 = arith.constant dense<0.000000e+00> : vector<8x128xf32>
    %197 = tpu.matmul %196, %7, %cst_55 {dimension_numbers = #tpu.dot_dimension_numbers<[1], [0], [0], [1], [0, 0, 1, 1], [], []>} : vector<8x32xbf16>, vector<32x128xbf16>, vector<8x128xf32> -> vector<8x128xf32>
    %198 = vector.extract_strided_slice %195 {offsets = [0, 0], sizes = [8, 64], strides = [1, 1]} : vector<8x128xf32> to vector<8x64xf32>
    %199 = vector.extract_strided_slice %197 {offsets = [0, 0], sizes = [8, 64], strides = [1, 1]} : vector<8x128xf32> to vector<8x64xf32>
    %200 = arith.addf %198, %199 : vector<8x64xf32>
    %201 = arith.negf %200 : vector<8x64xf32>
    %202 = math.exp %201 : vector<8x64xf32>
    %cst_56 = arith.constant 1.000000e+00 : f32
    %203 = vector.broadcast %cst_56 : f32 to vector<8x64xf32>
    %204 = arith.addf %203, %202 : vector<8x64xf32>
    %205 = arith.divf %203, %204 : vector<8x64xf32>
    %206 = vector.extract_strided_slice %205 {offsets = [0, 0], sizes = [8, 32], strides = [1, 1]} : vector<8x64xf32> to vector<8x32xf32>
    %207 = vector.extract_strided_slice %205 {offsets = [0, 32], sizes = [8, 32], strides = [1, 1]} : vector<8x64xf32> to vector<8x32xf32>
    %208 = vector.extract_strided_slice %195 {offsets = [0, 64], sizes = [8, 32], strides = [1, 1]} : vector<8x128xf32> to vector<8x32xf32>
    %209 = vector.extract_strided_slice %197 {offsets = [0, 64], sizes = [8, 32], strides = [1, 1]} : vector<8x128xf32> to vector<8x32xf32>
    %210 = arith.addf %209, %10 : vector<8x32xf32>
    %211 = arith.mulf %206, %210 : vector<8x32xf32>
    %212 = arith.addf %208, %211 : vector<8x32xf32>
    %213 = math.tanh %212 : vector<8x32xf32>
    %cst_57 = arith.constant 1.000000e+00 : f32
    %214 = vector.broadcast %cst_57 : f32 to vector<8x32xf32>
    %215 = arith.subf %214, %207 : vector<8x32xf32>
    %216 = arith.mulf %215, %213 : vector<8x32xf32>
    %217 = arith.mulf %207, %188 : vector<8x32xf32>
    %218 = arith.addf %216, %217 : vector<8x32xf32>
    %c8_i32_58 = arith.constant 8 : i32
    %219 = arith.cmpi sge, %c6_i32, %c8_i32_58 : i32
    %220 = arith.extui %219 : i1 to i32
    %c0_i32_59 = arith.constant 0 : i32
    %221 = arith.cmpi ne, %220, %c0_i32_59 : i32
    scf.if %221 {
      %c8_i32_245 = arith.constant 8 : i32
      %979 = arith.subi %c6_i32, %c8_i32_245 : i32
      %c8_i32_246 = arith.constant 8 : i32
      %980 = arith.muli %979, %c8_i32_246 : i32
      %981 = tpu.assume_multiple %980, 8 : i32
      %982 = arith.index_cast %981 : i32 to index
      %c0_247 = arith.constant 0 : index
      %983 = vector.load %arg10[%982, %c0_247] : memref<192x32xf32, #tpu.memory_space<vmem>>, vector<8x32xf32>
      tpu.vector_store %arg10[%982, %c0_247], %218 {strides = array<i32>} : memref<192x32xf32, #tpu.memory_space<vmem>>, vector<8x32xf32>,
    } else {
    }
    %c7_i32 = arith.constant 7 : i32
    %c8_i32_60 = arith.constant 8 : i32
    %222 = arith.muli %c7_i32, %c8_i32_60 : i32
    %223 = tpu.assume_multiple %222, 8 : i32
    %224 = arith.index_cast %223 : i32 to index
    %c0_61 = arith.constant 0 : index
    %225 = vector.load %arg9[%224, %c0_61] : memref<256x128xf32, #tpu.memory_space<vmem>>, vector<8x128xf32>
    %226 = arith.truncf %218 : vector<8x32xf32> to vector<8x32xbf16>
    %cst_62 = arith.constant dense<0.000000e+00> : vector<8x128xf32>
    %227 = tpu.matmul %226, %7, %cst_62 {dimension_numbers = #tpu.dot_dimension_numbers<[1], [0], [0], [1], [0, 0, 1, 1], [], []>} : vector<8x32xbf16>, vector<32x128xbf16>, vector<8x128xf32> -> vector<8x128xf32>
    %228 = vector.extract_strided_slice %225 {offsets = [0, 0], sizes = [8, 64], strides = [1, 1]} : vector<8x128xf32> to vector<8x64xf32>
    %229 = vector.extract_strided_slice %227 {offsets = [0, 0], sizes = [8, 64], strides = [1, 1]} : vector<8x128xf32> to vector<8x64xf32>
    %230 = arith.addf %228, %229 : vector<8x64xf32>
    %231 = arith.negf %230 : vector<8x64xf32>
    %232 = math.exp %231 : vector<8x64xf32>
    %cst_63 = arith.constant 1.000000e+00 : f32
    %233 = vector.broadcast %cst_63 : f32 to vector<8x64xf32>
    %234 = arith.addf %233, %232 : vector<8x64xf32>
    %235 = arith.divf %233, %234 : vector<8x64xf32>
    %236 = vector.extract_strided_slice %235 {offsets = [0, 0], sizes = [8, 32], strides = [1, 1]} : vector<8x64xf32> to vector<8x32xf32>
    %237 = vector.extract_strided_slice %235 {offsets = [0, 32], sizes = [8, 32], strides = [1, 1]} : vector<8x64xf32> to vector<8x32xf32>
    %238 = vector.extract_strided_slice %225 {offsets = [0, 64], sizes = [8, 32], strides = [1, 1]} : vector<8x128xf32> to vector<8x32xf32>
    %239 = vector.extract_strided_slice %227 {offsets = [0, 64], sizes = [8, 32], strides = [1, 1]} : vector<8x128xf32> to vector<8x32xf32>
    %240 = arith.addf %239, %10 : vector<8x32xf32>
    %241 = arith.mulf %236, %240 : vector<8x32xf32>
    %242 = arith.addf %238, %241 : vector<8x32xf32>
    %243 = math.tanh %242 : vector<8x32xf32>
    %cst_64 = arith.constant 1.000000e+00 : f32
    %244 = vector.broadcast %cst_64 : f32 to vector<8x32xf32>
    %245 = arith.subf %244, %237 : vector<8x32xf32>
    %246 = arith.mulf %245, %243 : vector<8x32xf32>
    %247 = arith.mulf %237, %218 : vector<8x32xf32>
    %248 = arith.addf %246, %247 : vector<8x32xf32>
    %c8_i32_65 = arith.constant 8 : i32
    %249 = arith.cmpi sge, %c7_i32, %c8_i32_65 : i32
    %250 = arith.extui %249 : i1 to i32
    %c0_i32_66 = arith.constant 0 : i32
    %251 = arith.cmpi ne, %250, %c0_i32_66 : i32
    scf.if %251 {
      %c8_i32_245 = arith.constant 8 : i32
      %979 = arith.subi %c7_i32, %c8_i32_245 : i32
      %c8_i32_246 = arith.constant 8 : i32
      %980 = arith.muli %979, %c8_i32_246 : i32
      %981 = tpu.assume_multiple %980, 8 : i32
      %982 = arith.index_cast %981 : i32 to index
      %c0_247 = arith.constant 0 : index
      %983 = vector.load %arg10[%982, %c0_247] : memref<192x32xf32, #tpu.memory_space<vmem>>, vector<8x32xf32>
      tpu.vector_store %arg10[%982, %c0_247], %248 {strides = array<i32>} : memref<192x32xf32, #tpu.memory_space<vmem>>, vector<8x32xf32>,
    } else {
    }
    %c8_i32_67 = arith.constant 8 : i32
    %c8_i32_68 = arith.constant 8 : i32
    %252 = arith.muli %c8_i32_67, %c8_i32_68 : i32
    %253 = tpu.assume_multiple %252, 8 : i32
    %254 = arith.index_cast %253 : i32 to index
    %c0_69 = arith.constant 0 : index
    %255 = vector.load %arg9[%254, %c0_69] : memref<256x128xf32, #tpu.memory_space<vmem>>, vector<8x128xf32>
    %256 = arith.truncf %248 : vector<8x32xf32> to vector<8x32xbf16>
    %cst_70 = arith.constant dense<0.000000e+00> : vector<8x128xf32>
    %257 = tpu.matmul %256, %7, %cst_70 {dimension_numbers = #tpu.dot_dimension_numbers<[1], [0], [0], [1], [0, 0, 1, 1], [], []>} : vector<8x32xbf16>, vector<32x128xbf16>, vector<8x128xf32> -> vector<8x128xf32>
    %258 = vector.extract_strided_slice %255 {offsets = [0, 0], sizes = [8, 64], strides = [1, 1]} : vector<8x128xf32> to vector<8x64xf32>
    %259 = vector.extract_strided_slice %257 {offsets = [0, 0], sizes = [8, 64], strides = [1, 1]} : vector<8x128xf32> to vector<8x64xf32>
    %260 = arith.addf %258, %259 : vector<8x64xf32>
    %261 = arith.negf %260 : vector<8x64xf32>
    %262 = math.exp %261 : vector<8x64xf32>
    %cst_71 = arith.constant 1.000000e+00 : f32
    %263 = vector.broadcast %cst_71 : f32 to vector<8x64xf32>
    %264 = arith.addf %263, %262 : vector<8x64xf32>
    %265 = arith.divf %263, %264 : vector<8x64xf32>
    %266 = vector.extract_strided_slice %265 {offsets = [0, 0], sizes = [8, 32], strides = [1, 1]} : vector<8x64xf32> to vector<8x32xf32>
    %267 = vector.extract_strided_slice %265 {offsets = [0, 32], sizes = [8, 32], strides = [1, 1]} : vector<8x64xf32> to vector<8x32xf32>
    %268 = vector.extract_strided_slice %255 {offsets = [0, 64], sizes = [8, 32], strides = [1, 1]} : vector<8x128xf32> to vector<8x32xf32>
    %269 = vector.extract_strided_slice %257 {offsets = [0, 64], sizes = [8, 32], strides = [1, 1]} : vector<8x128xf32> to vector<8x32xf32>
    %270 = arith.addf %269, %10 : vector<8x32xf32>
    %271 = arith.mulf %266, %270 : vector<8x32xf32>
    %272 = arith.addf %268, %271 : vector<8x32xf32>
    %273 = math.tanh %272 : vector<8x32xf32>
    %cst_72 = arith.constant 1.000000e+00 : f32
    %274 = vector.broadcast %cst_72 : f32 to vector<8x32xf32>
    %275 = arith.subf %274, %267 : vector<8x32xf32>
    %276 = arith.mulf %275, %273 : vector<8x32xf32>
    %277 = arith.mulf %267, %248 : vector<8x32xf32>
    %278 = arith.addf %276, %277 : vector<8x32xf32>
    %c8_i32_73 = arith.constant 8 : i32
    %279 = arith.cmpi sge, %c8_i32_67, %c8_i32_73 : i32
    %280 = arith.extui %279 : i1 to i32
    %c0_i32_74 = arith.constant 0 : i32
    %281 = arith.cmpi ne, %280, %c0_i32_74 : i32
    scf.if %281 {
      %c8_i32_245 = arith.constant 8 : i32
      %979 = arith.subi %c8_i32_67, %c8_i32_245 : i32
      %c8_i32_246 = arith.constant 8 : i32
      %980 = arith.muli %979, %c8_i32_246 : i32
      %981 = tpu.assume_multiple %980, 8 : i32
      %982 = arith.index_cast %981 : i32 to index
      %c0_247 = arith.constant 0 : index
      %983 = vector.load %arg10[%982, %c0_247] : memref<192x32xf32, #tpu.memory_space<vmem>>, vector<8x32xf32>
      tpu.vector_store %arg10[%982, %c0_247], %278 {strides = array<i32>} : memref<192x32xf32, #tpu.memory_space<vmem>>, vector<8x32xf32>,
    } else {
    }
    %c9_i32 = arith.constant 9 : i32
    %c8_i32_75 = arith.constant 8 : i32
    %282 = arith.muli %c9_i32, %c8_i32_75 : i32
    %283 = tpu.assume_multiple %282, 8 : i32
    %284 = arith.index_cast %283 : i32 to index
    %c0_76 = arith.constant 0 : index
    %285 = vector.load %arg9[%284, %c0_76] : memref<256x128xf32, #tpu.memory_space<vmem>>, vector<8x128xf32>
    %286 = arith.truncf %278 : vector<8x32xf32> to vector<8x32xbf16>
    %cst_77 = arith.constant dense<0.000000e+00> : vector<8x128xf32>
    %287 = tpu.matmul %286, %7, %cst_77 {dimension_numbers = #tpu.dot_dimension_numbers<[1], [0], [0], [1], [0, 0, 1, 1], [], []>} : vector<8x32xbf16>, vector<32x128xbf16>, vector<8x128xf32> -> vector<8x128xf32>
    %288 = vector.extract_strided_slice %285 {offsets = [0, 0], sizes = [8, 64], strides = [1, 1]} : vector<8x128xf32> to vector<8x64xf32>
    %289 = vector.extract_strided_slice %287 {offsets = [0, 0], sizes = [8, 64], strides = [1, 1]} : vector<8x128xf32> to vector<8x64xf32>
    %290 = arith.addf %288, %289 : vector<8x64xf32>
    %291 = arith.negf %290 : vector<8x64xf32>
    %292 = math.exp %291 : vector<8x64xf32>
    %cst_78 = arith.constant 1.000000e+00 : f32
    %293 = vector.broadcast %cst_78 : f32 to vector<8x64xf32>
    %294 = arith.addf %293, %292 : vector<8x64xf32>
    %295 = arith.divf %293, %294 : vector<8x64xf32>
    %296 = vector.extract_strided_slice %295 {offsets = [0, 0], sizes = [8, 32], strides = [1, 1]} : vector<8x64xf32> to vector<8x32xf32>
    %297 = vector.extract_strided_slice %295 {offsets = [0, 32], sizes = [8, 32], strides = [1, 1]} : vector<8x64xf32> to vector<8x32xf32>
    %298 = vector.extract_strided_slice %285 {offsets = [0, 64], sizes = [8, 32], strides = [1, 1]} : vector<8x128xf32> to vector<8x32xf32>
    %299 = vector.extract_strided_slice %287 {offsets = [0, 64], sizes = [8, 32], strides = [1, 1]} : vector<8x128xf32> to vector<8x32xf32>
    %300 = arith.addf %299, %10 : vector<8x32xf32>
    %301 = arith.mulf %296, %300 : vector<8x32xf32>
    %302 = arith.addf %298, %301 : vector<8x32xf32>
    %303 = math.tanh %302 : vector<8x32xf32>
    %cst_79 = arith.constant 1.000000e+00 : f32
    %304 = vector.broadcast %cst_79 : f32 to vector<8x32xf32>
    %305 = arith.subf %304, %297 : vector<8x32xf32>
    %306 = arith.mulf %305, %303 : vector<8x32xf32>
    %307 = arith.mulf %297, %278 : vector<8x32xf32>
    %308 = arith.addf %306, %307 : vector<8x32xf32>
    %c8_i32_80 = arith.constant 8 : i32
    %309 = arith.cmpi sge, %c9_i32, %c8_i32_80 : i32
    %310 = arith.extui %309 : i1 to i32
    %c0_i32_81 = arith.constant 0 : i32
    %311 = arith.cmpi ne, %310, %c0_i32_81 : i32
    scf.if %311 {
      %c8_i32_245 = arith.constant 8 : i32
      %979 = arith.subi %c9_i32, %c8_i32_245 : i32
      %c8_i32_246 = arith.constant 8 : i32
      %980 = arith.muli %979, %c8_i32_246 : i32
      %981 = tpu.assume_multiple %980, 8 : i32
      %982 = arith.index_cast %981 : i32 to index
      %c0_247 = arith.constant 0 : index
      %983 = vector.load %arg10[%982, %c0_247] : memref<192x32xf32, #tpu.memory_space<vmem>>, vector<8x32xf32>
      tpu.vector_store %arg10[%982, %c0_247], %308 {strides = array<i32>} : memref<192x32xf32, #tpu.memory_space<vmem>>, vector<8x32xf32>,
    } else {
    }
    %c10_i32 = arith.constant 10 : i32
    %c8_i32_82 = arith.constant 8 : i32
    %312 = arith.muli %c10_i32, %c8_i32_82 : i32
    %313 = tpu.assume_multiple %312, 8 : i32
    %314 = arith.index_cast %313 : i32 to index
    %c0_83 = arith.constant 0 : index
    %315 = vector.load %arg9[%314, %c0_83] : memref<256x128xf32, #tpu.memory_space<vmem>>, vector<8x128xf32>
    %316 = arith.truncf %308 : vector<8x32xf32> to vector<8x32xbf16>
    %cst_84 = arith.constant dense<0.000000e+00> : vector<8x128xf32>
    %317 = tpu.matmul %316, %7, %cst_84 {dimension_numbers = #tpu.dot_dimension_numbers<[1], [0], [0], [1], [0, 0, 1, 1], [], []>} : vector<8x32xbf16>, vector<32x128xbf16>, vector<8x128xf32> -> vector<8x128xf32>
    %318 = vector.extract_strided_slice %315 {offsets = [0, 0], sizes = [8, 64], strides = [1, 1]} : vector<8x128xf32> to vector<8x64xf32>
    %319 = vector.extract_strided_slice %317 {offsets = [0, 0], sizes = [8, 64], strides = [1, 1]} : vector<8x128xf32> to vector<8x64xf32>
    %320 = arith.addf %318, %319 : vector<8x64xf32>
    %321 = arith.negf %320 : vector<8x64xf32>
    %322 = math.exp %321 : vector<8x64xf32>
    %cst_85 = arith.constant 1.000000e+00 : f32
    %323 = vector.broadcast %cst_85 : f32 to vector<8x64xf32>
    %324 = arith.addf %323, %322 : vector<8x64xf32>
    %325 = arith.divf %323, %324 : vector<8x64xf32>
    %326 = vector.extract_strided_slice %325 {offsets = [0, 0], sizes = [8, 32], strides = [1, 1]} : vector<8x64xf32> to vector<8x32xf32>
    %327 = vector.extract_strided_slice %325 {offsets = [0, 32], sizes = [8, 32], strides = [1, 1]} : vector<8x64xf32> to vector<8x32xf32>
    %328 = vector.extract_strided_slice %315 {offsets = [0, 64], sizes = [8, 32], strides = [1, 1]} : vector<8x128xf32> to vector<8x32xf32>
    %329 = vector.extract_strided_slice %317 {offsets = [0, 64], sizes = [8, 32], strides = [1, 1]} : vector<8x128xf32> to vector<8x32xf32>
    %330 = arith.addf %329, %10 : vector<8x32xf32>
    %331 = arith.mulf %326, %330 : vector<8x32xf32>
    %332 = arith.addf %328, %331 : vector<8x32xf32>
    %333 = math.tanh %332 : vector<8x32xf32>
    %cst_86 = arith.constant 1.000000e+00 : f32
    %334 = vector.broadcast %cst_86 : f32 to vector<8x32xf32>
    %335 = arith.subf %334, %327 : vector<8x32xf32>
    %336 = arith.mulf %335, %333 : vector<8x32xf32>
    %337 = arith.mulf %327, %308 : vector<8x32xf32>
    %338 = arith.addf %336, %337 : vector<8x32xf32>
    %c8_i32_87 = arith.constant 8 : i32
    %339 = arith.cmpi sge, %c10_i32, %c8_i32_87 : i32
    %340 = arith.extui %339 : i1 to i32
    %c0_i32_88 = arith.constant 0 : i32
    %341 = arith.cmpi ne, %340, %c0_i32_88 : i32
    scf.if %341 {
      %c8_i32_245 = arith.constant 8 : i32
      %979 = arith.subi %c10_i32, %c8_i32_245 : i32
      %c8_i32_246 = arith.constant 8 : i32
      %980 = arith.muli %979, %c8_i32_246 : i32
      %981 = tpu.assume_multiple %980, 8 : i32
      %982 = arith.index_cast %981 : i32 to index
      %c0_247 = arith.constant 0 : index
      %983 = vector.load %arg10[%982, %c0_247] : memref<192x32xf32, #tpu.memory_space<vmem>>, vector<8x32xf32>
      tpu.vector_store %arg10[%982, %c0_247], %338 {strides = array<i32>} : memref<192x32xf32, #tpu.memory_space<vmem>>, vector<8x32xf32>,
    } else {
    }
    %c11_i32 = arith.constant 11 : i32
    %c8_i32_89 = arith.constant 8 : i32
    %342 = arith.muli %c11_i32, %c8_i32_89 : i32
    %343 = tpu.assume_multiple %342, 8 : i32
    %344 = arith.index_cast %343 : i32 to index
    %c0_90 = arith.constant 0 : index
    %345 = vector.load %arg9[%344, %c0_90] : memref<256x128xf32, #tpu.memory_space<vmem>>, vector<8x128xf32>
    %346 = arith.truncf %338 : vector<8x32xf32> to vector<8x32xbf16>
    %cst_91 = arith.constant dense<0.000000e+00> : vector<8x128xf32>
    %347 = tpu.matmul %346, %7, %cst_91 {dimension_numbers = #tpu.dot_dimension_numbers<[1], [0], [0], [1], [0, 0, 1, 1], [], []>} : vector<8x32xbf16>, vector<32x128xbf16>, vector<8x128xf32> -> vector<8x128xf32>
    %348 = vector.extract_strided_slice %345 {offsets = [0, 0], sizes = [8, 64], strides = [1, 1]} : vector<8x128xf32> to vector<8x64xf32>
    %349 = vector.extract_strided_slice %347 {offsets = [0, 0], sizes = [8, 64], strides = [1, 1]} : vector<8x128xf32> to vector<8x64xf32>
    %350 = arith.addf %348, %349 : vector<8x64xf32>
    %351 = arith.negf %350 : vector<8x64xf32>
    %352 = math.exp %351 : vector<8x64xf32>
    %cst_92 = arith.constant 1.000000e+00 : f32
    %353 = vector.broadcast %cst_92 : f32 to vector<8x64xf32>
    %354 = arith.addf %353, %352 : vector<8x64xf32>
    %355 = arith.divf %353, %354 : vector<8x64xf32>
    %356 = vector.extract_strided_slice %355 {offsets = [0, 0], sizes = [8, 32], strides = [1, 1]} : vector<8x64xf32> to vector<8x32xf32>
    %357 = vector.extract_strided_slice %355 {offsets = [0, 32], sizes = [8, 32], strides = [1, 1]} : vector<8x64xf32> to vector<8x32xf32>
    %358 = vector.extract_strided_slice %345 {offsets = [0, 64], sizes = [8, 32], strides = [1, 1]} : vector<8x128xf32> to vector<8x32xf32>
    %359 = vector.extract_strided_slice %347 {offsets = [0, 64], sizes = [8, 32], strides = [1, 1]} : vector<8x128xf32> to vector<8x32xf32>
    %360 = arith.addf %359, %10 : vector<8x32xf32>
    %361 = arith.mulf %356, %360 : vector<8x32xf32>
    %362 = arith.addf %358, %361 : vector<8x32xf32>
    %363 = math.tanh %362 : vector<8x32xf32>
    %cst_93 = arith.constant 1.000000e+00 : f32
    %364 = vector.broadcast %cst_93 : f32 to vector<8x32xf32>
    %365 = arith.subf %364, %357 : vector<8x32xf32>
    %366 = arith.mulf %365, %363 : vector<8x32xf32>
    %367 = arith.mulf %357, %338 : vector<8x32xf32>
    %368 = arith.addf %366, %367 : vector<8x32xf32>
    %c8_i32_94 = arith.constant 8 : i32
    %369 = arith.cmpi sge, %c11_i32, %c8_i32_94 : i32
    %370 = arith.extui %369 : i1 to i32
    %c0_i32_95 = arith.constant 0 : i32
    %371 = arith.cmpi ne, %370, %c0_i32_95 : i32
    scf.if %371 {
      %c8_i32_245 = arith.constant 8 : i32
      %979 = arith.subi %c11_i32, %c8_i32_245 : i32
      %c8_i32_246 = arith.constant 8 : i32
      %980 = arith.muli %979, %c8_i32_246 : i32
      %981 = tpu.assume_multiple %980, 8 : i32
      %982 = arith.index_cast %981 : i32 to index
      %c0_247 = arith.constant 0 : index
      %983 = vector.load %arg10[%982, %c0_247] : memref<192x32xf32, #tpu.memory_space<vmem>>, vector<8x32xf32>
      tpu.vector_store %arg10[%982, %c0_247], %368 {strides = array<i32>} : memref<192x32xf32, #tpu.memory_space<vmem>>, vector<8x32xf32>,
    } else {
    }
    %c12_i32 = arith.constant 12 : i32
    %c8_i32_96 = arith.constant 8 : i32
    %372 = arith.muli %c12_i32, %c8_i32_96 : i32
    %373 = tpu.assume_multiple %372, 8 : i32
    %374 = arith.index_cast %373 : i32 to index
    %c0_97 = arith.constant 0 : index
    %375 = vector.load %arg9[%374, %c0_97] : memref<256x128xf32, #tpu.memory_space<vmem>>, vector<8x128xf32>
    %376 = arith.truncf %368 : vector<8x32xf32> to vector<8x32xbf16>
    %cst_98 = arith.constant dense<0.000000e+00> : vector<8x128xf32>
    %377 = tpu.matmul %376, %7, %cst_98 {dimension_numbers = #tpu.dot_dimension_numbers<[1], [0], [0], [1], [0, 0, 1, 1], [], []>} : vector<8x32xbf16>, vector<32x128xbf16>, vector<8x128xf32> -> vector<8x128xf32>
    %378 = vector.extract_strided_slice %375 {offsets = [0, 0], sizes = [8, 64], strides = [1, 1]} : vector<8x128xf32> to vector<8x64xf32>
    %379 = vector.extract_strided_slice %377 {offsets = [0, 0], sizes = [8, 64], strides = [1, 1]} : vector<8x128xf32> to vector<8x64xf32>
    %380 = arith.addf %378, %379 : vector<8x64xf32>
    %381 = arith.negf %380 : vector<8x64xf32>
    %382 = math.exp %381 : vector<8x64xf32>
    %cst_99 = arith.constant 1.000000e+00 : f32
    %383 = vector.broadcast %cst_99 : f32 to vector<8x64xf32>
    %384 = arith.addf %383, %382 : vector<8x64xf32>
    %385 = arith.divf %383, %384 : vector<8x64xf32>
    %386 = vector.extract_strided_slice %385 {offsets = [0, 0], sizes = [8, 32], strides = [1, 1]} : vector<8x64xf32> to vector<8x32xf32>
    %387 = vector.extract_strided_slice %385 {offsets = [0, 32], sizes = [8, 32], strides = [1, 1]} : vector<8x64xf32> to vector<8x32xf32>
    %388 = vector.extract_strided_slice %375 {offsets = [0, 64], sizes = [8, 32], strides = [1, 1]} : vector<8x128xf32> to vector<8x32xf32>
    %389 = vector.extract_strided_slice %377 {offsets = [0, 64], sizes = [8, 32], strides = [1, 1]} : vector<8x128xf32> to vector<8x32xf32>
    %390 = arith.addf %389, %10 : vector<8x32xf32>
    %391 = arith.mulf %386, %390 : vector<8x32xf32>
    %392 = arith.addf %388, %391 : vector<8x32xf32>
    %393 = math.tanh %392 : vector<8x32xf32>
    %cst_100 = arith.constant 1.000000e+00 : f32
    %394 = vector.broadcast %cst_100 : f32 to vector<8x32xf32>
    %395 = arith.subf %394, %387 : vector<8x32xf32>
    %396 = arith.mulf %395, %393 : vector<8x32xf32>
    %397 = arith.mulf %387, %368 : vector<8x32xf32>
    %398 = arith.addf %396, %397 : vector<8x32xf32>
    %c8_i32_101 = arith.constant 8 : i32
    %399 = arith.cmpi sge, %c12_i32, %c8_i32_101 : i32
    %400 = arith.extui %399 : i1 to i32
    %c0_i32_102 = arith.constant 0 : i32
    %401 = arith.cmpi ne, %400, %c0_i32_102 : i32
    scf.if %401 {
      %c8_i32_245 = arith.constant 8 : i32
      %979 = arith.subi %c12_i32, %c8_i32_245 : i32
      %c8_i32_246 = arith.constant 8 : i32
      %980 = arith.muli %979, %c8_i32_246 : i32
      %981 = tpu.assume_multiple %980, 8 : i32
      %982 = arith.index_cast %981 : i32 to index
      %c0_247 = arith.constant 0 : index
      %983 = vector.load %arg10[%982, %c0_247] : memref<192x32xf32, #tpu.memory_space<vmem>>, vector<8x32xf32>
      tpu.vector_store %arg10[%982, %c0_247], %398 {strides = array<i32>} : memref<192x32xf32, #tpu.memory_space<vmem>>, vector<8x32xf32>,
    } else {
    }
    %c13_i32 = arith.constant 13 : i32
    %c8_i32_103 = arith.constant 8 : i32
    %402 = arith.muli %c13_i32, %c8_i32_103 : i32
    %403 = tpu.assume_multiple %402, 8 : i32
    %404 = arith.index_cast %403 : i32 to index
    %c0_104 = arith.constant 0 : index
    %405 = vector.load %arg9[%404, %c0_104] : memref<256x128xf32, #tpu.memory_space<vmem>>, vector<8x128xf32>
    %406 = arith.truncf %398 : vector<8x32xf32> to vector<8x32xbf16>
    %cst_105 = arith.constant dense<0.000000e+00> : vector<8x128xf32>
    %407 = tpu.matmul %406, %7, %cst_105 {dimension_numbers = #tpu.dot_dimension_numbers<[1], [0], [0], [1], [0, 0, 1, 1], [], []>} : vector<8x32xbf16>, vector<32x128xbf16>, vector<8x128xf32> -> vector<8x128xf32>
    %408 = vector.extract_strided_slice %405 {offsets = [0, 0], sizes = [8, 64], strides = [1, 1]} : vector<8x128xf32> to vector<8x64xf32>
    %409 = vector.extract_strided_slice %407 {offsets = [0, 0], sizes = [8, 64], strides = [1, 1]} : vector<8x128xf32> to vector<8x64xf32>
    %410 = arith.addf %408, %409 : vector<8x64xf32>
    %411 = arith.negf %410 : vector<8x64xf32>
    %412 = math.exp %411 : vector<8x64xf32>
    %cst_106 = arith.constant 1.000000e+00 : f32
    %413 = vector.broadcast %cst_106 : f32 to vector<8x64xf32>
    %414 = arith.addf %413, %412 : vector<8x64xf32>
    %415 = arith.divf %413, %414 : vector<8x64xf32>
    %416 = vector.extract_strided_slice %415 {offsets = [0, 0], sizes = [8, 32], strides = [1, 1]} : vector<8x64xf32> to vector<8x32xf32>
    %417 = vector.extract_strided_slice %415 {offsets = [0, 32], sizes = [8, 32], strides = [1, 1]} : vector<8x64xf32> to vector<8x32xf32>
    %418 = vector.extract_strided_slice %405 {offsets = [0, 64], sizes = [8, 32], strides = [1, 1]} : vector<8x128xf32> to vector<8x32xf32>
    %419 = vector.extract_strided_slice %407 {offsets = [0, 64], sizes = [8, 32], strides = [1, 1]} : vector<8x128xf32> to vector<8x32xf32>
    %420 = arith.addf %419, %10 : vector<8x32xf32>
    %421 = arith.mulf %416, %420 : vector<8x32xf32>
    %422 = arith.addf %418, %421 : vector<8x32xf32>
    %423 = math.tanh %422 : vector<8x32xf32>
    %cst_107 = arith.constant 1.000000e+00 : f32
    %424 = vector.broadcast %cst_107 : f32 to vector<8x32xf32>
    %425 = arith.subf %424, %417 : vector<8x32xf32>
    %426 = arith.mulf %425, %423 : vector<8x32xf32>
    %427 = arith.mulf %417, %398 : vector<8x32xf32>
    %428 = arith.addf %426, %427 : vector<8x32xf32>
    %c8_i32_108 = arith.constant 8 : i32
    %429 = arith.cmpi sge, %c13_i32, %c8_i32_108 : i32
    %430 = arith.extui %429 : i1 to i32
    %c0_i32_109 = arith.constant 0 : i32
    %431 = arith.cmpi ne, %430, %c0_i32_109 : i32
    scf.if %431 {
      %c8_i32_245 = arith.constant 8 : i32
      %979 = arith.subi %c13_i32, %c8_i32_245 : i32
      %c8_i32_246 = arith.constant 8 : i32
      %980 = arith.muli %979, %c8_i32_246 : i32
      %981 = tpu.assume_multiple %980, 8 : i32
      %982 = arith.index_cast %981 : i32 to index
      %c0_247 = arith.constant 0 : index
      %983 = vector.load %arg10[%982, %c0_247] : memref<192x32xf32, #tpu.memory_space<vmem>>, vector<8x32xf32>
      tpu.vector_store %arg10[%982, %c0_247], %428 {strides = array<i32>} : memref<192x32xf32, #tpu.memory_space<vmem>>, vector<8x32xf32>,
    } else {
    }
    %c14_i32 = arith.constant 14 : i32
    %c8_i32_110 = arith.constant 8 : i32
    %432 = arith.muli %c14_i32, %c8_i32_110 : i32
    %433 = tpu.assume_multiple %432, 8 : i32
    %434 = arith.index_cast %433 : i32 to index
    %c0_111 = arith.constant 0 : index
    %435 = vector.load %arg9[%434, %c0_111] : memref<256x128xf32, #tpu.memory_space<vmem>>, vector<8x128xf32>
    %436 = arith.truncf %428 : vector<8x32xf32> to vector<8x32xbf16>
    %cst_112 = arith.constant dense<0.000000e+00> : vector<8x128xf32>
    %437 = tpu.matmul %436, %7, %cst_112 {dimension_numbers = #tpu.dot_dimension_numbers<[1], [0], [0], [1], [0, 0, 1, 1], [], []>} : vector<8x32xbf16>, vector<32x128xbf16>, vector<8x128xf32> -> vector<8x128xf32>
    %438 = vector.extract_strided_slice %435 {offsets = [0, 0], sizes = [8, 64], strides = [1, 1]} : vector<8x128xf32> to vector<8x64xf32>
    %439 = vector.extract_strided_slice %437 {offsets = [0, 0], sizes = [8, 64], strides = [1, 1]} : vector<8x128xf32> to vector<8x64xf32>
    %440 = arith.addf %438, %439 : vector<8x64xf32>
    %441 = arith.negf %440 : vector<8x64xf32>
    %442 = math.exp %441 : vector<8x64xf32>
    %cst_113 = arith.constant 1.000000e+00 : f32
    %443 = vector.broadcast %cst_113 : f32 to vector<8x64xf32>
    %444 = arith.addf %443, %442 : vector<8x64xf32>
    %445 = arith.divf %443, %444 : vector<8x64xf32>
    %446 = vector.extract_strided_slice %445 {offsets = [0, 0], sizes = [8, 32], strides = [1, 1]} : vector<8x64xf32> to vector<8x32xf32>
    %447 = vector.extract_strided_slice %445 {offsets = [0, 32], sizes = [8, 32], strides = [1, 1]} : vector<8x64xf32> to vector<8x32xf32>
    %448 = vector.extract_strided_slice %435 {offsets = [0, 64], sizes = [8, 32], strides = [1, 1]} : vector<8x128xf32> to vector<8x32xf32>
    %449 = vector.extract_strided_slice %437 {offsets = [0, 64], sizes = [8, 32], strides = [1, 1]} : vector<8x128xf32> to vector<8x32xf32>
    %450 = arith.addf %449, %10 : vector<8x32xf32>
    %451 = arith.mulf %446, %450 : vector<8x32xf32>
    %452 = arith.addf %448, %451 : vector<8x32xf32>
    %453 = math.tanh %452 : vector<8x32xf32>
    %cst_114 = arith.constant 1.000000e+00 : f32
    %454 = vector.broadcast %cst_114 : f32 to vector<8x32xf32>
    %455 = arith.subf %454, %447 : vector<8x32xf32>
    %456 = arith.mulf %455, %453 : vector<8x32xf32>
    %457 = arith.mulf %447, %428 : vector<8x32xf32>
    %458 = arith.addf %456, %457 : vector<8x32xf32>
    %c8_i32_115 = arith.constant 8 : i32
    %459 = arith.cmpi sge, %c14_i32, %c8_i32_115 : i32
    %460 = arith.extui %459 : i1 to i32
    %c0_i32_116 = arith.constant 0 : i32
    %461 = arith.cmpi ne, %460, %c0_i32_116 : i32
    scf.if %461 {
      %c8_i32_245 = arith.constant 8 : i32
      %979 = arith.subi %c14_i32, %c8_i32_245 : i32
      %c8_i32_246 = arith.constant 8 : i32
      %980 = arith.muli %979, %c8_i32_246 : i32
      %981 = tpu.assume_multiple %980, 8 : i32
      %982 = arith.index_cast %981 : i32 to index
      %c0_247 = arith.constant 0 : index
      %983 = vector.load %arg10[%982, %c0_247] : memref<192x32xf32, #tpu.memory_space<vmem>>, vector<8x32xf32>
      tpu.vector_store %arg10[%982, %c0_247], %458 {strides = array<i32>} : memref<192x32xf32, #tpu.memory_space<vmem>>, vector<8x32xf32>,
    } else {
    }
    %c15_i32 = arith.constant 15 : i32
    %c8_i32_117 = arith.constant 8 : i32
    %462 = arith.muli %c15_i32, %c8_i32_117 : i32
    %463 = tpu.assume_multiple %462, 8 : i32
    %464 = arith.index_cast %463 : i32 to index
    %c0_118 = arith.constant 0 : index
    %465 = vector.load %arg9[%464, %c0_118] : memref<256x128xf32, #tpu.memory_space<vmem>>, vector<8x128xf32>
    %466 = arith.truncf %458 : vector<8x32xf32> to vector<8x32xbf16>
    %cst_119 = arith.constant dense<0.000000e+00> : vector<8x128xf32>
    %467 = tpu.matmul %466, %7, %cst_119 {dimension_numbers = #tpu.dot_dimension_numbers<[1], [0], [0], [1], [0, 0, 1, 1], [], []>} : vector<8x32xbf16>, vector<32x128xbf16>, vector<8x128xf32> -> vector<8x128xf32>
    %468 = vector.extract_strided_slice %465 {offsets = [0, 0], sizes = [8, 64], strides = [1, 1]} : vector<8x128xf32> to vector<8x64xf32>
    %469 = vector.extract_strided_slice %467 {offsets = [0, 0], sizes = [8, 64], strides = [1, 1]} : vector<8x128xf32> to vector<8x64xf32>
    %470 = arith.addf %468, %469 : vector<8x64xf32>
    %471 = arith.negf %470 : vector<8x64xf32>
    %472 = math.exp %471 : vector<8x64xf32>
    %cst_120 = arith.constant 1.000000e+00 : f32
    %473 = vector.broadcast %cst_120 : f32 to vector<8x64xf32>
    %474 = arith.addf %473, %472 : vector<8x64xf32>
    %475 = arith.divf %473, %474 : vector<8x64xf32>
    %476 = vector.extract_strided_slice %475 {offsets = [0, 0], sizes = [8, 32], strides = [1, 1]} : vector<8x64xf32> to vector<8x32xf32>
    %477 = vector.extract_strided_slice %475 {offsets = [0, 32], sizes = [8, 32], strides = [1, 1]} : vector<8x64xf32> to vector<8x32xf32>
    %478 = vector.extract_strided_slice %465 {offsets = [0, 64], sizes = [8, 32], strides = [1, 1]} : vector<8x128xf32> to vector<8x32xf32>
    %479 = vector.extract_strided_slice %467 {offsets = [0, 64], sizes = [8, 32], strides = [1, 1]} : vector<8x128xf32> to vector<8x32xf32>
    %480 = arith.addf %479, %10 : vector<8x32xf32>
    %481 = arith.mulf %476, %480 : vector<8x32xf32>
    %482 = arith.addf %478, %481 : vector<8x32xf32>
    %483 = math.tanh %482 : vector<8x32xf32>
    %cst_121 = arith.constant 1.000000e+00 : f32
    %484 = vector.broadcast %cst_121 : f32 to vector<8x32xf32>
    %485 = arith.subf %484, %477 : vector<8x32xf32>
    %486 = arith.mulf %485, %483 : vector<8x32xf32>
    %487 = arith.mulf %477, %458 : vector<8x32xf32>
    %488 = arith.addf %486, %487 : vector<8x32xf32>
    %c8_i32_122 = arith.constant 8 : i32
    %489 = arith.cmpi sge, %c15_i32, %c8_i32_122 : i32
    %490 = arith.extui %489 : i1 to i32
    %c0_i32_123 = arith.constant 0 : i32
    %491 = arith.cmpi ne, %490, %c0_i32_123 : i32
    scf.if %491 {
      %c8_i32_245 = arith.constant 8 : i32
      %979 = arith.subi %c15_i32, %c8_i32_245 : i32
      %c8_i32_246 = arith.constant 8 : i32
      %980 = arith.muli %979, %c8_i32_246 : i32
      %981 = tpu.assume_multiple %980, 8 : i32
      %982 = arith.index_cast %981 : i32 to index
      %c0_247 = arith.constant 0 : index
      %983 = vector.load %arg10[%982, %c0_247] : memref<192x32xf32, #tpu.memory_space<vmem>>, vector<8x32xf32>
      tpu.vector_store %arg10[%982, %c0_247], %488 {strides = array<i32>} : memref<192x32xf32, #tpu.memory_space<vmem>>, vector<8x32xf32>,
    } else {
    }
    %c16_i32 = arith.constant 16 : i32
    %c8_i32_124 = arith.constant 8 : i32
    %492 = arith.muli %c16_i32, %c8_i32_124 : i32
    %493 = tpu.assume_multiple %492, 8 : i32
    %494 = arith.index_cast %493 : i32 to index
    %c0_125 = arith.constant 0 : index
    %495 = vector.load %arg9[%494, %c0_125] : memref<256x128xf32, #tpu.memory_space<vmem>>, vector<8x128xf32>
    %496 = arith.truncf %488 : vector<8x32xf32> to vector<8x32xbf16>
    %cst_126 = arith.constant dense<0.000000e+00> : vector<8x128xf32>
    %497 = tpu.matmul %496, %7, %cst_126 {dimension_numbers = #tpu.dot_dimension_numbers<[1], [0], [0], [1], [0, 0, 1, 1], [], []>} : vector<8x32xbf16>, vector<32x128xbf16>, vector<8x128xf32> -> vector<8x128xf32>
    %498 = vector.extract_strided_slice %495 {offsets = [0, 0], sizes = [8, 64], strides = [1, 1]} : vector<8x128xf32> to vector<8x64xf32>
    %499 = vector.extract_strided_slice %497 {offsets = [0, 0], sizes = [8, 64], strides = [1, 1]} : vector<8x128xf32> to vector<8x64xf32>
    %500 = arith.addf %498, %499 : vector<8x64xf32>
    %501 = arith.negf %500 : vector<8x64xf32>
    %502 = math.exp %501 : vector<8x64xf32>
    %cst_127 = arith.constant 1.000000e+00 : f32
    %503 = vector.broadcast %cst_127 : f32 to vector<8x64xf32>
    %504 = arith.addf %503, %502 : vector<8x64xf32>
    %505 = arith.divf %503, %504 : vector<8x64xf32>
    %506 = vector.extract_strided_slice %505 {offsets = [0, 0], sizes = [8, 32], strides = [1, 1]} : vector<8x64xf32> to vector<8x32xf32>
    %507 = vector.extract_strided_slice %505 {offsets = [0, 32], sizes = [8, 32], strides = [1, 1]} : vector<8x64xf32> to vector<8x32xf32>
    %508 = vector.extract_strided_slice %495 {offsets = [0, 64], sizes = [8, 32], strides = [1, 1]} : vector<8x128xf32> to vector<8x32xf32>
    %509 = vector.extract_strided_slice %497 {offsets = [0, 64], sizes = [8, 32], strides = [1, 1]} : vector<8x128xf32> to vector<8x32xf32>
    %510 = arith.addf %509, %10 : vector<8x32xf32>
    %511 = arith.mulf %506, %510 : vector<8x32xf32>
    %512 = arith.addf %508, %511 : vector<8x32xf32>
    %513 = math.tanh %512 : vector<8x32xf32>
    %cst_128 = arith.constant 1.000000e+00 : f32
    %514 = vector.broadcast %cst_128 : f32 to vector<8x32xf32>
    %515 = arith.subf %514, %507 : vector<8x32xf32>
    %516 = arith.mulf %515, %513 : vector<8x32xf32>
    %517 = arith.mulf %507, %488 : vector<8x32xf32>
    %518 = arith.addf %516, %517 : vector<8x32xf32>
    %c8_i32_129 = arith.constant 8 : i32
    %519 = arith.cmpi sge, %c16_i32, %c8_i32_129 : i32
    %520 = arith.extui %519 : i1 to i32
    %c0_i32_130 = arith.constant 0 : i32
    %521 = arith.cmpi ne, %520, %c0_i32_130 : i32
    scf.if %521 {
      %c8_i32_245 = arith.constant 8 : i32
      %979 = arith.subi %c16_i32, %c8_i32_245 : i32
      %c8_i32_246 = arith.constant 8 : i32
      %980 = arith.muli %979, %c8_i32_246 : i32
      %981 = tpu.assume_multiple %980, 8 : i32
      %982 = arith.index_cast %981 : i32 to index
      %c0_247 = arith.constant 0 : index
      %983 = vector.load %arg10[%982, %c0_247] : memref<192x32xf32, #tpu.memory_space<vmem>>, vector<8x32xf32>
      tpu.vector_store %arg10[%982, %c0_247], %518 {strides = array<i32>} : memref<192x32xf32, #tpu.memory_space<vmem>>, vector<8x32xf32>,
    } else {
    }
    %c17_i32 = arith.constant 17 : i32
    %c8_i32_131 = arith.constant 8 : i32
    %522 = arith.muli %c17_i32, %c8_i32_131 : i32
    %523 = tpu.assume_multiple %522, 8 : i32
    %524 = arith.index_cast %523 : i32 to index
    %c0_132 = arith.constant 0 : index
    %525 = vector.load %arg9[%524, %c0_132] : memref<256x128xf32, #tpu.memory_space<vmem>>, vector<8x128xf32>
    %526 = arith.truncf %518 : vector<8x32xf32> to vector<8x32xbf16>
    %cst_133 = arith.constant dense<0.000000e+00> : vector<8x128xf32>
    %527 = tpu.matmul %526, %7, %cst_133 {dimension_numbers = #tpu.dot_dimension_numbers<[1], [0], [0], [1], [0, 0, 1, 1], [], []>} : vector<8x32xbf16>, vector<32x128xbf16>, vector<8x128xf32> -> vector<8x128xf32>
    %528 = vector.extract_strided_slice %525 {offsets = [0, 0], sizes = [8, 64], strides = [1, 1]} : vector<8x128xf32> to vector<8x64xf32>
    %529 = vector.extract_strided_slice %527 {offsets = [0, 0], sizes = [8, 64], strides = [1, 1]} : vector<8x128xf32> to vector<8x64xf32>
    %530 = arith.addf %528, %529 : vector<8x64xf32>
    %531 = arith.negf %530 : vector<8x64xf32>
    %532 = math.exp %531 : vector<8x64xf32>
    %cst_134 = arith.constant 1.000000e+00 : f32
    %533 = vector.broadcast %cst_134 : f32 to vector<8x64xf32>
    %534 = arith.addf %533, %532 : vector<8x64xf32>
    %535 = arith.divf %533, %534 : vector<8x64xf32>
    %536 = vector.extract_strided_slice %535 {offsets = [0, 0], sizes = [8, 32], strides = [1, 1]} : vector<8x64xf32> to vector<8x32xf32>
    %537 = vector.extract_strided_slice %535 {offsets = [0, 32], sizes = [8, 32], strides = [1, 1]} : vector<8x64xf32> to vector<8x32xf32>
    %538 = vector.extract_strided_slice %525 {offsets = [0, 64], sizes = [8, 32], strides = [1, 1]} : vector<8x128xf32> to vector<8x32xf32>
    %539 = vector.extract_strided_slice %527 {offsets = [0, 64], sizes = [8, 32], strides = [1, 1]} : vector<8x128xf32> to vector<8x32xf32>
    %540 = arith.addf %539, %10 : vector<8x32xf32>
    %541 = arith.mulf %536, %540 : vector<8x32xf32>
    %542 = arith.addf %538, %541 : vector<8x32xf32>
    %543 = math.tanh %542 : vector<8x32xf32>
    %cst_135 = arith.constant 1.000000e+00 : f32
    %544 = vector.broadcast %cst_135 : f32 to vector<8x32xf32>
    %545 = arith.subf %544, %537 : vector<8x32xf32>
    %546 = arith.mulf %545, %543 : vector<8x32xf32>
    %547 = arith.mulf %537, %518 : vector<8x32xf32>
    %548 = arith.addf %546, %547 : vector<8x32xf32>
    %c8_i32_136 = arith.constant 8 : i32
    %549 = arith.cmpi sge, %c17_i32, %c8_i32_136 : i32
    %550 = arith.extui %549 : i1 to i32
    %c0_i32_137 = arith.constant 0 : i32
    %551 = arith.cmpi ne, %550, %c0_i32_137 : i32
    scf.if %551 {
      %c8_i32_245 = arith.constant 8 : i32
      %979 = arith.subi %c17_i32, %c8_i32_245 : i32
      %c8_i32_246 = arith.constant 8 : i32
      %980 = arith.muli %979, %c8_i32_246 : i32
      %981 = tpu.assume_multiple %980, 8 : i32
      %982 = arith.index_cast %981 : i32 to index
      %c0_247 = arith.constant 0 : index
      %983 = vector.load %arg10[%982, %c0_247] : memref<192x32xf32, #tpu.memory_space<vmem>>, vector<8x32xf32>
      tpu.vector_store %arg10[%982, %c0_247], %548 {strides = array<i32>} : memref<192x32xf32, #tpu.memory_space<vmem>>, vector<8x32xf32>,
    } else {
    }
    %c18_i32 = arith.constant 18 : i32
    %c8_i32_138 = arith.constant 8 : i32
    %552 = arith.muli %c18_i32, %c8_i32_138 : i32
    %553 = tpu.assume_multiple %552, 8 : i32
    %554 = arith.index_cast %553 : i32 to index
    %c0_139 = arith.constant 0 : index
    %555 = vector.load %arg9[%554, %c0_139] : memref<256x128xf32, #tpu.memory_space<vmem>>, vector<8x128xf32>
    %556 = arith.truncf %548 : vector<8x32xf32> to vector<8x32xbf16>
    %cst_140 = arith.constant dense<0.000000e+00> : vector<8x128xf32>
    %557 = tpu.matmul %556, %7, %cst_140 {dimension_numbers = #tpu.dot_dimension_numbers<[1], [0], [0], [1], [0, 0, 1, 1], [], []>} : vector<8x32xbf16>, vector<32x128xbf16>, vector<8x128xf32> -> vector<8x128xf32>
    %558 = vector.extract_strided_slice %555 {offsets = [0, 0], sizes = [8, 64], strides = [1, 1]} : vector<8x128xf32> to vector<8x64xf32>
    %559 = vector.extract_strided_slice %557 {offsets = [0, 0], sizes = [8, 64], strides = [1, 1]} : vector<8x128xf32> to vector<8x64xf32>
    %560 = arith.addf %558, %559 : vector<8x64xf32>
    %561 = arith.negf %560 : vector<8x64xf32>
    %562 = math.exp %561 : vector<8x64xf32>
    %cst_141 = arith.constant 1.000000e+00 : f32
    %563 = vector.broadcast %cst_141 : f32 to vector<8x64xf32>
    %564 = arith.addf %563, %562 : vector<8x64xf32>
    %565 = arith.divf %563, %564 : vector<8x64xf32>
    %566 = vector.extract_strided_slice %565 {offsets = [0, 0], sizes = [8, 32], strides = [1, 1]} : vector<8x64xf32> to vector<8x32xf32>
    %567 = vector.extract_strided_slice %565 {offsets = [0, 32], sizes = [8, 32], strides = [1, 1]} : vector<8x64xf32> to vector<8x32xf32>
    %568 = vector.extract_strided_slice %555 {offsets = [0, 64], sizes = [8, 32], strides = [1, 1]} : vector<8x128xf32> to vector<8x32xf32>
    %569 = vector.extract_strided_slice %557 {offsets = [0, 64], sizes = [8, 32], strides = [1, 1]} : vector<8x128xf32> to vector<8x32xf32>
    %570 = arith.addf %569, %10 : vector<8x32xf32>
    %571 = arith.mulf %566, %570 : vector<8x32xf32>
    %572 = arith.addf %568, %571 : vector<8x32xf32>
    %573 = math.tanh %572 : vector<8x32xf32>
    %cst_142 = arith.constant 1.000000e+00 : f32
    %574 = vector.broadcast %cst_142 : f32 to vector<8x32xf32>
    %575 = arith.subf %574, %567 : vector<8x32xf32>
    %576 = arith.mulf %575, %573 : vector<8x32xf32>
    %577 = arith.mulf %567, %548 : vector<8x32xf32>
    %578 = arith.addf %576, %577 : vector<8x32xf32>
    %c8_i32_143 = arith.constant 8 : i32
    %579 = arith.cmpi sge, %c18_i32, %c8_i32_143 : i32
    %580 = arith.extui %579 : i1 to i32
    %c0_i32_144 = arith.constant 0 : i32
    %581 = arith.cmpi ne, %580, %c0_i32_144 : i32
    scf.if %581 {
      %c8_i32_245 = arith.constant 8 : i32
      %979 = arith.subi %c18_i32, %c8_i32_245 : i32
      %c8_i32_246 = arith.constant 8 : i32
      %980 = arith.muli %979, %c8_i32_246 : i32
      %981 = tpu.assume_multiple %980, 8 : i32
      %982 = arith.index_cast %981 : i32 to index
      %c0_247 = arith.constant 0 : index
      %983 = vector.load %arg10[%982, %c0_247] : memref<192x32xf32, #tpu.memory_space<vmem>>, vector<8x32xf32>
      tpu.vector_store %arg10[%982, %c0_247], %578 {strides = array<i32>} : memref<192x32xf32, #tpu.memory_space<vmem>>, vector<8x32xf32>,
    } else {
    }
    %c19_i32 = arith.constant 19 : i32
    %c8_i32_145 = arith.constant 8 : i32
    %582 = arith.muli %c19_i32, %c8_i32_145 : i32
    %583 = tpu.assume_multiple %582, 8 : i32
    %584 = arith.index_cast %583 : i32 to index
    %c0_146 = arith.constant 0 : index
    %585 = vector.load %arg9[%584, %c0_146] : memref<256x128xf32, #tpu.memory_space<vmem>>, vector<8x128xf32>
    %586 = arith.truncf %578 : vector<8x32xf32> to vector<8x32xbf16>
    %cst_147 = arith.constant dense<0.000000e+00> : vector<8x128xf32>
    %587 = tpu.matmul %586, %7, %cst_147 {dimension_numbers = #tpu.dot_dimension_numbers<[1], [0], [0], [1], [0, 0, 1, 1], [], []>} : vector<8x32xbf16>, vector<32x128xbf16>, vector<8x128xf32> -> vector<8x128xf32>
    %588 = vector.extract_strided_slice %585 {offsets = [0, 0], sizes = [8, 64], strides = [1, 1]} : vector<8x128xf32> to vector<8x64xf32>
    %589 = vector.extract_strided_slice %587 {offsets = [0, 0], sizes = [8, 64], strides = [1, 1]} : vector<8x128xf32> to vector<8x64xf32>
    %590 = arith.addf %588, %589 : vector<8x64xf32>
    %591 = arith.negf %590 : vector<8x64xf32>
    %592 = math.exp %591 : vector<8x64xf32>
    %cst_148 = arith.constant 1.000000e+00 : f32
    %593 = vector.broadcast %cst_148 : f32 to vector<8x64xf32>
    %594 = arith.addf %593, %592 : vector<8x64xf32>
    %595 = arith.divf %593, %594 : vector<8x64xf32>
    %596 = vector.extract_strided_slice %595 {offsets = [0, 0], sizes = [8, 32], strides = [1, 1]} : vector<8x64xf32> to vector<8x32xf32>
    %597 = vector.extract_strided_slice %595 {offsets = [0, 32], sizes = [8, 32], strides = [1, 1]} : vector<8x64xf32> to vector<8x32xf32>
    %598 = vector.extract_strided_slice %585 {offsets = [0, 64], sizes = [8, 32], strides = [1, 1]} : vector<8x128xf32> to vector<8x32xf32>
    %599 = vector.extract_strided_slice %587 {offsets = [0, 64], sizes = [8, 32], strides = [1, 1]} : vector<8x128xf32> to vector<8x32xf32>
    %600 = arith.addf %599, %10 : vector<8x32xf32>
    %601 = arith.mulf %596, %600 : vector<8x32xf32>
    %602 = arith.addf %598, %601 : vector<8x32xf32>
    %603 = math.tanh %602 : vector<8x32xf32>
    %cst_149 = arith.constant 1.000000e+00 : f32
    %604 = vector.broadcast %cst_149 : f32 to vector<8x32xf32>
    %605 = arith.subf %604, %597 : vector<8x32xf32>
    %606 = arith.mulf %605, %603 : vector<8x32xf32>
    %607 = arith.mulf %597, %578 : vector<8x32xf32>
    %608 = arith.addf %606, %607 : vector<8x32xf32>
    %c8_i32_150 = arith.constant 8 : i32
    %609 = arith.cmpi sge, %c19_i32, %c8_i32_150 : i32
    %610 = arith.extui %609 : i1 to i32
    %c0_i32_151 = arith.constant 0 : i32
    %611 = arith.cmpi ne, %610, %c0_i32_151 : i32
    scf.if %611 {
      %c8_i32_245 = arith.constant 8 : i32
      %979 = arith.subi %c19_i32, %c8_i32_245 : i32
      %c8_i32_246 = arith.constant 8 : i32
      %980 = arith.muli %979, %c8_i32_246 : i32
      %981 = tpu.assume_multiple %980, 8 : i32
      %982 = arith.index_cast %981 : i32 to index
      %c0_247 = arith.constant 0 : index
      %983 = vector.load %arg10[%982, %c0_247] : memref<192x32xf32, #tpu.memory_space<vmem>>, vector<8x32xf32>
      tpu.vector_store %arg10[%982, %c0_247], %608 {strides = array<i32>} : memref<192x32xf32, #tpu.memory_space<vmem>>, vector<8x32xf32>,
    } else {
    }
    %c20_i32 = arith.constant 20 : i32
    %c8_i32_152 = arith.constant 8 : i32
    %612 = arith.muli %c20_i32, %c8_i32_152 : i32
    %613 = tpu.assume_multiple %612, 8 : i32
    %614 = arith.index_cast %613 : i32 to index
    %c0_153 = arith.constant 0 : index
    %615 = vector.load %arg9[%614, %c0_153] : memref<256x128xf32, #tpu.memory_space<vmem>>, vector<8x128xf32>
    %616 = arith.truncf %608 : vector<8x32xf32> to vector<8x32xbf16>
    %cst_154 = arith.constant dense<0.000000e+00> : vector<8x128xf32>
    %617 = tpu.matmul %616, %7, %cst_154 {dimension_numbers = #tpu.dot_dimension_numbers<[1], [0], [0], [1], [0, 0, 1, 1], [], []>} : vector<8x32xbf16>, vector<32x128xbf16>, vector<8x128xf32> -> vector<8x128xf32>
    %618 = vector.extract_strided_slice %615 {offsets = [0, 0], sizes = [8, 64], strides = [1, 1]} : vector<8x128xf32> to vector<8x64xf32>
    %619 = vector.extract_strided_slice %617 {offsets = [0, 0], sizes = [8, 64], strides = [1, 1]} : vector<8x128xf32> to vector<8x64xf32>
    %620 = arith.addf %618, %619 : vector<8x64xf32>
    %621 = arith.negf %620 : vector<8x64xf32>
    %622 = math.exp %621 : vector<8x64xf32>
    %cst_155 = arith.constant 1.000000e+00 : f32
    %623 = vector.broadcast %cst_155 : f32 to vector<8x64xf32>
    %624 = arith.addf %623, %622 : vector<8x64xf32>
    %625 = arith.divf %623, %624 : vector<8x64xf32>
    %626 = vector.extract_strided_slice %625 {offsets = [0, 0], sizes = [8, 32], strides = [1, 1]} : vector<8x64xf32> to vector<8x32xf32>
    %627 = vector.extract_strided_slice %625 {offsets = [0, 32], sizes = [8, 32], strides = [1, 1]} : vector<8x64xf32> to vector<8x32xf32>
    %628 = vector.extract_strided_slice %615 {offsets = [0, 64], sizes = [8, 32], strides = [1, 1]} : vector<8x128xf32> to vector<8x32xf32>
    %629 = vector.extract_strided_slice %617 {offsets = [0, 64], sizes = [8, 32], strides = [1, 1]} : vector<8x128xf32> to vector<8x32xf32>
    %630 = arith.addf %629, %10 : vector<8x32xf32>
    %631 = arith.mulf %626, %630 : vector<8x32xf32>
    %632 = arith.addf %628, %631 : vector<8x32xf32>
    %633 = math.tanh %632 : vector<8x32xf32>
    %cst_156 = arith.constant 1.000000e+00 : f32
    %634 = vector.broadcast %cst_156 : f32 to vector<8x32xf32>
    %635 = arith.subf %634, %627 : vector<8x32xf32>
    %636 = arith.mulf %635, %633 : vector<8x32xf32>
    %637 = arith.mulf %627, %608 : vector<8x32xf32>
    %638 = arith.addf %636, %637 : vector<8x32xf32>
    %c8_i32_157 = arith.constant 8 : i32
    %639 = arith.cmpi sge, %c20_i32, %c8_i32_157 : i32
    %640 = arith.extui %639 : i1 to i32
    %c0_i32_158 = arith.constant 0 : i32
    %641 = arith.cmpi ne, %640, %c0_i32_158 : i32
    scf.if %641 {
      %c8_i32_245 = arith.constant 8 : i32
      %979 = arith.subi %c20_i32, %c8_i32_245 : i32
      %c8_i32_246 = arith.constant 8 : i32
      %980 = arith.muli %979, %c8_i32_246 : i32
      %981 = tpu.assume_multiple %980, 8 : i32
      %982 = arith.index_cast %981 : i32 to index
      %c0_247 = arith.constant 0 : index
      %983 = vector.load %arg10[%982, %c0_247] : memref<192x32xf32, #tpu.memory_space<vmem>>, vector<8x32xf32>
      tpu.vector_store %arg10[%982, %c0_247], %638 {strides = array<i32>} : memref<192x32xf32, #tpu.memory_space<vmem>>, vector<8x32xf32>,
    } else {
    }
    %c21_i32 = arith.constant 21 : i32
    %c8_i32_159 = arith.constant 8 : i32
    %642 = arith.muli %c21_i32, %c8_i32_159 : i32
    %643 = tpu.assume_multiple %642, 8 : i32
    %644 = arith.index_cast %643 : i32 to index
    %c0_160 = arith.constant 0 : index
    %645 = vector.load %arg9[%644, %c0_160] : memref<256x128xf32, #tpu.memory_space<vmem>>, vector<8x128xf32>
    %646 = arith.truncf %638 : vector<8x32xf32> to vector<8x32xbf16>
    %cst_161 = arith.constant dense<0.000000e+00> : vector<8x128xf32>
    %647 = tpu.matmul %646, %7, %cst_161 {dimension_numbers = #tpu.dot_dimension_numbers<[1], [0], [0], [1], [0, 0, 1, 1], [], []>} : vector<8x32xbf16>, vector<32x128xbf16>, vector<8x128xf32> -> vector<8x128xf32>
    %648 = vector.extract_strided_slice %645 {offsets = [0, 0], sizes = [8, 64], strides = [1, 1]} : vector<8x128xf32> to vector<8x64xf32>
    %649 = vector.extract_strided_slice %647 {offsets = [0, 0], sizes = [8, 64], strides = [1, 1]} : vector<8x128xf32> to vector<8x64xf32>
    %650 = arith.addf %648, %649 : vector<8x64xf32>
    %651 = arith.negf %650 : vector<8x64xf32>
    %652 = math.exp %651 : vector<8x64xf32>
    %cst_162 = arith.constant 1.000000e+00 : f32
    %653 = vector.broadcast %cst_162 : f32 to vector<8x64xf32>
    %654 = arith.addf %653, %652 : vector<8x64xf32>
    %655 = arith.divf %653, %654 : vector<8x64xf32>
    %656 = vector.extract_strided_slice %655 {offsets = [0, 0], sizes = [8, 32], strides = [1, 1]} : vector<8x64xf32> to vector<8x32xf32>
    %657 = vector.extract_strided_slice %655 {offsets = [0, 32], sizes = [8, 32], strides = [1, 1]} : vector<8x64xf32> to vector<8x32xf32>
    %658 = vector.extract_strided_slice %645 {offsets = [0, 64], sizes = [8, 32], strides = [1, 1]} : vector<8x128xf32> to vector<8x32xf32>
    %659 = vector.extract_strided_slice %647 {offsets = [0, 64], sizes = [8, 32], strides = [1, 1]} : vector<8x128xf32> to vector<8x32xf32>
    %660 = arith.addf %659, %10 : vector<8x32xf32>
    %661 = arith.mulf %656, %660 : vector<8x32xf32>
    %662 = arith.addf %658, %661 : vector<8x32xf32>
    %663 = math.tanh %662 : vector<8x32xf32>
    %cst_163 = arith.constant 1.000000e+00 : f32
    %664 = vector.broadcast %cst_163 : f32 to vector<8x32xf32>
    %665 = arith.subf %664, %657 : vector<8x32xf32>
    %666 = arith.mulf %665, %663 : vector<8x32xf32>
    %667 = arith.mulf %657, %638 : vector<8x32xf32>
    %668 = arith.addf %666, %667 : vector<8x32xf32>
    %c8_i32_164 = arith.constant 8 : i32
    %669 = arith.cmpi sge, %c21_i32, %c8_i32_164 : i32
    %670 = arith.extui %669 : i1 to i32
    %c0_i32_165 = arith.constant 0 : i32
    %671 = arith.cmpi ne, %670, %c0_i32_165 : i32
    scf.if %671 {
      %c8_i32_245 = arith.constant 8 : i32
      %979 = arith.subi %c21_i32, %c8_i32_245 : i32
      %c8_i32_246 = arith.constant 8 : i32
      %980 = arith.muli %979, %c8_i32_246 : i32
      %981 = tpu.assume_multiple %980, 8 : i32
      %982 = arith.index_cast %981 : i32 to index
      %c0_247 = arith.constant 0 : index
      %983 = vector.load %arg10[%982, %c0_247] : memref<192x32xf32, #tpu.memory_space<vmem>>, vector<8x32xf32>
      tpu.vector_store %arg10[%982, %c0_247], %668 {strides = array<i32>} : memref<192x32xf32, #tpu.memory_space<vmem>>, vector<8x32xf32>,
    } else {
    }
    %c22_i32 = arith.constant 22 : i32
    %c8_i32_166 = arith.constant 8 : i32
    %672 = arith.muli %c22_i32, %c8_i32_166 : i32
    %673 = tpu.assume_multiple %672, 8 : i32
    %674 = arith.index_cast %673 : i32 to index
    %c0_167 = arith.constant 0 : index
    %675 = vector.load %arg9[%674, %c0_167] : memref<256x128xf32, #tpu.memory_space<vmem>>, vector<8x128xf32>
    %676 = arith.truncf %668 : vector<8x32xf32> to vector<8x32xbf16>
    %cst_168 = arith.constant dense<0.000000e+00> : vector<8x128xf32>
    %677 = tpu.matmul %676, %7, %cst_168 {dimension_numbers = #tpu.dot_dimension_numbers<[1], [0], [0], [1], [0, 0, 1, 1], [], []>} : vector<8x32xbf16>, vector<32x128xbf16>, vector<8x128xf32> -> vector<8x128xf32>
    %678 = vector.extract_strided_slice %675 {offsets = [0, 0], sizes = [8, 64], strides = [1, 1]} : vector<8x128xf32> to vector<8x64xf32>
    %679 = vector.extract_strided_slice %677 {offsets = [0, 0], sizes = [8, 64], strides = [1, 1]} : vector<8x128xf32> to vector<8x64xf32>
    %680 = arith.addf %678, %679 : vector<8x64xf32>
    %681 = arith.negf %680 : vector<8x64xf32>
    %682 = math.exp %681 : vector<8x64xf32>
    %cst_169 = arith.constant 1.000000e+00 : f32
    %683 = vector.broadcast %cst_169 : f32 to vector<8x64xf32>
    %684 = arith.addf %683, %682 : vector<8x64xf32>
    %685 = arith.divf %683, %684 : vector<8x64xf32>
    %686 = vector.extract_strided_slice %685 {offsets = [0, 0], sizes = [8, 32], strides = [1, 1]} : vector<8x64xf32> to vector<8x32xf32>
    %687 = vector.extract_strided_slice %685 {offsets = [0, 32], sizes = [8, 32], strides = [1, 1]} : vector<8x64xf32> to vector<8x32xf32>
    %688 = vector.extract_strided_slice %675 {offsets = [0, 64], sizes = [8, 32], strides = [1, 1]} : vector<8x128xf32> to vector<8x32xf32>
    %689 = vector.extract_strided_slice %677 {offsets = [0, 64], sizes = [8, 32], strides = [1, 1]} : vector<8x128xf32> to vector<8x32xf32>
    %690 = arith.addf %689, %10 : vector<8x32xf32>
    %691 = arith.mulf %686, %690 : vector<8x32xf32>
    %692 = arith.addf %688, %691 : vector<8x32xf32>
    %693 = math.tanh %692 : vector<8x32xf32>
    %cst_170 = arith.constant 1.000000e+00 : f32
    %694 = vector.broadcast %cst_170 : f32 to vector<8x32xf32>
    %695 = arith.subf %694, %687 : vector<8x32xf32>
    %696 = arith.mulf %695, %693 : vector<8x32xf32>
    %697 = arith.mulf %687, %668 : vector<8x32xf32>
    %698 = arith.addf %696, %697 : vector<8x32xf32>
    %c8_i32_171 = arith.constant 8 : i32
    %699 = arith.cmpi sge, %c22_i32, %c8_i32_171 : i32
    %700 = arith.extui %699 : i1 to i32
    %c0_i32_172 = arith.constant 0 : i32
    %701 = arith.cmpi ne, %700, %c0_i32_172 : i32
    scf.if %701 {
      %c8_i32_245 = arith.constant 8 : i32
      %979 = arith.subi %c22_i32, %c8_i32_245 : i32
      %c8_i32_246 = arith.constant 8 : i32
      %980 = arith.muli %979, %c8_i32_246 : i32
      %981 = tpu.assume_multiple %980, 8 : i32
      %982 = arith.index_cast %981 : i32 to index
      %c0_247 = arith.constant 0 : index
      %983 = vector.load %arg10[%982, %c0_247] : memref<192x32xf32, #tpu.memory_space<vmem>>, vector<8x32xf32>
      tpu.vector_store %arg10[%982, %c0_247], %698 {strides = array<i32>} : memref<192x32xf32, #tpu.memory_space<vmem>>, vector<8x32xf32>,
    } else {
    }
    %c23_i32 = arith.constant 23 : i32
    %c8_i32_173 = arith.constant 8 : i32
    %702 = arith.muli %c23_i32, %c8_i32_173 : i32
    %703 = tpu.assume_multiple %702, 8 : i32
    %704 = arith.index_cast %703 : i32 to index
    %c0_174 = arith.constant 0 : index
    %705 = vector.load %arg9[%704, %c0_174] : memref<256x128xf32, #tpu.memory_space<vmem>>, vector<8x128xf32>
    %706 = arith.truncf %698 : vector<8x32xf32> to vector<8x32xbf16>
    %cst_175 = arith.constant dense<0.000000e+00> : vector<8x128xf32>
    %707 = tpu.matmul %706, %7, %cst_175 {dimension_numbers = #tpu.dot_dimension_numbers<[1], [0], [0], [1], [0, 0, 1, 1], [], []>} : vector<8x32xbf16>, vector<32x128xbf16>, vector<8x128xf32> -> vector<8x128xf32>
    %708 = vector.extract_strided_slice %705 {offsets = [0, 0], sizes = [8, 64], strides = [1, 1]} : vector<8x128xf32> to vector<8x64xf32>
    %709 = vector.extract_strided_slice %707 {offsets = [0, 0], sizes = [8, 64], strides = [1, 1]} : vector<8x128xf32> to vector<8x64xf32>
    %710 = arith.addf %708, %709 : vector<8x64xf32>
    %711 = arith.negf %710 : vector<8x64xf32>
    %712 = math.exp %711 : vector<8x64xf32>
    %cst_176 = arith.constant 1.000000e+00 : f32
    %713 = vector.broadcast %cst_176 : f32 to vector<8x64xf32>
    %714 = arith.addf %713, %712 : vector<8x64xf32>
    %715 = arith.divf %713, %714 : vector<8x64xf32>
    %716 = vector.extract_strided_slice %715 {offsets = [0, 0], sizes = [8, 32], strides = [1, 1]} : vector<8x64xf32> to vector<8x32xf32>
    %717 = vector.extract_strided_slice %715 {offsets = [0, 32], sizes = [8, 32], strides = [1, 1]} : vector<8x64xf32> to vector<8x32xf32>
    %718 = vector.extract_strided_slice %705 {offsets = [0, 64], sizes = [8, 32], strides = [1, 1]} : vector<8x128xf32> to vector<8x32xf32>
    %719 = vector.extract_strided_slice %707 {offsets = [0, 64], sizes = [8, 32], strides = [1, 1]} : vector<8x128xf32> to vector<8x32xf32>
    %720 = arith.addf %719, %10 : vector<8x32xf32>
    %721 = arith.mulf %716, %720 : vector<8x32xf32>
    %722 = arith.addf %718, %721 : vector<8x32xf32>
    %723 = math.tanh %722 : vector<8x32xf32>
    %cst_177 = arith.constant 1.000000e+00 : f32
    %724 = vector.broadcast %cst_177 : f32 to vector<8x32xf32>
    %725 = arith.subf %724, %717 : vector<8x32xf32>
    %726 = arith.mulf %725, %723 : vector<8x32xf32>
    %727 = arith.mulf %717, %698 : vector<8x32xf32>
    %728 = arith.addf %726, %727 : vector<8x32xf32>
    %c8_i32_178 = arith.constant 8 : i32
    %729 = arith.cmpi sge, %c23_i32, %c8_i32_178 : i32
    %730 = arith.extui %729 : i1 to i32
    %c0_i32_179 = arith.constant 0 : i32
    %731 = arith.cmpi ne, %730, %c0_i32_179 : i32
    scf.if %731 {
      %c8_i32_245 = arith.constant 8 : i32
      %979 = arith.subi %c23_i32, %c8_i32_245 : i32
      %c8_i32_246 = arith.constant 8 : i32
      %980 = arith.muli %979, %c8_i32_246 : i32
      %981 = tpu.assume_multiple %980, 8 : i32
      %982 = arith.index_cast %981 : i32 to index
      %c0_247 = arith.constant 0 : index
      %983 = vector.load %arg10[%982, %c0_247] : memref<192x32xf32, #tpu.memory_space<vmem>>, vector<8x32xf32>
      tpu.vector_store %arg10[%982, %c0_247], %728 {strides = array<i32>} : memref<192x32xf32, #tpu.memory_space<vmem>>, vector<8x32xf32>,
    } else {
    }
    %c24_i32 = arith.constant 24 : i32
    %c8_i32_180 = arith.constant 8 : i32
    %732 = arith.muli %c24_i32, %c8_i32_180 : i32
    %733 = tpu.assume_multiple %732, 8 : i32
    %734 = arith.index_cast %733 : i32 to index
    %c0_181 = arith.constant 0 : index
    %735 = vector.load %arg9[%734, %c0_181] : memref<256x128xf32, #tpu.memory_space<vmem>>, vector<8x128xf32>
    %736 = arith.truncf %728 : vector<8x32xf32> to vector<8x32xbf16>
    %cst_182 = arith.constant dense<0.000000e+00> : vector<8x128xf32>
    %737 = tpu.matmul %736, %7, %cst_182 {dimension_numbers = #tpu.dot_dimension_numbers<[1], [0], [0], [1], [0, 0, 1, 1], [], []>} : vector<8x32xbf16>, vector<32x128xbf16>, vector<8x128xf32> -> vector<8x128xf32>
    %738 = vector.extract_strided_slice %735 {offsets = [0, 0], sizes = [8, 64], strides = [1, 1]} : vector<8x128xf32> to vector<8x64xf32>
    %739 = vector.extract_strided_slice %737 {offsets = [0, 0], sizes = [8, 64], strides = [1, 1]} : vector<8x128xf32> to vector<8x64xf32>
    %740 = arith.addf %738, %739 : vector<8x64xf32>
    %741 = arith.negf %740 : vector<8x64xf32>
    %742 = math.exp %741 : vector<8x64xf32>
    %cst_183 = arith.constant 1.000000e+00 : f32
    %743 = vector.broadcast %cst_183 : f32 to vector<8x64xf32>
    %744 = arith.addf %743, %742 : vector<8x64xf32>
    %745 = arith.divf %743, %744 : vector<8x64xf32>
    %746 = vector.extract_strided_slice %745 {offsets = [0, 0], sizes = [8, 32], strides = [1, 1]} : vector<8x64xf32> to vector<8x32xf32>
    %747 = vector.extract_strided_slice %745 {offsets = [0, 32], sizes = [8, 32], strides = [1, 1]} : vector<8x64xf32> to vector<8x32xf32>
    %748 = vector.extract_strided_slice %735 {offsets = [0, 64], sizes = [8, 32], strides = [1, 1]} : vector<8x128xf32> to vector<8x32xf32>
    %749 = vector.extract_strided_slice %737 {offsets = [0, 64], sizes = [8, 32], strides = [1, 1]} : vector<8x128xf32> to vector<8x32xf32>
    %750 = arith.addf %749, %10 : vector<8x32xf32>
    %751 = arith.mulf %746, %750 : vector<8x32xf32>
    %752 = arith.addf %748, %751 : vector<8x32xf32>
    %753 = math.tanh %752 : vector<8x32xf32>
    %cst_184 = arith.constant 1.000000e+00 : f32
    %754 = vector.broadcast %cst_184 : f32 to vector<8x32xf32>
    %755 = arith.subf %754, %747 : vector<8x32xf32>
    %756 = arith.mulf %755, %753 : vector<8x32xf32>
    %757 = arith.mulf %747, %728 : vector<8x32xf32>
    %758 = arith.addf %756, %757 : vector<8x32xf32>
    %c8_i32_185 = arith.constant 8 : i32
    %759 = arith.cmpi sge, %c24_i32, %c8_i32_185 : i32
    %760 = arith.extui %759 : i1 to i32
    %c0_i32_186 = arith.constant 0 : i32
    %761 = arith.cmpi ne, %760, %c0_i32_186 : i32
    scf.if %761 {
      %c8_i32_245 = arith.constant 8 : i32
      %979 = arith.subi %c24_i32, %c8_i32_245 : i32
      %c8_i32_246 = arith.constant 8 : i32
      %980 = arith.muli %979, %c8_i32_246 : i32
      %981 = tpu.assume_multiple %980, 8 : i32
      %982 = arith.index_cast %981 : i32 to index
      %c0_247 = arith.constant 0 : index
      %983 = vector.load %arg10[%982, %c0_247] : memref<192x32xf32, #tpu.memory_space<vmem>>, vector<8x32xf32>
      tpu.vector_store %arg10[%982, %c0_247], %758 {strides = array<i32>} : memref<192x32xf32, #tpu.memory_space<vmem>>, vector<8x32xf32>,
    } else {
    }
    %c25_i32 = arith.constant 25 : i32
    %c8_i32_187 = arith.constant 8 : i32
    %762 = arith.muli %c25_i32, %c8_i32_187 : i32
    %763 = tpu.assume_multiple %762, 8 : i32
    %764 = arith.index_cast %763 : i32 to index
    %c0_188 = arith.constant 0 : index
    %765 = vector.load %arg9[%764, %c0_188] : memref<256x128xf32, #tpu.memory_space<vmem>>, vector<8x128xf32>
    %766 = arith.truncf %758 : vector<8x32xf32> to vector<8x32xbf16>
    %cst_189 = arith.constant dense<0.000000e+00> : vector<8x128xf32>
    %767 = tpu.matmul %766, %7, %cst_189 {dimension_numbers = #tpu.dot_dimension_numbers<[1], [0], [0], [1], [0, 0, 1, 1], [], []>} : vector<8x32xbf16>, vector<32x128xbf16>, vector<8x128xf32> -> vector<8x128xf32>
    %768 = vector.extract_strided_slice %765 {offsets = [0, 0], sizes = [8, 64], strides = [1, 1]} : vector<8x128xf32> to vector<8x64xf32>
    %769 = vector.extract_strided_slice %767 {offsets = [0, 0], sizes = [8, 64], strides = [1, 1]} : vector<8x128xf32> to vector<8x64xf32>
    %770 = arith.addf %768, %769 : vector<8x64xf32>
    %771 = arith.negf %770 : vector<8x64xf32>
    %772 = math.exp %771 : vector<8x64xf32>
    %cst_190 = arith.constant 1.000000e+00 : f32
    %773 = vector.broadcast %cst_190 : f32 to vector<8x64xf32>
    %774 = arith.addf %773, %772 : vector<8x64xf32>
    %775 = arith.divf %773, %774 : vector<8x64xf32>
    %776 = vector.extract_strided_slice %775 {offsets = [0, 0], sizes = [8, 32], strides = [1, 1]} : vector<8x64xf32> to vector<8x32xf32>
    %777 = vector.extract_strided_slice %775 {offsets = [0, 32], sizes = [8, 32], strides = [1, 1]} : vector<8x64xf32> to vector<8x32xf32>
    %778 = vector.extract_strided_slice %765 {offsets = [0, 64], sizes = [8, 32], strides = [1, 1]} : vector<8x128xf32> to vector<8x32xf32>
    %779 = vector.extract_strided_slice %767 {offsets = [0, 64], sizes = [8, 32], strides = [1, 1]} : vector<8x128xf32> to vector<8x32xf32>
    %780 = arith.addf %779, %10 : vector<8x32xf32>
    %781 = arith.mulf %776, %780 : vector<8x32xf32>
    %782 = arith.addf %778, %781 : vector<8x32xf32>
    %783 = math.tanh %782 : vector<8x32xf32>
    %cst_191 = arith.constant 1.000000e+00 : f32
    %784 = vector.broadcast %cst_191 : f32 to vector<8x32xf32>
    %785 = arith.subf %784, %777 : vector<8x32xf32>
    %786 = arith.mulf %785, %783 : vector<8x32xf32>
    %787 = arith.mulf %777, %758 : vector<8x32xf32>
    %788 = arith.addf %786, %787 : vector<8x32xf32>
    %c8_i32_192 = arith.constant 8 : i32
    %789 = arith.cmpi sge, %c25_i32, %c8_i32_192 : i32
    %790 = arith.extui %789 : i1 to i32
    %c0_i32_193 = arith.constant 0 : i32
    %791 = arith.cmpi ne, %790, %c0_i32_193 : i32
    scf.if %791 {
      %c8_i32_245 = arith.constant 8 : i32
      %979 = arith.subi %c25_i32, %c8_i32_245 : i32
      %c8_i32_246 = arith.constant 8 : i32
      %980 = arith.muli %979, %c8_i32_246 : i32
      %981 = tpu.assume_multiple %980, 8 : i32
      %982 = arith.index_cast %981 : i32 to index
      %c0_247 = arith.constant 0 : index
      %983 = vector.load %arg10[%982, %c0_247] : memref<192x32xf32, #tpu.memory_space<vmem>>, vector<8x32xf32>
      tpu.vector_store %arg10[%982, %c0_247], %788 {strides = array<i32>} : memref<192x32xf32, #tpu.memory_space<vmem>>, vector<8x32xf32>,
    } else {
    }
    %c26_i32 = arith.constant 26 : i32
    %c8_i32_194 = arith.constant 8 : i32
    %792 = arith.muli %c26_i32, %c8_i32_194 : i32
    %793 = tpu.assume_multiple %792, 8 : i32
    %794 = arith.index_cast %793 : i32 to index
    %c0_195 = arith.constant 0 : index
    %795 = vector.load %arg9[%794, %c0_195] : memref<256x128xf32, #tpu.memory_space<vmem>>, vector<8x128xf32>
    %796 = arith.truncf %788 : vector<8x32xf32> to vector<8x32xbf16>
    %cst_196 = arith.constant dense<0.000000e+00> : vector<8x128xf32>
    %797 = tpu.matmul %796, %7, %cst_196 {dimension_numbers = #tpu.dot_dimension_numbers<[1], [0], [0], [1], [0, 0, 1, 1], [], []>} : vector<8x32xbf16>, vector<32x128xbf16>, vector<8x128xf32> -> vector<8x128xf32>
    %798 = vector.extract_strided_slice %795 {offsets = [0, 0], sizes = [8, 64], strides = [1, 1]} : vector<8x128xf32> to vector<8x64xf32>
    %799 = vector.extract_strided_slice %797 {offsets = [0, 0], sizes = [8, 64], strides = [1, 1]} : vector<8x128xf32> to vector<8x64xf32>
    %800 = arith.addf %798, %799 : vector<8x64xf32>
    %801 = arith.negf %800 : vector<8x64xf32>
    %802 = math.exp %801 : vector<8x64xf32>
    %cst_197 = arith.constant 1.000000e+00 : f32
    %803 = vector.broadcast %cst_197 : f32 to vector<8x64xf32>
    %804 = arith.addf %803, %802 : vector<8x64xf32>
    %805 = arith.divf %803, %804 : vector<8x64xf32>
    %806 = vector.extract_strided_slice %805 {offsets = [0, 0], sizes = [8, 32], strides = [1, 1]} : vector<8x64xf32> to vector<8x32xf32>
    %807 = vector.extract_strided_slice %805 {offsets = [0, 32], sizes = [8, 32], strides = [1, 1]} : vector<8x64xf32> to vector<8x32xf32>
    %808 = vector.extract_strided_slice %795 {offsets = [0, 64], sizes = [8, 32], strides = [1, 1]} : vector<8x128xf32> to vector<8x32xf32>
    %809 = vector.extract_strided_slice %797 {offsets = [0, 64], sizes = [8, 32], strides = [1, 1]} : vector<8x128xf32> to vector<8x32xf32>
    %810 = arith.addf %809, %10 : vector<8x32xf32>
    %811 = arith.mulf %806, %810 : vector<8x32xf32>
    %812 = arith.addf %808, %811 : vector<8x32xf32>
    %813 = math.tanh %812 : vector<8x32xf32>
    %cst_198 = arith.constant 1.000000e+00 : f32
    %814 = vector.broadcast %cst_198 : f32 to vector<8x32xf32>
    %815 = arith.subf %814, %807 : vector<8x32xf32>
    %816 = arith.mulf %815, %813 : vector<8x32xf32>
    %817 = arith.mulf %807, %788 : vector<8x32xf32>
    %818 = arith.addf %816, %817 : vector<8x32xf32>
    %c8_i32_199 = arith.constant 8 : i32
    %819 = arith.cmpi sge, %c26_i32, %c8_i32_199 : i32
    %820 = arith.extui %819 : i1 to i32
    %c0_i32_200 = arith.constant 0 : i32
    %821 = arith.cmpi ne, %820, %c0_i32_200 : i32
    scf.if %821 {
      %c8_i32_245 = arith.constant 8 : i32
      %979 = arith.subi %c26_i32, %c8_i32_245 : i32
      %c8_i32_246 = arith.constant 8 : i32
      %980 = arith.muli %979, %c8_i32_246 : i32
      %981 = tpu.assume_multiple %980, 8 : i32
      %982 = arith.index_cast %981 : i32 to index
      %c0_247 = arith.constant 0 : index
      %983 = vector.load %arg10[%982, %c0_247] : memref<192x32xf32, #tpu.memory_space<vmem>>, vector<8x32xf32>
      tpu.vector_store %arg10[%982, %c0_247], %818 {strides = array<i32>} : memref<192x32xf32, #tpu.memory_space<vmem>>, vector<8x32xf32>,
    } else {
    }
    %c27_i32 = arith.constant 27 : i32
    %c8_i32_201 = arith.constant 8 : i32
    %822 = arith.muli %c27_i32, %c8_i32_201 : i32
    %823 = tpu.assume_multiple %822, 8 : i32
    %824 = arith.index_cast %823 : i32 to index
    %c0_202 = arith.constant 0 : index
    %825 = vector.load %arg9[%824, %c0_202] : memref<256x128xf32, #tpu.memory_space<vmem>>, vector<8x128xf32>
    %826 = arith.truncf %818 : vector<8x32xf32> to vector<8x32xbf16>
    %cst_203 = arith.constant dense<0.000000e+00> : vector<8x128xf32>
    %827 = tpu.matmul %826, %7, %cst_203 {dimension_numbers = #tpu.dot_dimension_numbers<[1], [0], [0], [1], [0, 0, 1, 1], [], []>} : vector<8x32xbf16>, vector<32x128xbf16>, vector<8x128xf32> -> vector<8x128xf32>
    %828 = vector.extract_strided_slice %825 {offsets = [0, 0], sizes = [8, 64], strides = [1, 1]} : vector<8x128xf32> to vector<8x64xf32>
    %829 = vector.extract_strided_slice %827 {offsets = [0, 0], sizes = [8, 64], strides = [1, 1]} : vector<8x128xf32> to vector<8x64xf32>
    %830 = arith.addf %828, %829 : vector<8x64xf32>
    %831 = arith.negf %830 : vector<8x64xf32>
    %832 = math.exp %831 : vector<8x64xf32>
    %cst_204 = arith.constant 1.000000e+00 : f32
    %833 = vector.broadcast %cst_204 : f32 to vector<8x64xf32>
    %834 = arith.addf %833, %832 : vector<8x64xf32>
    %835 = arith.divf %833, %834 : vector<8x64xf32>
    %836 = vector.extract_strided_slice %835 {offsets = [0, 0], sizes = [8, 32], strides = [1, 1]} : vector<8x64xf32> to vector<8x32xf32>
    %837 = vector.extract_strided_slice %835 {offsets = [0, 32], sizes = [8, 32], strides = [1, 1]} : vector<8x64xf32> to vector<8x32xf32>
    %838 = vector.extract_strided_slice %825 {offsets = [0, 64], sizes = [8, 32], strides = [1, 1]} : vector<8x128xf32> to vector<8x32xf32>
    %839 = vector.extract_strided_slice %827 {offsets = [0, 64], sizes = [8, 32], strides = [1, 1]} : vector<8x128xf32> to vector<8x32xf32>
    %840 = arith.addf %839, %10 : vector<8x32xf32>
    %841 = arith.mulf %836, %840 : vector<8x32xf32>
    %842 = arith.addf %838, %841 : vector<8x32xf32>
    %843 = math.tanh %842 : vector<8x32xf32>
    %cst_205 = arith.constant 1.000000e+00 : f32
    %844 = vector.broadcast %cst_205 : f32 to vector<8x32xf32>
    %845 = arith.subf %844, %837 : vector<8x32xf32>
    %846 = arith.mulf %845, %843 : vector<8x32xf32>
    %847 = arith.mulf %837, %818 : vector<8x32xf32>
    %848 = arith.addf %846, %847 : vector<8x32xf32>
    %c8_i32_206 = arith.constant 8 : i32
    %849 = arith.cmpi sge, %c27_i32, %c8_i32_206 : i32
    %850 = arith.extui %849 : i1 to i32
    %c0_i32_207 = arith.constant 0 : i32
    %851 = arith.cmpi ne, %850, %c0_i32_207 : i32
    scf.if %851 {
      %c8_i32_245 = arith.constant 8 : i32
      %979 = arith.subi %c27_i32, %c8_i32_245 : i32
      %c8_i32_246 = arith.constant 8 : i32
      %980 = arith.muli %979, %c8_i32_246 : i32
      %981 = tpu.assume_multiple %980, 8 : i32
      %982 = arith.index_cast %981 : i32 to index
      %c0_247 = arith.constant 0 : index
      %983 = vector.load %arg10[%982, %c0_247] : memref<192x32xf32, #tpu.memory_space<vmem>>, vector<8x32xf32>
      tpu.vector_store %arg10[%982, %c0_247], %848 {strides = array<i32>} : memref<192x32xf32, #tpu.memory_space<vmem>>, vector<8x32xf32>,
    } else {
    }
    %c28_i32 = arith.constant 28 : i32
    %c8_i32_208 = arith.constant 8 : i32
    %852 = arith.muli %c28_i32, %c8_i32_208 : i32
    %853 = tpu.assume_multiple %852, 8 : i32
    %854 = arith.index_cast %853 : i32 to index
    %c0_209 = arith.constant 0 : index
    %855 = vector.load %arg9[%854, %c0_209] : memref<256x128xf32, #tpu.memory_space<vmem>>, vector<8x128xf32>
    %856 = arith.truncf %848 : vector<8x32xf32> to vector<8x32xbf16>
    %cst_210 = arith.constant dense<0.000000e+00> : vector<8x128xf32>
    %857 = tpu.matmul %856, %7, %cst_210 {dimension_numbers = #tpu.dot_dimension_numbers<[1], [0], [0], [1], [0, 0, 1, 1], [], []>} : vector<8x32xbf16>, vector<32x128xbf16>, vector<8x128xf32> -> vector<8x128xf32>
    %858 = vector.extract_strided_slice %855 {offsets = [0, 0], sizes = [8, 64], strides = [1, 1]} : vector<8x128xf32> to vector<8x64xf32>
    %859 = vector.extract_strided_slice %857 {offsets = [0, 0], sizes = [8, 64], strides = [1, 1]} : vector<8x128xf32> to vector<8x64xf32>
    %860 = arith.addf %858, %859 : vector<8x64xf32>
    %861 = arith.negf %860 : vector<8x64xf32>
    %862 = math.exp %861 : vector<8x64xf32>
    %cst_211 = arith.constant 1.000000e+00 : f32
    %863 = vector.broadcast %cst_211 : f32 to vector<8x64xf32>
    %864 = arith.addf %863, %862 : vector<8x64xf32>
    %865 = arith.divf %863, %864 : vector<8x64xf32>
    %866 = vector.extract_strided_slice %865 {offsets = [0, 0], sizes = [8, 32], strides = [1, 1]} : vector<8x64xf32> to vector<8x32xf32>
    %867 = vector.extract_strided_slice %865 {offsets = [0, 32], sizes = [8, 32], strides = [1, 1]} : vector<8x64xf32> to vector<8x32xf32>
    %868 = vector.extract_strided_slice %855 {offsets = [0, 64], sizes = [8, 32], strides = [1, 1]} : vector<8x128xf32> to vector<8x32xf32>
    %869 = vector.extract_strided_slice %857 {offsets = [0, 64], sizes = [8, 32], strides = [1, 1]} : vector<8x128xf32> to vector<8x32xf32>
    %870 = arith.addf %869, %10 : vector<8x32xf32>
    %871 = arith.mulf %866, %870 : vector<8x32xf32>
    %872 = arith.addf %868, %871 : vector<8x32xf32>
    %873 = math.tanh %872 : vector<8x32xf32>
    %cst_212 = arith.constant 1.000000e+00 : f32
    %874 = vector.broadcast %cst_212 : f32 to vector<8x32xf32>
    %875 = arith.subf %874, %867 : vector<8x32xf32>
    %876 = arith.mulf %875, %873 : vector<8x32xf32>
    %877 = arith.mulf %867, %848 : vector<8x32xf32>
    %878 = arith.addf %876, %877 : vector<8x32xf32>
    %c8_i32_213 = arith.constant 8 : i32
    %879 = arith.cmpi sge, %c28_i32, %c8_i32_213 : i32
    %880 = arith.extui %879 : i1 to i32
    %c0_i32_214 = arith.constant 0 : i32
    %881 = arith.cmpi ne, %880, %c0_i32_214 : i32
    scf.if %881 {
      %c8_i32_245 = arith.constant 8 : i32
      %979 = arith.subi %c28_i32, %c8_i32_245 : i32
      %c8_i32_246 = arith.constant 8 : i32
      %980 = arith.muli %979, %c8_i32_246 : i32
      %981 = tpu.assume_multiple %980, 8 : i32
      %982 = arith.index_cast %981 : i32 to index
      %c0_247 = arith.constant 0 : index
      %983 = vector.load %arg10[%982, %c0_247] : memref<192x32xf32, #tpu.memory_space<vmem>>, vector<8x32xf32>
      tpu.vector_store %arg10[%982, %c0_247], %878 {strides = array<i32>} : memref<192x32xf32, #tpu.memory_space<vmem>>, vector<8x32xf32>,
    } else {
    }
    %c29_i32 = arith.constant 29 : i32
    %c8_i32_215 = arith.constant 8 : i32
    %882 = arith.muli %c29_i32, %c8_i32_215 : i32
    %883 = tpu.assume_multiple %882, 8 : i32
    %884 = arith.index_cast %883 : i32 to index
    %c0_216 = arith.constant 0 : index
    %885 = vector.load %arg9[%884, %c0_216] : memref<256x128xf32, #tpu.memory_space<vmem>>, vector<8x128xf32>
    %886 = arith.truncf %878 : vector<8x32xf32> to vector<8x32xbf16>
    %cst_217 = arith.constant dense<0.000000e+00> : vector<8x128xf32>
    %887 = tpu.matmul %886, %7, %cst_217 {dimension_numbers = #tpu.dot_dimension_numbers<[1], [0], [0], [1], [0, 0, 1, 1], [], []>} : vector<8x32xbf16>, vector<32x128xbf16>, vector<8x128xf32> -> vector<8x128xf32>
    %888 = vector.extract_strided_slice %885 {offsets = [0, 0], sizes = [8, 64], strides = [1, 1]} : vector<8x128xf32> to vector<8x64xf32>
    %889 = vector.extract_strided_slice %887 {offsets = [0, 0], sizes = [8, 64], strides = [1, 1]} : vector<8x128xf32> to vector<8x64xf32>
    %890 = arith.addf %888, %889 : vector<8x64xf32>
    %891 = arith.negf %890 : vector<8x64xf32>
    %892 = math.exp %891 : vector<8x64xf32>
    %cst_218 = arith.constant 1.000000e+00 : f32
    %893 = vector.broadcast %cst_218 : f32 to vector<8x64xf32>
    %894 = arith.addf %893, %892 : vector<8x64xf32>
    %895 = arith.divf %893, %894 : vector<8x64xf32>
    %896 = vector.extract_strided_slice %895 {offsets = [0, 0], sizes = [8, 32], strides = [1, 1]} : vector<8x64xf32> to vector<8x32xf32>
    %897 = vector.extract_strided_slice %895 {offsets = [0, 32], sizes = [8, 32], strides = [1, 1]} : vector<8x64xf32> to vector<8x32xf32>
    %898 = vector.extract_strided_slice %885 {offsets = [0, 64], sizes = [8, 32], strides = [1, 1]} : vector<8x128xf32> to vector<8x32xf32>
    %899 = vector.extract_strided_slice %887 {offsets = [0, 64], sizes = [8, 32], strides = [1, 1]} : vector<8x128xf32> to vector<8x32xf32>
    %900 = arith.addf %899, %10 : vector<8x32xf32>
    %901 = arith.mulf %896, %900 : vector<8x32xf32>
    %902 = arith.addf %898, %901 : vector<8x32xf32>
    %903 = math.tanh %902 : vector<8x32xf32>
    %cst_219 = arith.constant 1.000000e+00 : f32
    %904 = vector.broadcast %cst_219 : f32 to vector<8x32xf32>
    %905 = arith.subf %904, %897 : vector<8x32xf32>
    %906 = arith.mulf %905, %903 : vector<8x32xf32>
    %907 = arith.mulf %897, %878 : vector<8x32xf32>
    %908 = arith.addf %906, %907 : vector<8x32xf32>
    %c8_i32_220 = arith.constant 8 : i32
    %909 = arith.cmpi sge, %c29_i32, %c8_i32_220 : i32
    %910 = arith.extui %909 : i1 to i32
    %c0_i32_221 = arith.constant 0 : i32
    %911 = arith.cmpi ne, %910, %c0_i32_221 : i32
    scf.if %911 {
      %c8_i32_245 = arith.constant 8 : i32
      %979 = arith.subi %c29_i32, %c8_i32_245 : i32
      %c8_i32_246 = arith.constant 8 : i32
      %980 = arith.muli %979, %c8_i32_246 : i32
      %981 = tpu.assume_multiple %980, 8 : i32
      %982 = arith.index_cast %981 : i32 to index
      %c0_247 = arith.constant 0 : index
      %983 = vector.load %arg10[%982, %c0_247] : memref<192x32xf32, #tpu.memory_space<vmem>>, vector<8x32xf32>
      tpu.vector_store %arg10[%982, %c0_247], %908 {strides = array<i32>} : memref<192x32xf32, #tpu.memory_space<vmem>>, vector<8x32xf32>,
    } else {
    }
    %c30_i32 = arith.constant 30 : i32
    %c8_i32_222 = arith.constant 8 : i32
    %912 = arith.muli %c30_i32, %c8_i32_222 : i32
    %913 = tpu.assume_multiple %912, 8 : i32
    %914 = arith.index_cast %913 : i32 to index
    %c0_223 = arith.constant 0 : index
    %915 = vector.load %arg9[%914, %c0_223] : memref<256x128xf32, #tpu.memory_space<vmem>>, vector<8x128xf32>
    %916 = arith.truncf %908 : vector<8x32xf32> to vector<8x32xbf16>
    %cst_224 = arith.constant dense<0.000000e+00> : vector<8x128xf32>
    %917 = tpu.matmul %916, %7, %cst_224 {dimension_numbers = #tpu.dot_dimension_numbers<[1], [0], [0], [1], [0, 0, 1, 1], [], []>} : vector<8x32xbf16>, vector<32x128xbf16>, vector<8x128xf32> -> vector<8x128xf32>
    %918 = vector.extract_strided_slice %915 {offsets = [0, 0], sizes = [8, 64], strides = [1, 1]} : vector<8x128xf32> to vector<8x64xf32>
    %919 = vector.extract_strided_slice %917 {offsets = [0, 0], sizes = [8, 64], strides = [1, 1]} : vector<8x128xf32> to vector<8x64xf32>
    %920 = arith.addf %918, %919 : vector<8x64xf32>
    %921 = arith.negf %920 : vector<8x64xf32>
    %922 = math.exp %921 : vector<8x64xf32>
    %cst_225 = arith.constant 1.000000e+00 : f32
    %923 = vector.broadcast %cst_225 : f32 to vector<8x64xf32>
    %924 = arith.addf %923, %922 : vector<8x64xf32>
    %925 = arith.divf %923, %924 : vector<8x64xf32>
    %926 = vector.extract_strided_slice %925 {offsets = [0, 0], sizes = [8, 32], strides = [1, 1]} : vector<8x64xf32> to vector<8x32xf32>
    %927 = vector.extract_strided_slice %925 {offsets = [0, 32], sizes = [8, 32], strides = [1, 1]} : vector<8x64xf32> to vector<8x32xf32>
    %928 = vector.extract_strided_slice %915 {offsets = [0, 64], sizes = [8, 32], strides = [1, 1]} : vector<8x128xf32> to vector<8x32xf32>
    %929 = vector.extract_strided_slice %917 {offsets = [0, 64], sizes = [8, 32], strides = [1, 1]} : vector<8x128xf32> to vector<8x32xf32>
    %930 = arith.addf %929, %10 : vector<8x32xf32>
    %931 = arith.mulf %926, %930 : vector<8x32xf32>
    %932 = arith.addf %928, %931 : vector<8x32xf32>
    %933 = math.tanh %932 : vector<8x32xf32>
    %cst_226 = arith.constant 1.000000e+00 : f32
    %934 = vector.broadcast %cst_226 : f32 to vector<8x32xf32>
    %935 = arith.subf %934, %927 : vector<8x32xf32>
    %936 = arith.mulf %935, %933 : vector<8x32xf32>
    %937 = arith.mulf %927, %908 : vector<8x32xf32>
    %938 = arith.addf %936, %937 : vector<8x32xf32>
    %c8_i32_227 = arith.constant 8 : i32
    %939 = arith.cmpi sge, %c30_i32, %c8_i32_227 : i32
    %940 = arith.extui %939 : i1 to i32
    %c0_i32_228 = arith.constant 0 : i32
    %941 = arith.cmpi ne, %940, %c0_i32_228 : i32
    scf.if %941 {
      %c8_i32_245 = arith.constant 8 : i32
      %979 = arith.subi %c30_i32, %c8_i32_245 : i32
      %c8_i32_246 = arith.constant 8 : i32
      %980 = arith.muli %979, %c8_i32_246 : i32
      %981 = tpu.assume_multiple %980, 8 : i32
      %982 = arith.index_cast %981 : i32 to index
      %c0_247 = arith.constant 0 : index
      %983 = vector.load %arg10[%982, %c0_247] : memref<192x32xf32, #tpu.memory_space<vmem>>, vector<8x32xf32>
      tpu.vector_store %arg10[%982, %c0_247], %938 {strides = array<i32>} : memref<192x32xf32, #tpu.memory_space<vmem>>, vector<8x32xf32>,
    } else {
    }
    %c31_i32 = arith.constant 31 : i32
    %c8_i32_229 = arith.constant 8 : i32
    %942 = arith.muli %c31_i32, %c8_i32_229 : i32
    %943 = tpu.assume_multiple %942, 8 : i32
    %944 = arith.index_cast %943 : i32 to index
    %c0_230 = arith.constant 0 : index
    %945 = vector.load %arg9[%944, %c0_230] : memref<256x128xf32, #tpu.memory_space<vmem>>, vector<8x128xf32>
    %946 = arith.truncf %938 : vector<8x32xf32> to vector<8x32xbf16>
    %cst_231 = arith.constant dense<0.000000e+00> : vector<8x128xf32>
    %947 = tpu.matmul %946, %7, %cst_231 {dimension_numbers = #tpu.dot_dimension_numbers<[1], [0], [0], [1], [0, 0, 1, 1], [], []>} : vector<8x32xbf16>, vector<32x128xbf16>, vector<8x128xf32> -> vector<8x128xf32>
    %948 = vector.extract_strided_slice %945 {offsets = [0, 0], sizes = [8, 64], strides = [1, 1]} : vector<8x128xf32> to vector<8x64xf32>
    %949 = vector.extract_strided_slice %947 {offsets = [0, 0], sizes = [8, 64], strides = [1, 1]} : vector<8x128xf32> to vector<8x64xf32>
    %950 = arith.addf %948, %949 : vector<8x64xf32>
    %951 = arith.negf %950 : vector<8x64xf32>
    %952 = math.exp %951 : vector<8x64xf32>
    %cst_232 = arith.constant 1.000000e+00 : f32
    %953 = vector.broadcast %cst_232 : f32 to vector<8x64xf32>
    %954 = arith.addf %953, %952 : vector<8x64xf32>
    %955 = arith.divf %953, %954 : vector<8x64xf32>
    %956 = vector.extract_strided_slice %955 {offsets = [0, 0], sizes = [8, 32], strides = [1, 1]} : vector<8x64xf32> to vector<8x32xf32>
    %957 = vector.extract_strided_slice %955 {offsets = [0, 32], sizes = [8, 32], strides = [1, 1]} : vector<8x64xf32> to vector<8x32xf32>
    %958 = vector.extract_strided_slice %945 {offsets = [0, 64], sizes = [8, 32], strides = [1, 1]} : vector<8x128xf32> to vector<8x32xf32>
    %959 = vector.extract_strided_slice %947 {offsets = [0, 64], sizes = [8, 32], strides = [1, 1]} : vector<8x128xf32> to vector<8x32xf32>
    %960 = arith.addf %959, %10 : vector<8x32xf32>
    %961 = arith.mulf %956, %960 : vector<8x32xf32>
    %962 = arith.addf %958, %961 : vector<8x32xf32>
    %963 = math.tanh %962 : vector<8x32xf32>
    %cst_233 = arith.constant 1.000000e+00 : f32
    %964 = vector.broadcast %cst_233 : f32 to vector<8x32xf32>
    %965 = arith.subf %964, %957 : vector<8x32xf32>
    %966 = arith.mulf %965, %963 : vector<8x32xf32>
    %967 = arith.mulf %957, %938 : vector<8x32xf32>
    %968 = arith.addf %966, %967 : vector<8x32xf32>
    %c8_i32_234 = arith.constant 8 : i32
    %969 = arith.cmpi sge, %c31_i32, %c8_i32_234 : i32
    %970 = arith.extui %969 : i1 to i32
    %c0_i32_235 = arith.constant 0 : i32
    %971 = arith.cmpi ne, %970, %c0_i32_235 : i32
    scf.if %971 {
      %c8_i32_245 = arith.constant 8 : i32
      %979 = arith.subi %c31_i32, %c8_i32_245 : i32
      %c8_i32_246 = arith.constant 8 : i32
      %980 = arith.muli %979, %c8_i32_246 : i32
      %981 = tpu.assume_multiple %980, 8 : i32
      %982 = arith.index_cast %981 : i32 to index
      %c0_247 = arith.constant 0 : index
      %983 = vector.load %arg10[%982, %c0_247] : memref<192x32xf32, #tpu.memory_space<vmem>>, vector<8x32xf32>
      tpu.vector_store %arg10[%982, %c0_247], %968 {strides = array<i32>} : memref<192x32xf32, #tpu.memory_space<vmem>>, vector<8x32xf32>,
    } else {
    }
    %c32_i32 = arith.constant 32 : i32
    %c0_236 = arith.constant 0 : index
    %c0_237 = arith.constant 0 : index
    %972 = vector.load %arg10[%c0_236, %c0_237] : memref<192x32xf32, #tpu.memory_space<vmem>>, vector<192x32xf32>
    %c0_238 = arith.constant 0 : index
    %c0_239 = arith.constant 0 : index
    %973 = vector.load %arg6[%c0_238, %c0_239] : memref<32x1xf32, #tpu.memory_space<vmem>>, vector<32x1xf32>
    %cst_240 = arith.constant dense<0.000000e+00> : vector<192x1xf32>
    %974 = tpu.matmul %972, %973, %cst_240 {dimension_numbers = #tpu.dot_dimension_numbers<[1], [0], [0], [1], [0, 0, 1, 1], [], []>} : vector<192x32xf32>, vector<32x1xf32>, vector<192x1xf32> -> vector<192x1xf32>
    %c0_241 = arith.constant 0 : index
    %c0_242 = arith.constant 0 : index
    %975 = vector.load %arg7[%c0_241, %c0_242] : memref<1x1xf32, #tpu.memory_space<vmem>>, vector<1x1xf32>
    %976 = vector.broadcast %975 : vector<1x1xf32> to vector<192x1xf32>
    %977 = arith.addf %974, %976 : vector<192x1xf32>
    %c0_243 = arith.constant 0 : index
    %c0_244 = arith.constant 0 : index
    %978 = vector.load %arg8[%c0_243, %c0_244] : memref<192x1xf32, #tpu.memory_space<vmem>>, vector<192x1xf32>
    tpu.vector_store %arg8[%c0_243, %c0_244], %977 {strides = array<i32>} : memref<192x1xf32, #tpu.memory_space<vmem>>, vector<192x1xf32>,
    return
  }
  func.func @transform_0(%arg0: i32) -> (i32, i32) {
    %c0_i32 = arith.constant 0 : i32
    %c0_i32_0 = arith.constant 0 : i32
    %c0_i32_1 = arith.constant 0 : i32
    return %c0_i32, %c0_i32_0 : i32, i32
  }
  func.func @transform_1(%arg0: i32) -> (i32, i32) {
    %c0_i32 = arith.constant 0 : i32
    %c0_i32_0 = arith.constant 0 : i32
    %c0_i32_1 = arith.constant 0 : i32
    return %c0_i32, %c0_i32_0 : i32, i32
  }
  func.func @transform_2(%arg0: i32) -> (i32, i32) {
    %c0_i32 = arith.constant 0 : i32
    %c0_i32_0 = arith.constant 0 : i32
    %c0_i32_1 = arith.constant 0 : i32
    return %c0_i32, %c0_i32_0 : i32, i32
  }
  func.func @transform_3(%arg0: i32) -> (i32, i32) {
    %c0_i32 = arith.constant 0 : i32
    %c0_i32_0 = arith.constant 0 : i32
    %c0_i32_1 = arith.constant 0 : i32
    return %c0_i32, %c0_i32_0 : i32, i32
  }
  func.func @transform_4(%arg0: i32) -> (i32, i32) {
    %c0_i32 = arith.constant 0 : i32
    %c0_i32_0 = arith.constant 0 : i32
    %c0_i32_1 = arith.constant 0 : i32
    return %c0_i32, %c0_i32_0 : i32, i32
  }
  func.func @transform_5(%arg0: i32) -> (i32, i32) {
    %c0_i32 = arith.constant 0 : i32
    %c0_i32_0 = arith.constant 0 : i32
    %c0_i32_1 = arith.constant 0 : i32
    return %c0_i32, %c0_i32_0 : i32, i32
  }
  func.func @transform_6(%arg0: i32) -> (i32, i32) {
    %c0_i32 = arith.constant 0 : i32
    %c0_i32_0 = arith.constant 0 : i32
    %c0_i32_1 = arith.constant 0 : i32
    return %c0_i32, %c0_i32_0 : i32, i32
  }
  func.func @transform_7(%arg0: i32) -> (i32, i32) {
    %c0_i32 = arith.constant 0 : i32
    %c0_i32_0 = arith.constant 0 : i32
    %c0_i32_1 = arith.constant 0 : i32
    return %c0_i32, %c0_i32_0 : i32, i32
  }
}

</mosaic_0001>

<bundles_post_ra>
// kernel: gru_forward.1
= control target key start
LH: loop header
LB: loop body
LE: loop exit
PB: predicated region body
PF: predicated region fallthrough
CT: control target
= control target key end

     0   :  { %vm156_vm0 = vcmask 130048   ;;  %v4139_v4 = vmov 0.0   ;;  %s4140_s22 = smov 64   ;;  %vm4141_vm1 = vmmov 0   ;;  %v4142_v13 = vmov 0   ;;  %s4143_s26 = smov 96   ;;  %s5146_s1 = inlined_call_operand.vmem [shape: bf16[16,128], index: 1, kind: input, shape index: {}]   ;;  %s5147_s0 = inlined_call_operand.vmem [shape: bf16[256,16], index: 0, kind: input, shape index: {}]   ;;  %s5148_s3 = inlined_call_operand.vmem [shape: bf16[32,128], index: 3, kind: input, shape index: {}]   ;;  %s5149_s4 = inlined_call_operand.vmem [shape: f32[1,32], index: 4, kind: input, shape index: {}]   ;;  %s5150_s2 = inlined_call_operand.vmem [shape: f32[1,128], index: 2, kind: input, shape index: {}]   ;;  %s5151_s5 = inlined_call_operand.vmem [shape: f32[32,1], index: 5, kind: input, shape index: {}]   ;;  %s5152_s6 = inlined_call_operand.<no memory space> [shape: f32[1,1], index: 6, kind: input, shape index: {}]   ;;  %s5153_s7 = inlined_call_operand.vmem [shape: f32[192,1], index: 7, kind: output, shape index: {}]  }
   0x1   :  { %v3922_v0 = vld [vmem:[%s5146_s1] sm:$0xff]   ;;  %v3923_v1 = vld [vmem:[%s5147_s0 + $0x50] sm:$0xff]   ;;  %v3924_v2 = vld [vmem:[%s5147_s0 + $0x58] sm:$0xff]   ;;  %vm421_vm2 = vcmask 261120   ;;  %vm3286_vm3 = vcmask 7168  }
   0x2   :  { %3915 = vmatprep.subr.bf16.mxu1 %v3922_v0  ;;  %3581 = vmatprep.subr.bf16.mxu0 %v3922_v0  ;;  %v4197_v3 = vld [vmem:[%s5148_s3 + $0x8] sm:$0xff]   ;;  %v3926_v5 = vld [vmem:[%s5147_s0 + $0x60] sm:$0xff]   ;;  %v3929_v10 = vld [vmem:[%s5147_s0 + $0x70] sm:$0xff]  }
   0x3   :  { %3916 = vmatpush3.bf16.msra.mxu1 %v3922_v0  ;;  %3603 = vmatprep.mubr.msk.bf16.mxu1 %vm156_vm0, %v3923_v1  ;;  %v4210_v6 = vld [vmem:[%s5148_s3] sm:$0xff]   ;;  %v3927_v7 = vld [vmem:[%s5147_s0 + $0x68] sm:$0xff]   ;;  %v3930_v12 = vld [vmem:[%s5147_s0 + $0x78] sm:$0xff]  }
   0x4   :  { %3615 = vmatprep.subr.bf16.mxu1 %v4139_v4  ;;  %3582 = vmatpush3.bf16.msra.mxu0 %v3922_v0  ;;  %v3931_v8 = vld [vmem:[%s5147_s0] sm:$0xff]   ;;  %v3932_v9 = vld [vmem:[%s5147_s0 + $0x8] sm:$0xff]  }
   0x5   :  { %3679 = vmatprep.subr.bf16.mxu0 %v4139_v4  ;;  %3583 = vmatprep.mubr.msk.bf16.mxu0 %vm156_vm0, %v3931_v8  ;;  %v3349_v11 = vld [vmem:[%s5149_s4] ss:$0 sm:$0xff] }
   0x6   :  { %3604 = vmatmul.mubr.msk.bf16.vlgmr.msra.gmra.mxu1 %vm156_vm0, %v3924_v2  ;;  %472 = vrot.lane.b32.xlu0 %v3349_v11, %s4140_s22  ;;  %v4284_v34 = vld [vmem:[%s5150_s2] ss:$0 sm:$0xff] }
   0x7   :  { %3616 = vmatpush3.bf16.msra.mxu1 %v4197_v3  ;;  %3607 = vmatprep.mubr.msk.bf16.mxu1 %vm156_vm0, %v3926_v5 }
   0x8   :  { %3617 = vmatprep.subr.bf16.mxu1 %v4139_v4  ;;  %3584 = vmatmul.mubr.msk.bf16.vlgmr.msra.gmra.mxu0 %vm156_vm0, %v3932_v9 }
   0x9   :  { %3680 = vmatpush3.bf16.msra.mxu0 %v4197_v3 }
   0xa   :  { %3681 = vmatprep.subr.bf16.mxu0 %v4139_v4 }
   0xb   :  { %3618 = vmatpush3.bf16.msra.mxu1 %v4210_v6 }
   0xc   :  { %3623 = vmatprep.subr.bf16.mxu1 %v4139_v4 }
   0xd   :  { %3682 = vmatpush3.bf16.msra.mxu0 %v4210_v6 }
   0xe   :  { %3608 = vmatmul.mubr.msk.bf16.gmra.mxu1 %vm156_vm0, %v3927_v7  ;;  %3695 = vmatprep.subr.bf16.mxu0 %v4139_v4 }
   0xf   :  { %3611 = vmatprep.mubr.msk.bf16.mxu1 %vm156_vm0, %v3929_v10 }
  0x16   :  { %3612 = vmatmul.mubr.msk.bf16.gmra.mxu1 %vm156_vm0, %v3930_v12 }
  0x17   :  { %3619 = vmatprep.mubr.msk.bf16.mxu1 %vm4141_vm1, %v4139_v4 }
  0x1e   :  { %3620 = vmatmul.mubr.bf16.vlgmr.msra.gmra.mxu1 %v4142_v13 }
  0x1f   :  { %3624 = vmatpush3.bf16.msra.mxu1 %v4197_v3  ;;  %3627 = vmatprep.mubr.msk.bf16.mxu1 %vm4141_vm1, %v4139_v4 }
  0x20   :  { %3625 = vmatprep.subr.bf16.mxu1 %v4139_v4 }
  0x23   :  { %3626 = vmatpush3.bf16.msra.mxu1 %v4210_v6 }
  0x24   :  { %3631 = vmatprep.subr.bf16.mxu1 %v4139_v4 }
  0x78   :  { %v4275_v26 = vpop.permute.xlu0 %472 }
  0xc6   :  { %v4251_v14 = vpop.f32.mrf.mxu1 }
  0xc8   :  { %v4253_v15 = vpop.f32.mrf.mxu1  ;;  %v4279_v32 = vpop.f32.mrf.mxu0 }
  0xca   :  { %v4255_v16 = vpop.f32.mrf.mxu1  ;;  %v239_v33 = vpop.f32.mrf.mxu0 }
  0xcb   :  { %v240_v35 = vadd.f32 %v4284_v34, %v239_v33 }
  0xcc   :  { %v4257_v17 = vpop.f32.mrf.mxu1  ;;  %v4299_v58 = vpop.f32.mrf.mxu0 }
  0xce   :  { %v4259_v18 = vpop.f32.mrf.mxu1  ;;  %v242_v59 = vpop.f32.mrf.mxu0 }
  0xcf   :  { %v243_v60 = vadd.f32 %v4284_v34, %v242_v59 }
  0xd0   :  { %v4261_v19 = vpop.f32.mrf.mxu1 }
  0xd2   :  { %v4263_v20 = vpop.f32.mrf.mxu1 }
  0xd4   :  { %v4265_v21 = vpop.f32.mrf.mxu1 }
  0xd6   :  { %v4267_v22 = vpop.f32.mrf.mxu1 }
  0xd8   :  { %v4269_v23 = vpop.f32.mrf.mxu1 }
  0xda   :  { %v4271_v24 = vpop.f32.mrf.mxu1 }
  0xdc   :  { %v4273_v25 = vpop.f32.mrf.mxu1 }
  0xde   :  { %v459_v27 = vpop.f32.mrf.mxu1 }
  0xdf   :  { %v475_v28 = vadd.f32 %v4275_v26, %v459_v27  ;;  %v465_v36 = vadd.f32 %v459_v27, %v240_v35 }
  0xe0   :  { %v3621_v29 = vpop.f32.mrf.mxu1 }
  0xe1   :  { %477 = vrot.lane.b32.xlu0 %v475_v28, %s4140_s22  ;;  %v3352_v37 = vmul.f32 -1.442695, %v465_v36 }
  0xe2   :  { %v462_v30 = vpop.f32.mrf.mxu1 }
  0xe3   :  { %3941 = vpow2.f32 %v3352_v37  ;;  %v248_v37 = vadd.f32 %v4279_v32, %v4284_v34 }
  0xe4   :  { %v3622_v31 = vpop.f32.mrf.mxu1 }
  0xf0   :  { %v3942_v38 = vpop.eup %3941 }
  0xf1   :  { %v469_v39 = vadd.f32 1.0, %v3942_v38 }
  0xf3   :  { %3943 = vrcp.f32 %v469_v39 }
 0x100   :  { %v3944_v40 = vpop.eup %3943 }
 0x101   :  { %v487_v46 = vsub.f32 1.0, %v3944_v40  ;;  %v493_v48 = vmul.f32 0.0, %v3944_v40 }
 0x153   :  { %v478_v41 = vpop.permute.xlu0 %477 }
 0x154   :  { %v480_v42 = vmul.f32 %v3944_v40, %v478_v41 }
 0x156   :  { %482 = vrot.lane.b32.xlu1 %v480_v42, %s4140_s22 }
 0x1c8   :  { %v483_v43 = vpop.permute.xlu1 %482 }
 0x1c9   :  { %v485_v44 = vadd.f32 %v483_v43, %v240_v35 }
 0x1cb   :  { %3945 = vtanh.f32 %v485_v44 }
 0x1d8   :  { %v3946_v45 = vpop.eup %3945 }
 0x1d9   :  { %489 = vrot.lane.b32.xlu1 %v3946_v45, %s4143_s26 }
 0x24b   :  { %v490_v47 = vpop.permute.xlu1 %489 }
 0x24c   :  { %v492_v49 = vmul.f32 %v490_v47, %v487_v46 }
 0x24e   :  { %v494_v50 = vadd.f32 %v493_v48, %v492_v49 }
 0x250   :  { %v497_v51 = vpack.c.bf16 %v494_v50, %v494_v50 }
 0x252   :  { %499 = vrot.lane.b32.xlu0 %v497_v51, %s4143_s26 }
 0x2c4   :  { %v500_v52 = vpop.permute.xlu0 %499 }
 0x2c5   :  { %3628 = vmatmul.mubr.msk.bf16.vlgmr.msra.gmra.mxu1 %vm421_vm2, %v500_v52 }
 0x2c6   :  { %3632 = vmatpush3.bf16.msra.mxu1 %v4197_v3  ;;  %3635 = vmatprep.mubr.msk.bf16.mxu1 %vm4141_vm1, %v4139_v4 }
 0x2c7   :  { %3633 = vmatprep.subr.bf16.mxu1 %v4139_v4 }
 0x2ca   :  { %3634 = vmatpush3.bf16.msra.mxu1 %v4210_v6 }
 0x2cb   :  { %3639 = vmatprep.subr.bf16.mxu1 %v4139_v4 }
 0x385   :  { %v538_v53 = vpop.f32.mrf.mxu1 }
 0x386   :  { %v551_v54 = vadd.f32 %v538_v53, %v4275_v26  ;;  %v544_v61 = vadd.f32 %v538_v53, %v243_v60 }
 0x387   :  { %v3629_v55 = vpop.f32.mrf.mxu1 }
 0x388   :  { %553 = vrot.lane.b32.xlu1 %v551_v54, %s4140_s22  ;;  %v3354_v62 = vmul.f32 -1.442695, %v544_v61 }
 0x389   :  { %v541_v56 = vpop.f32.mrf.mxu1 }
 0x38a   :  { %3947 = vpow2.f32 %v3354_v62 }
 0x38b   :  { %v3630_v57 = vpop.f32.mrf.mxu1 }
 0x397   :  { %v3948_v63 = vpop.eup %3947 }
 0x398   :  { %v548_v0 = vadd.f32 1.0, %v3948_v63 }
 0x39a   :  { %3949 = vrcp.f32 %v548_v0 }
 0x3a7   :  { %v3950_v1 = vpop.eup %3949 }
 0x3a8   :  { %v563_v10 = vsub.f32 1.0, %v3950_v1  ;;  %v569_v12 = vmul.f32 %v3950_v1, %v494_v50 }
 0x3fa   :  { %v554_v2 = vpop.permute.xlu1 %553 }
 0x3fb   :  { %v556_v5 = vmul.f32 %v3950_v1, %v554_v2 }
 0x3fd   :  { %558 = vrot.lane.b32.xlu0 %v556_v5, %s4140_s22 }
 0x46f   :  { %v559_v7 = vpop.permute.xlu0 %558 }
 0x470   :  { %v561_v8 = vadd.f32 %v559_v7, %v243_v60  ;;  %v251_v60 = vadd.f32 %v4299_v58, %v4284_v34  ;;  %v3934_v58 = vld [vmem:[%s5147_s0 + $0x18] sm:$0xff]  }
 0x472   :  { %3951 = vtanh.f32 %v561_v8 }
 0x47f   :  { %v3952_v9 = vpop.eup %3951 }
 0x480   :  { %565 = vrot.lane.b32.xlu1 %v3952_v9, %s4143_s26  ;;  %v3933_v9 = vld [vmem:[%s5147_s0 + $0x10] sm:$0xff]  }
 0x481   :  { %3587 = vmatprep.mubr.msk.bf16.mxu0 %vm156_vm0, %v3933_v9 }
 0x482   :  { %3588 = vmatmul.mubr.msk.bf16.gmra.mxu0 %vm156_vm0, %v3934_v58 }
 0x4f2   :  { %v566_v11 = vpop.permute.xlu1 %565 }
 0x4f3   :  { %v568_v13 = vmul.f32 %v566_v11, %v563_v10 }
 0x4f5   :  { %v570_v27 = vadd.f32 %v569_v12, %v568_v13 }
 0x4f7   :  { %v573_v28 = vpack.c.bf16 %v570_v27, %v570_v27 }
 0x4f9   :  { %575 = vrot.lane.b32.xlu0 %v573_v28, %s4143_s26 }
 0x56b   :  { %v576_v29 = vpop.permute.xlu0 %575 }
 0x56c   :  { %3636 = vmatmul.mubr.msk.bf16.vlgmr.msra.gmra.mxu1 %vm421_vm2, %v576_v29 }
 0x56d   :  { %3640 = vmatpush3.bf16.msra.mxu1 %v4197_v3  ;;  %3643 = vmatprep.mubr.msk.bf16.mxu1 %vm4141_vm1, %v4139_v4 }
 0x56e   :  { %3641 = vmatprep.subr.bf16.mxu1 %v4139_v4 }
 0x571   :  { %3642 = vmatpush3.bf16.msra.mxu1 %v4210_v6 }
 0x572   :  { %3647 = vmatprep.subr.bf16.mxu1 %v4139_v4 }
 0x62c   :  { %v614_v30 = vpop.f32.mrf.mxu1 }
 0x62d   :  { %v627_v31 = vadd.f32 %v614_v30, %v4275_v26  ;;  %v620_v38 = vadd.f32 %v614_v30, %v248_v37 }
 0x62e   :  { %v3637_v33 = vpop.f32.mrf.mxu1 }
 0x62f   :  { %629 = vrot.lane.b32.xlu1 %v627_v31, %s4140_s22  ;;  %v3356_v39 = vmul.f32 -1.442695, %v620_v38  ;;  %v4350_v38 = vpop.f32.mrf.mxu0 }
 0x630   :  { %v617_v35 = vpop.f32.mrf.mxu1 }
 0x631   :  { %3953 = vpow2.f32 %v3356_v39  ;;  %v255_v39 = vpop.f32.mrf.mxu0 }
 0x632   :  { %v3638_v36 = vpop.f32.mrf.mxu1 }
 0x63e   :  { %v3954_v40 = vpop.eup %3953 }
 0x63f   :  { %v624_v41 = vadd.f32 1.0, %v3954_v40  ;;  %v256_v40 = vadd.f32 %v4284_v34, %v255_v39 }
 0x641   :  { %3955 = vrcp.f32 %v624_v41 }
 0x64e   :  { %v3956_v42 = vpop.eup %3955 }
 0x64f   :  { %v639_v48 = vsub.f32 1.0, %v3956_v42  ;;  %v645_v32 = vmul.f32 %v3956_v42, %v570_v27 }
 0x6a1   :  { %v630_v43 = vpop.permute.xlu1 %629 }
 0x6a2   :  { %v632_v44 = vmul.f32 %v3956_v42, %v630_v43 }
 0x6a4   :  { %634 = vrot.lane.b32.xlu0 %v632_v44, %s4140_s22 }
 0x716   :  { %v635_v45 = vpop.permute.xlu0 %634 }
 0x717   :  { %v637_v46 = vadd.f32 %v635_v45, %v248_v37 }
 0x719   :  { %3957 = vtanh.f32 %v637_v46 }
 0x726   :  { %v3958_v47 = vpop.eup %3957 }
 0x727   :  { %641 = vrot.lane.b32.xlu1 %v3958_v47, %s4143_s26 }
 0x799   :  { %v642_v49 = vpop.permute.xlu1 %641 }
 0x79a   :  { %v644_v50 = vmul.f32 %v642_v49, %v639_v48 }
 0x79c   :  { %v646_v51 = vadd.f32 %v645_v32, %v644_v50 }
 0x79e   :  { %v649_v52 = vpack.c.bf16 %v646_v51, %v646_v51 }
 0x7a0   :  { %651 = vrot.lane.b32.xlu0 %v649_v52, %s4143_s26 }
 0x812   :  { %v652_v53 = vpop.permute.xlu0 %651 }
 0x813   :  { %3644 = vmatmul.mubr.msk.bf16.vlgmr.msra.gmra.mxu1 %vm421_vm2, %v652_v53 }
 0x814   :  { %3648 = vmatpush3.bf16.msra.mxu1 %v4197_v3  ;;  %3651 = vmatprep.mubr.msk.bf16.mxu1 %vm4141_vm1, %v4139_v4 }
 0x815   :  { %3649 = vmatprep.subr.bf16.mxu1 %v4139_v4 }
 0x818   :  { %3650 = vmatpush3.bf16.msra.mxu1 %v4210_v6 }
 0x819   :  { %3655 = vmatprep.subr.bf16.mxu1 %v4139_v4 }
 0x8d3   :  { %v690_v54 = vpop.f32.mrf.mxu1 }
 0x8d4   :  { %v703_v55 = vadd.f32 %v690_v54, %v4275_v26  ;;  %v696_v61 = vadd.f32 %v690_v54, %v251_v60 }
 0x8d5   :  { %v3645_v56 = vpop.f32.mrf.mxu1 }
 0x8d6   :  { %705 = vrot.lane.b32.xlu1 %v703_v55, %s4140_s22  ;;  %v3358_v62 = vmul.f32 -1.442695, %v696_v61 }
 0x8d7   :  { %v693_v57 = vpop.f32.mrf.mxu1 }
 0x8d8   :  { %3959 = vpow2.f32 %v3358_v62 }
 0x8d9   :  { %v3646_v59 = vpop.f32.mrf.mxu1 }
 0x8e5   :  { %v3960_v63 = vpop.eup %3959 }
 0x8e6   :  { %v700_v0 = vadd.f32 1.0, %v3960_v63  ;;  %v4365_v63 = vpop.f32.mrf.mxu0 }
 0x8e8   :  { %3961 = vrcp.f32 %v700_v0  ;;  %v258_v0 = vpop.f32.mrf.mxu0 }
 0x8f5   :  { %v3962_v1 = vpop.eup %3961 }
 0x8f6   :  { %v715_v11 = vsub.f32 1.0, %v3962_v1  ;;  %v721_v13 = vmul.f32 %v3962_v1, %v646_v51 }
 0x948   :  { %v706_v2 = vpop.permute.xlu1 %705 }
 0x949   :  { %v708_v5 = vmul.f32 %v3962_v1, %v706_v2  ;;  %v259_v1 = vadd.f32 %v4284_v34, %v258_v0 }
 0x94b   :  { %710 = vrot.lane.b32.xlu0 %v708_v5, %s4140_s22 }
 0x9bd   :  { %v711_v7 = vpop.permute.xlu0 %710 }
 0x9be   :  { %v713_v8 = vadd.f32 %v711_v7, %v251_v60 }
 0x9c0   :  { %3963 = vtanh.f32 %v713_v8 }
 0x9cd   :  { %v3964_v10 = vpop.eup %3963 }
 0x9ce   :  { %717 = vrot.lane.b32.xlu1 %v3964_v10, %s4143_s26 }
 0xa40   :  { %v718_v12 = vpop.permute.xlu1 %717 }
 0xa41   :  { %v720_v27 = vmul.f32 %v718_v12, %v715_v11 }
 0xa43   :  { %v722_v28 = vadd.f32 %v721_v13, %v720_v27 }
 0xa45   :  { %v725_v29 = vpack.c.bf16 %v722_v28, %v722_v28 }
 0xa47   :  { %727 = vrot.lane.b32.xlu0 %v725_v29, %s4143_s26 }
 0xab9   :  { %v728_v30 = vpop.permute.xlu0 %727 }
 0xaba   :  { %3652 = vmatmul.mubr.msk.bf16.vlgmr.msra.gmra.mxu1 %vm421_vm2, %v728_v30 }
 0xabb   :  { %3656 = vmatpush3.bf16.msra.mxu1 %v4197_v3  ;;  %3659 = vmatprep.mubr.msk.bf16.mxu1 %vm4141_vm1, %v4139_v4 }
 0xabc   :  { %3657 = vmatprep.subr.bf16.mxu1 %v4139_v4 }
 0xabf   :  { %3658 = vmatpush3.bf16.msra.mxu1 %v4210_v6 }
 0xac0   :  { %3663 = vmatprep.subr.bf16.mxu1 %v4139_v4 }
 0xb7a   :  { %v766_v31 = vpop.f32.mrf.mxu1 }
 0xb7b   :  { %v779_v33 = vadd.f32 %v766_v31, %v4275_v26  ;;  %v772_v41 = vadd.f32 %v766_v31, %v256_v40 }
 0xb7c   :  { %v3653_v35 = vpop.f32.mrf.mxu1 }
 0xb7d   :  { %781 = vrot.lane.b32.xlu1 %v779_v33, %s4140_s22  ;;  %v3360_v42 = vmul.f32 -1.442695, %v772_v41 }
 0xb7e   :  { %v769_v36 = vpop.f32.mrf.mxu1 }
 0xb7f   :  { %3965 = vpow2.f32 %v3360_v42  ;;  %v264_v42 = vadd.f32 %v4350_v38, %v4284_v34 }
 0xb80   :  { %v3654_v37 = vpop.f32.mrf.mxu1 }
 0xb8c   :  { %v3966_v43 = vpop.eup %3965 }
 0xb8d   :  { %v776_v44 = vadd.f32 1.0, %v3966_v43 }
 0xb8f   :  { %3967 = vrcp.f32 %v776_v44 }
 0xb9c   :  { %v3968_v45 = vpop.eup %3967 }
 0xb9d   :  { %v791_v50 = vsub.f32 1.0, %v3968_v45  ;;  %v797_v52 = vmul.f32 %v3968_v45, %v722_v28 }
 0xbef   :  { %v782_v46 = vpop.permute.xlu1 %781 }
 0xbf0   :  { %v784_v47 = vmul.f32 %v3968_v45, %v782_v46 }
 0xbf2   :  { %786 = vrot.lane.b32.xlu0 %v784_v47, %s4140_s22 }
 0xc64   :  { %v787_v48 = vpop.permute.xlu0 %786 }
 0xc65   :  { %v789_v49 = vadd.f32 %v787_v48, %v256_v40 }
 0xc67   :  { %3969 = vtanh.f32 %v789_v49 }
 0xc74   :  { %v3970_v32 = vpop.eup %3969 }
 0xc75   :  { %793 = vrot.lane.b32.xlu1 %v3970_v32, %s4143_s26 }
 0xce7   :  { %v794_v51 = vpop.permute.xlu1 %793 }
 0xce8   :  { %v796_v53 = vmul.f32 %v794_v51, %v791_v50 }
 0xcea   :  { %v798_v54 = vadd.f32 %v797_v52, %v796_v53 }
 0xcec   :  { %v801_v55 = vpack.c.bf16 %v798_v54, %v798_v54 }
 0xcee   :  { %803 = vrot.lane.b32.xlu0 %v801_v55, %s4143_s26 }
 0xd60   :  { %v804_v56 = vpop.permute.xlu0 %803 }
 0xd61   :  { %3660 = vmatmul.mubr.msk.bf16.vlgmr.msra.gmra.mxu1 %vm421_vm2, %v804_v56 }
 0xd62   :  { %3664 = vmatpush3.bf16.msra.mxu1 %v4197_v3  ;;  %3667 = vmatprep.mubr.msk.bf16.mxu1 %vm4141_vm1, %v4139_v4 }
 0xd63   :  { %3665 = vmatprep.subr.bf16.mxu1 %v4139_v4 }
 0xd66   :  { %3666 = vmatpush3.bf16.msra.mxu1 %v4210_v6 }
 0xd67   :  { %3671 = vmatprep.subr.bf16.mxu1 %v4139_v4 }
 0xe21   :  { %v842_v57 = vpop.f32.mrf.mxu1 }
 0xe22   :  { %v855_v59 = vadd.f32 %v842_v57, %v4275_v26  ;;  %v848_v2 = vadd.f32 %v842_v57, %v259_v1 }
 0xe23   :  { %v3661_v60 = vpop.f32.mrf.mxu1 }
 0xe24   :  { %857 = vrot.lane.b32.xlu1 %v855_v59, %s4140_s22  ;;  %v3362_v5 = vmul.f32 -1.442695, %v848_v2 }
 0xe25   :  { %v845_v61 = vpop.f32.mrf.mxu1 }
 0xe26   :  { %3971 = vpow2.f32 %v3362_v5 }
 0xe27   :  { %v3662_v62 = vpop.f32.mrf.mxu1 }
 0xe33   :  { %v3972_v7 = vpop.eup %3971 }
 0xe34   :  { %v852_v8 = vadd.f32 1.0, %v3972_v7 }
 0xe36   :  { %3973 = vrcp.f32 %v852_v8 }
 0xe43   :  { %v3974_v9 = vpop.eup %3973 }
 0xe44   :  { %v867_v27 = vsub.f32 1.0, %v3974_v9  ;;  %v873_v29 = vmul.f32 %v3974_v9, %v798_v54 }
 0xe96   :  { %v858_v58 = vpop.permute.xlu1 %857 }
 0xe97   :  { %v860_v10 = vmul.f32 %v3974_v9, %v858_v58 }
 0xe99   :  { %862 = vrot.lane.b32.xlu0 %v860_v10, %s4140_s22 }
 0xf0b   :  { %v863_v11 = vpop.permute.xlu0 %862 }
 0xf0c   :  { %v865_v12 = vadd.f32 %v863_v11, %v259_v1  ;;  %v267_v1 = vadd.f32 %v4365_v63, %v4284_v34  ;;  %v3936_v63 = vld [vmem:[%s5147_s0 + $0x28] sm:$0xff]  }
 0xf0e   :  { %3975 = vtanh.f32 %v865_v12 }
 0xf1b   :  { %v3976_v13 = vpop.eup %3975 }
 0xf1c   :  { %869 = vrot.lane.b32.xlu1 %v3976_v13, %s4143_s26  ;;  %v3935_v13 = vld [vmem:[%s5147_s0 + $0x20] sm:$0xff]  }
 0xf1d   :  { %3591 = vmatprep.mubr.msk.bf16.mxu0 %vm156_vm0, %v3935_v13 }
 0xf1e   :  { %3592 = vmatmul.mubr.msk.bf16.gmra.mxu0 %vm156_vm0, %v3936_v63 }
 0xf8e   :  { %v870_v28 = vpop.permute.xlu1 %869 }
 0xf8f   :  { %v872_v30 = vmul.f32 %v870_v28, %v867_v27  ;;  %v3937_v27 = vld [vmem:[%s5147_s0 + $0x30] sm:$0xff]  }
 0xf90   :  { %3595 = vmatprep.mubr.msk.bf16.mxu0 %vm156_vm0, %v3937_v27 }
 0xf91   :  { %v874_v31 = vadd.f32 %v873_v29, %v872_v30  ;;  %v3938_v29 = vld [vmem:[%s5147_s0 + $0x38] sm:$0xff]   ;;  %v3939_v30 = vld [vmem:[%s5147_s0 + $0x40] sm:$0xff]  }
 0xf92   :  { %3596 = vmatmul.mubr.msk.bf16.gmra.mxu0 %vm156_vm0, %v3938_v29 }
 0xf93   :  { %v877_v33 = vpack.c.bf16 %v874_v31, %v874_v31  ;;  %3599 = vmatprep.mubr.msk.bf16.mxu0 %vm156_vm0, %v3939_v30 }
 0xf95   :  { %879 = vrot.lane.b32.xlu0 %v877_v33, %s4143_s26 }
0x1007   :  { %v880_v35 = vpop.permute.xlu0 %879 }
0x1008   :  { %3668 = vmatmul.mubr.msk.bf16.vlgmr.msra.gmra.mxu1 %vm421_vm2, %v880_v35 }
0x1009   :  { %3672 = vmatpush3.bf16.msra.mxu1 %v4197_v3  ;;  %3675 = vmatprep.mubr.msk.bf16.mxu1 %vm4141_vm1, %v4139_v4 }
0x100a   :  { %3673 = vmatprep.subr.bf16.mxu1 %v4139_v4 }
0x100d   :  { %3674 = vmatpush3.bf16.msra.mxu1 %v4210_v6 }
0x100e   :  { %3687 = vmatprep.subr.bf16.mxu1 %v4139_v4 }
0x10c8   :  { %v918_v36 = vpop.f32.mrf.mxu1 }
0x10c9   :  { %v931_v37 = vadd.f32 %v918_v36, %v4275_v26  ;;  %v924_v43 = vadd.f32 %v918_v36, %v264_v42 }
0x10ca   :  { %v3669_v39 = vpop.f32.mrf.mxu1 }
0x10cb   :  { %933 = vrot.lane.b32.xlu1 %v931_v37, %s4140_s22  ;;  %v3364_v44 = vmul.f32 -1.442695, %v924_v43 }
0x10cc   :  { %v921_v40 = vpop.f32.mrf.mxu1 }
0x10cd   :  { %3977 = vpow2.f32 %v3364_v44 }
0x10ce   :  { %v3670_v41 = vpop.f32.mrf.mxu1 }
0x10da   :  { %v3978_v45 = vpop.eup %3977 }
0x10db   :  { %v928_v46 = vadd.f32 1.0, %v3978_v45 }
0x10dd   :  { %3979 = vrcp.f32 %v928_v46 }
0x10ea   :  { %v3980_v47 = vpop.eup %3979 }
0x10eb   :  { %v943_v52 = vsub.f32 1.0, %v3980_v47  ;;  %v949_v38 = vmul.f32 %v3980_v47, %v874_v31  ;;  %v3940_v31 = vld [vmem:[%s5147_s0 + $0x48] sm:$0xff]  }
0x10ec   :  { %3600 = vmatmul.mubr.msk.bf16.gmra.mxu0 %vm156_vm0, %v3940_v31 }
0x10ed   :  { %3683 = vmatprep.mubr.msk.bf16.mxu0 %vm4141_vm1, %v4139_v4 }
0x113d   :  { %v934_v48 = vpop.permute.xlu1 %933 }
0x113e   :  { %v936_v49 = vmul.f32 %v3980_v47, %v934_v48 }
0x1140   :  { %938 = vrot.lane.b32.xlu0 %v936_v49, %s4140_s22 }
0x11b2   :  { %v939_v32 = vpop.permute.xlu0 %938 }
0x11b3   :  { %v941_v50 = vadd.f32 %v939_v32, %v264_v42  ;;  %v4432_v42 = vpop.f32.mrf.mxu0 }
0x11b5   :  { %3981 = vtanh.f32 %v941_v50  ;;  %v271_v43 = vpop.f32.mrf.mxu0 }
0x11b7   :  { %v4434_v44 = vpop.f32.mrf.mxu0 }
0x11b9   :  { %v274_v45 = vpop.f32.mrf.mxu0 }
0x11bb   :  { %v4436_v46 = vpop.f32.mrf.mxu0 }
0x11bd   :  { %v4438_v47 = vpop.f32.mrf.mxu0 }
0x11bf   :  { %v4440_v48 = vpop.f32.mrf.mxu0 }
0x11c1   :  { %v4442_v49 = vpop.f32.mrf.mxu0 }
0x11c2   :  { %v3982_v51 = vpop.eup %3981 }
0x11c3   :  { %945 = vrot.lane.b32.xlu1 %v3982_v51, %s4143_s26  ;;  %v4444_v32 = vpop.f32.mrf.mxu0 }
0x11c5   :  { %v4446_v50 = vpop.f32.mrf.mxu0 }
0x11c7   :  { %v4448_v51 = vpop.f32.mrf.mxu0 }
0x1235   :  { %v946_v53 = vpop.permute.xlu1 %945 }
0x1236   :  { %v948_v54 = vmul.f32 %v946_v53, %v943_v52  ;;  %v4450_v52 = vpop.f32.mrf.mxu0 }
0x1238   :  { %v950_v55 = vadd.f32 %v949_v38, %v948_v54 }
0x123a   :  { %v953_v56 = vpack.c.bf16 %v950_v55, %v950_v55 }
0x123c   :  { %955 = vrot.lane.b32.xlu0 %v953_v56, %s4143_s26 }
0x12ae   :  { %v956_v57 = vpop.permute.xlu0 %955 }
0x12af   :  { %3676 = vmatmul.mubr.msk.bf16.vlgmr.msra.gmra.mxu1 %vm421_vm2, %v956_v57  ;;  %v272_v57 = vadd.f32 %v4284_v34, %v271_v43 }
0x12b0   :  { %3688 = vmatpush3.bf16.msra.mxu1 %v4197_v3  ;;  %3691 = vmatprep.mubr.msk.bf16.mxu1 %vm4141_vm1, %v4139_v4 }
0x12b1   :  { %3689 = vmatprep.subr.bf16.mxu1 %v4139_v4 }
0x12b4   :  { %3690 = vmatpush3.bf16.msra.mxu1 %v4210_v6 }
0x12b5   :  { %3703 = vmatprep.subr.bf16.mxu1 %v4139_v4 }
0x136f   :  { %v994_v59 = vpop.f32.mrf.mxu1 }
0x1370   :  { %v1007_v60 = vadd.f32 %v994_v59, %v4275_v26  ;;  %v1000_v2 = vadd.f32 %v994_v59, %v267_v1 }
0x1371   :  { %v3677_v61 = vpop.f32.mrf.mxu1 }
0x1372   :  { %1009 = vrot.lane.b32.xlu1 %v1007_v60, %s4140_s22  ;;  %v3366_v5 = vmul.f32 -1.442695, %v1000_v2 }
0x1373   :  { %v997_v62 = vpop.f32.mrf.mxu1 }
0x1374   :  { %3983 = vpow2.f32 %v3366_v5 }
0x1375   :  { %v3678_v0 = vpop.f32.mrf.mxu1 }
0x1381   :  { %v3984_v7 = vpop.eup %3983 }
0x1382   :  { %v1004_v8 = vadd.f32 1.0, %v3984_v7 }
0x1384   :  { %3985 = vrcp.f32 %v1004_v8 }
0x1391   :  { %v3986_v9 = vpop.eup %3985 }
0x1392   :  { %v1019_v33 = vsub.f32 1.0, %v3986_v9  ;;  %v1025_v36 = vmul.f32 %v3986_v9, %v950_v55 }
0x13e4   :  { %v1010_v58 = vpop.permute.xlu1 %1009 }
0x13e5   :  { %v1012_v10 = vmul.f32 %v3986_v9, %v1010_v58 }
0x13e7   :  { %1014 = vrot.lane.b32.xlu0 %v1012_v10, %s4140_s22 }
0x1459   :  { %v1015_v11 = vpop.permute.xlu0 %1014 }
0x145a   :  { %v1017_v12 = vadd.f32 %v1015_v11, %v267_v1 }
0x145c   :  { %3987 = vtanh.f32 %v1017_v12 }
0x1469   :  { %v3988_v28 = vpop.eup %3987 }
0x146a   :  { %1021 = vrot.lane.b32.xlu1 %v3988_v28, %s4143_s26 }
0x14dc   :  { %v1022_v35 = vpop.permute.xlu1 %1021 }
0x14dd   :  { %v1024_v37 = vmul.f32 %v1022_v35, %v1019_v33  ;;  %v275_v33 = vadd.f32 %v4284_v34, %v274_v45 }
0x14df   :  { %v1026_v39 = vadd.f32 %v1025_v36, %v1024_v37 }
0x14e1   :  { %v1029_v40 = vpack.c.bf16 %v1026_v39, %v1026_v39 }
0x14e3   :  { %1031 = vrot.lane.b32.xlu0 %v1029_v40, %s4143_s26 }
0x1555   :  { %v1032_v41 = vpop.permute.xlu0 %1031 }
0x1556   :  { %3684 = vmatmul.mubr.msk.bf16.vlgmr.msra.gmra.mxu0 %vm421_vm2, %v1032_v41 }
0x1557   :  { %3696 = vmatpush3.bf16.msra.mxu0 %v4197_v3  ;;  %3699 = vmatprep.mubr.msk.bf16.mxu0 %vm4141_vm1, %v4139_v4 }
0x1558   :  { %3697 = vmatprep.subr.bf16.mxu0 %v4139_v4 }
0x155b   :  { %3698 = vmatpush3.bf16.msra.mxu0 %v4210_v6 }
0x155c   :  { %3711 = vmatprep.subr.bf16.mxu0 %v4139_v4 }
0x1616   :  { %v1070_v53 = vpop.f32.mrf.mxu0 }
0x1617   :  { %v1083_v38 = vadd.f32 %v1070_v53, %v4275_v26  ;;  %v1076_v59 = vadd.f32 %v1070_v53, %v272_v57 }
0x1618   :  { %v3685_v54 = vpop.f32.mrf.mxu0 }
0x1619   :  { %1085 = vrot.lane.b32.xlu1 %v1083_v38, %s4140_s22  ;;  %v3368_v60 = vmul.f32 -1.442695, %v1076_v59 }
0x161a   :  { %v1073_v55 = vpop.f32.mrf.mxu0 }
0x161b   :  { %3989 = vpow2.f32 %v3368_v60 }
0x161c   :  { %v3686_v56 = vpop.f32.mrf.mxu0 }
0x1628   :  { %v3990_v61 = vpop.eup %3989 }
0x1629   :  { %v1080_v62 = vadd.f32 1.0, %v3990_v61 }
0x162b   :  { %3991 = vrcp.f32 %v1080_v62 }
0x1638   :  { %v3992_v0 = vpop.eup %3991 }
0x1639   :  { %v1095_v9 = vsub.f32 1.0, %v3992_v0  ;;  %v1101_v10 = vmul.f32 %v3992_v0, %v1026_v39 }
0x168b   :  { %v1086_v1 = vpop.permute.xlu1 %1085 }
0x168c   :  { %v1088_v2 = vmul.f32 %v3992_v0, %v1086_v1 }
0x168e   :  { %1090 = vrot.lane.b32.xlu0 %v1088_v2, %s4140_s22 }
0x1700   :  { %v1091_v5 = vpop.permute.xlu0 %1090 }
0x1701   :  { %v1093_v7 = vadd.f32 %v1091_v5, %v272_v57 }
0x1703   :  { %3993 = vtanh.f32 %v1093_v7 }
0x1710   :  { %v3994_v8 = vpop.eup %3993 }
0x1711   :  { %1097 = vrot.lane.b32.xlu1 %v3994_v8, %s4143_s26 }
0x1783   :  { %v1098_v58 = vpop.permute.xlu1 %1097 }
0x1784   :  { %v1100_v11 = vmul.f32 %v1098_v58, %v1095_v9 }
0x1786   :  { %v4457_v12 = vadd.f32 %v1101_v10, %v1100_v11 }
0x1788   :  { %v1110_v13 = vpack.c.bf16 %v4457_v12, %v4457_v12 }
0x178a   :  { %1112 = vrot.lane.b32.xlu0 %v1110_v13, %s4143_s26 }
0x17fc   :  { %v1113_v63 = vpop.permute.xlu0 %1112 }
0x17fd   :  { %3692 = vmatmul.mubr.msk.bf16.vlgmr.msra.gmra.mxu1 %vm421_vm2, %v1113_v63 }
0x17fe   :  { %3704 = vmatpush3.bf16.msra.mxu1 %v4197_v3  ;;  %3707 = vmatprep.mubr.msk.bf16.mxu1 %vm4141_vm1, %v4139_v4 }
0x17ff   :  { %3705 = vmatprep.subr.bf16.mxu1 %v4139_v4 }
0x1802   :  { %3706 = vmatpush3.bf16.msra.mxu1 %v4210_v6 }
0x1803   :  { %3719 = vmatprep.subr.bf16.mxu1 %v4139_v4 }
0x18bd   :  { %v1151_v27 = vpop.f32.mrf.mxu1 }
0x18be   :  { %v1164_v28 = vadd.f32 %v1151_v27, %v4275_v26  ;;  %v1157_v35 = vadd.f32 %v1151_v27, %v275_v33 }
0x18bf   :  { %v3693_v29 = vpop.f32.mrf.mxu1 }
0x18c0   :  { %1166 = vrot.lane.b32.xlu1 %v1164_v28, %s4140_s22  ;;  %v3370_v36 = vmul.f32 -1.442695, %v1157_v35 }
0x18c1   :  { %v1154_v30 = vpop.f32.mrf.mxu1 }
0x18c2   :  { %3995 = vpow2.f32 %v3370_v36 }
0x18c3   :  { %v3694_v31 = vpop.f32.mrf.mxu1 }
0x18cf   :  { %v3996_v37 = vpop.eup %3995 }
0x18d0   :  { %v1161_v39 = vadd.f32 1.0, %v3996_v37  ;;  %v4503_v37 = vld [vmem:[%s5148_s3 + $0x8] sm:$0xff]  }
0x18d2   :  { %3997 = vrcp.f32 %v1161_v39 }
0x18df   :  { %v3998_v40 = vpop.eup %3997 }
0x18e0   :  { %v1176_v55 = vsub.f32 1.0, %v3998_v40  ;;  %v1182_v45 = vmul.f32 %v3998_v40, %v4457_v12 }
0x1932   :  { %v1167_v41 = vpop.permute.xlu1 %1166 }
0x1933   :  { %v1169_v43 = vmul.f32 %v3998_v40, %v1167_v41 }
0x1935   :  { %1171 = vrot.lane.b32.xlu0 %v1169_v43, %s4140_s22 }
0x19a7   :  { %v1172_v53 = vpop.permute.xlu0 %1171 }
0x19a8   :  { %v1174_v38 = vadd.f32 %v1172_v53, %v275_v33 }
0x19aa   :  { %3999 = vtanh.f32 %v1174_v38  ;;  %v283_v38 = vadd.f32 %v4434_v44, %v4284_v34 }
0x19b7   :  { %v4000_v54 = vpop.eup %3999 }
0x19b8   :  { %1178 = vrot.lane.b32.xlu1 %v4000_v54, %s4143_s26 }
0x1a2a   :  { %v1179_v56 = vpop.permute.xlu1 %1178 }
0x1a2b   :  { %v1181_v57 = vmul.f32 %v1179_v56, %v1176_v55 }
0x1a2d   :  { %v4475_v59 = vadd.f32 %v1182_v45, %v1181_v57 }
0x1a2f   :  { %v1192_v60 = vpack.c.bf16 %v4475_v59, %v4475_v59 }
0x1a31   :  { %1194 = vrot.lane.b32.xlu0 %v1192_v60, %s4143_s26 }
0x1aa3   :  { %v1195_v61 = vpop.permute.xlu0 %1194 }
0x1aa4   :  { %3700 = vmatmul.mubr.msk.bf16.vlgmr.msra.gmra.mxu0 %vm421_vm2, %v1195_v61 }
0x1aa5   :  { %3712 = vmatpush3.bf16.msra.mxu0 %v4197_v3  ;;  %3715 = vmatprep.mubr.msk.bf16.mxu0 %vm4141_vm1, %v4139_v4  ;;  %v280_v3 = vadd.f32 %v4432_v42, %v4284_v34 }
0x1aa6   :  { %3713 = vmatprep.subr.bf16.mxu0 %v4139_v4 }
0x1aa9   :  { %3714 = vmatpush3.bf16.msra.mxu0 %v4210_v6 }
0x1aaa   :  { %3727 = vmatprep.subr.bf16.mxu0 %v4139_v4 }
0x1b64   :  { %v1233_v62 = vpop.f32.mrf.mxu0 }
0x1b65   :  { %v1246_v0 = vadd.f32 %v1233_v62, %v4275_v26  ;;  %v1239_v7 = vadd.f32 %v1233_v62, %v280_v3 }
0x1b66   :  { %v3701_v1 = vpop.f32.mrf.mxu0 }
0x1b67   :  { %1248 = vrot.lane.b32.xlu1 %v1246_v0, %s4140_s22  ;;  %v3372_v8 = vmul.f32 -1.442695, %v1239_v7 }
0x1b68   :  { %v1236_v2 = vpop.f32.mrf.mxu0 }
0x1b69   :  { %4001 = vpow2.f32 %v3372_v8 }
0x1b6a   :  { %v3702_v5 = vpop.f32.mrf.mxu0 }
0x1b76   :  { %v4002_v9 = vpop.eup %4001 }
0x1b77   :  { %v1243_v58 = vadd.f32 1.0, %v4002_v9  ;;  %v4531_v9 = vld [vmem:[%s5148_s3] sm:$0xff]  }
0x1b79   :  { %4003 = vrcp.f32 %v1243_v58 }
0x1b86   :  { %v4004_v10 = vpop.eup %4003 }
0x1b87   :  { %v1258_v29 = vsub.f32 1.0, %v4004_v10  ;;  %v1264_v42 = vmul.f32 %v4004_v10, %v4475_v59 }
0x1bd9   :  { %v1249_v11 = vpop.permute.xlu1 %1248 }
0x1bda   :  { %v1251_v13 = vmul.f32 %v4004_v10, %v1249_v11 }
0x1bdc   :  { %1253 = vrot.lane.b32.xlu0 %v1251_v13, %s4140_s22 }
0x1c4e   :  { %v1254_v63 = vpop.permute.xlu0 %1253 }
0x1c4f   :  { %v1256_v27 = vadd.f32 %v1254_v63, %v280_v3 }
0x1c51   :  { %4005 = vtanh.f32 %v1256_v27  ;;  %v288_v27 = vadd.f32 %v4284_v34, %v4438_v47 }
0x1c5e   :  { %v4006_v28 = vpop.eup %4005 }
0x1c5f   :  { %1260 = vrot.lane.b32.xlu1 %v4006_v28, %s4143_s26 }
0x1cd1   :  { %v1261_v30 = vpop.permute.xlu1 %1260 }
0x1cd2   :  { %v1263_v31 = vmul.f32 %v1261_v30, %v1258_v29 }
0x1cd4   :  { %v4494_v33 = vadd.f32 %v1264_v42, %v1263_v31 }
0x1cd6   :  { %v1274_v35 = vpack.c.bf16 %v4494_v33, %v4494_v33 }
0x1cd8   :  { %1276 = vrot.lane.b32.xlu0 %v1274_v35, %s4143_s26 }
0x1d4a   :  { %v1277_v36 = vpop.permute.xlu0 %1276 }
0x1d4b   :  { %3708 = vmatmul.mubr.msk.bf16.vlgmr.msra.gmra.mxu1 %vm421_vm2, %v1277_v36 }
0x1d4c   :  { %3720 = vmatpush3.bf16.msra.mxu1 %v4503_v37  ;;  %3723 = vmatprep.mubr.msk.bf16.mxu1 %vm4141_vm1, %v4139_v4 }
0x1d4d   :  { %3721 = vmatprep.subr.bf16.mxu1 %v4139_v4 }
0x1d50   :  { %3722 = vmatpush3.bf16.msra.mxu1 %v4210_v6 }
0x1d51   :  { %3735 = vmatprep.subr.bf16.mxu1 %v4139_v4 }
0x1e0b   :  { %v1315_v39 = vpop.f32.mrf.mxu1 }
0x1e0c   :  { %v1328_v40 = vadd.f32 %v1315_v39, %v4275_v26  ;;  %v1321_v54 = vadd.f32 %v1315_v39, %v283_v38 }
0x1e0d   :  { %v3709_v41 = vpop.f32.mrf.mxu1 }
0x1e0e   :  { %1330 = vrot.lane.b32.xlu1 %v1328_v40, %s4140_s22  ;;  %v3374_v55 = vmul.f32 -1.442695, %v1321_v54 }
0x1e0f   :  { %v1318_v43 = vpop.f32.mrf.mxu1 }
0x1e10   :  { %4007 = vpow2.f32 %v3374_v55 }
0x1e11   :  { %v3710_v53 = vpop.f32.mrf.mxu1 }
0x1e1d   :  { %v4008_v56 = vpop.eup %4007 }
0x1e1e   :  { %v1325_v45 = vadd.f32 1.0, %v4008_v56 }
0x1e20   :  { %4009 = vrcp.f32 %v1325_v45 }
0x1e2d   :  { %v4010_v6 = vpop.eup %4009 }
0x1e2e   :  { %v1340_v1 = vsub.f32 1.0, %v4010_v6  ;;  %v1346_v44 = vmul.f32 %v4010_v6, %v4494_v33 }
0x1e80   :  { %v1331_v57 = vpop.permute.xlu1 %1330 }
0x1e81   :  { %v1333_v60 = vmul.f32 %v4010_v6, %v1331_v57 }
0x1e83   :  { %1335 = vrot.lane.b32.xlu0 %v1333_v60, %s4140_s22 }
0x1ef5   :  { %v1336_v61 = vpop.permute.xlu0 %1335 }
0x1ef6   :  { %v1338_v62 = vadd.f32 %v1336_v61, %v283_v38 }
0x1ef8   :  { %4011 = vtanh.f32 %v1338_v62  ;;  %v291_v62 = vadd.f32 %v4284_v34, %v4442_v49 }
0x1f05   :  { %v4012_v0 = vpop.eup %4011 }
0x1f06   :  { %1342 = vrot.lane.b32.xlu1 %v4012_v0, %s4143_s26 }
0x1f78   :  { %v1343_v2 = vpop.permute.xlu1 %1342 }
0x1f79   :  { %v1345_v5 = vmul.f32 %v1343_v2, %v1340_v1 }
0x1f7b   :  { %v4518_v3 = vadd.f32 %v1346_v44, %v1345_v5 }
0x1f7d   :  { %v1356_v7 = vpack.c.bf16 %v4518_v3, %v4518_v3 }
0x1f7f   :  { %1358 = vrot.lane.b32.xlu0 %v1356_v7, %s4143_s26 }
0x1ff1   :  { %v1359_v8 = vpop.permute.xlu0 %1358 }
0x1ff2   :  { %3716 = vmatmul.mubr.msk.bf16.vlgmr.msra.gmra.mxu0 %vm421_vm2, %v1359_v8 }
0x1ff3   :  { %3728 = vmatpush3.bf16.msra.mxu0 %v4503_v37  ;;  %3731 = vmatprep.mubr.msk.bf16.mxu0 %vm4141_vm1, %v4139_v4 }
0x1ff4   :  { %3729 = vmatprep.subr.bf16.mxu0 %v4139_v4 }
0x1ff7   :  { %3730 = vmatpush3.bf16.msra.mxu0 %v4531_v9 }
0x1ff8   :  { %3743 = vmatprep.subr.bf16.mxu0 %v4139_v4 }
0x20b2   :  { %v1397_v58 = vpop.f32.mrf.mxu0 }
0x20b3   :  { %v1410_v10 = vadd.f32 %v1397_v58, %v4275_v26  ;;  %v1403_v28 = vadd.f32 %v1397_v58, %v288_v27 }
0x20b4   :  { %v3717_v11 = vpop.f32.mrf.mxu0 }
0x20b5   :  { %1412 = vrot.lane.b32.xlu1 %v1410_v10, %s4140_s22  ;;  %v3376_v29 = vmul.f32 -1.442695, %v1403_v28 }
0x20b6   :  { %v1400_v13 = vpop.f32.mrf.mxu0 }
0x20b7   :  { %4013 = vpow2.f32 %v3376_v29 }
0x20b8   :  { %v3718_v63 = vpop.f32.mrf.mxu0 }
0x20c4   :  { %v4014_v30 = vpop.eup %4013 }
0x20c5   :  { %v1407_v42 = vadd.f32 1.0, %v4014_v30 }
0x20c7   :  { %4015 = vrcp.f32 %v1407_v42 }
0x20d4   :  { %v4016_v31 = vpop.eup %4015 }
0x20d5   :  { %v1422_v43 = vsub.f32 1.0, %v4016_v31  ;;  %v1428_v47 = vmul.f32 %v4016_v31, %v4518_v3 }
0x2127   :  { %v1413_v35 = vpop.permute.xlu1 %1412 }
0x2128   :  { %v1415_v36 = vmul.f32 %v4016_v31, %v1413_v35 }
0x212a   :  { %1417 = vrot.lane.b32.xlu0 %v1415_v36, %s4140_s22 }
0x219c   :  { %v1418_v39 = vpop.permute.xlu0 %1417 }
0x219d   :  { %v1420_v40 = vadd.f32 %v1418_v39, %v288_v27  ;;  %v4578_v39 = vld [vmem:[%s5150_s2] ss:$0 sm:$0xff] }
0x219f   :  { %4017 = vtanh.f32 %v1420_v40  ;;  %v296_v40 = vadd.f32 %v4578_v39, %v4436_v46 }
0x21ac   :  { %v4018_v41 = vpop.eup %4017 }
0x21ad   :  { %1424 = vrot.lane.b32.xlu1 %v4018_v41, %s4143_s26 }
0x221f   :  { %v1425_v53 = vpop.permute.xlu1 %1424 }
0x2220   :  { %v1427_v38 = vmul.f32 %v1425_v53, %v1422_v43 }
0x2222   :  { %v4542_v54 = vadd.f32 %v1428_v47, %v1427_v38 }
0x2224   :  { %v1438_v55 = vpack.c.bf16 %v4542_v54, %v4542_v54 }
0x2226   :  { %1440 = vrot.lane.b32.xlu0 %v1438_v55, %s4143_s26 }
0x2298   :  { %v1441_v56 = vpop.permute.xlu0 %1440 }
0x2299   :  { %3724 = vmatmul.mubr.msk.bf16.vlgmr.msra.gmra.mxu1 %vm421_vm2, %v1441_v56 }
0x229a   :  { %3736 = vmatpush3.bf16.msra.mxu1 %v4503_v37  ;;  %3739 = vmatprep.mubr.msk.bf16.mxu1 %vm4141_vm1, %v4139_v4 }
0x229b   :  { %3737 = vmatprep.subr.bf16.mxu1 %v4139_v4 }
0x229e   :  { %3738 = vmatpush3.bf16.msra.mxu1 %v4531_v9 }
0x229f   :  { %3751 = vmatprep.subr.bf16.mxu1 %v4139_v4 }
0x2359   :  { %v1479_v45 = vpop.f32.mrf.mxu1 }
0x235a   :  { %v1492_v6 = vadd.f32 %v1479_v45, %v4275_v26  ;;  %v1485_v0 = vadd.f32 %v1479_v45, %v291_v62 }
0x235b   :  { %v3725_v57 = vpop.f32.mrf.mxu1 }
0x235c   :  { %1494 = vrot.lane.b32.xlu1 %v1492_v6, %s4140_s22  ;;  %v3378_v1 = vmul.f32 -1.442695, %v1485_v0 }
0x235d   :  { %v1482_v60 = vpop.f32.mrf.mxu1 }
0x235e   :  { %4019 = vpow2.f32 %v3378_v1 }
0x235f   :  { %v3726_v61 = vpop.f32.mrf.mxu1 }
0x236b   :  { %v4020_v2 = vpop.eup %4019 }
0x236c   :  { %v1489_v44 = vadd.f32 1.0, %v4020_v2 }
0x236e   :  { %4021 = vrcp.f32 %v1489_v44 }
0x237b   :  { %v4022_v5 = vpop.eup %4021 }
0x237c   :  { %v1504_v13 = vsub.f32 1.0, %v4022_v5  ;;  %v1510_v34 = vmul.f32 %v4022_v5, %v4542_v54 }
0x23ce   :  { %v1495_v7 = vpop.permute.xlu1 %1494 }
0x23cf   :  { %v1497_v8 = vmul.f32 %v4022_v5, %v1495_v7 }
0x23d1   :  { %1499 = vrot.lane.b32.xlu0 %v1497_v8, %s4140_s22 }
0x2443   :  { %v1500_v58 = vpop.permute.xlu0 %1499 }
0x2444   :  { %v1502_v10 = vadd.f32 %v1500_v58, %v291_v62 }
0x2446   :  { %4023 = vtanh.f32 %v1502_v10  ;;  %v299_v10 = vadd.f32 %v4578_v39, %v4440_v48 }
0x2453   :  { %v4024_v11 = vpop.eup %4023 }
0x2454   :  { %1506 = vrot.lane.b32.xlu1 %v4024_v11, %s4143_s26 }
0x24c6   :  { %v1507_v63 = vpop.permute.xlu1 %1506 }
0x24c7   :  { %v1509_v49 = vmul.f32 %v1507_v63, %v1504_v13 }
0x24c9   :  { %v4561_v27 = vadd.f32 %v1510_v34, %v1509_v49 }
0x24cb   :  { %v1520_v28 = vpack.c.bf16 %v4561_v27, %v4561_v27 }
0x24cd   :  { %1522 = vrot.lane.b32.xlu0 %v1520_v28, %s4143_s26 }
0x253f   :  { %v1523_v29 = vpop.permute.xlu0 %1522 }
0x2540   :  { %3732 = vmatmul.mubr.msk.bf16.vlgmr.msra.gmra.mxu0 %vm421_vm2, %v1523_v29 }
0x2541   :  { %3744 = vmatpush3.bf16.msra.mxu0 %v4503_v37  ;;  %3747 = vmatprep.mubr.msk.bf16.mxu0 %vm4141_vm1, %v4139_v4 }
0x2542   :  { %3745 = vmatprep.subr.bf16.mxu0 %v4139_v4 }
0x2545   :  { %3746 = vmatpush3.bf16.msra.mxu0 %v4531_v9 }
0x2546   :  { %3759 = vmatprep.subr.bf16.mxu0 %v4139_v4 }
0x2600   :  { %v1561_v30 = vpop.f32.mrf.mxu0 }
0x2601   :  { %v1574_v42 = vadd.f32 %v1561_v30, %v4275_v26  ;;  %v1567_v41 = vadd.f32 %v1561_v30, %v296_v40 }
0x2602   :  { %v3733_v31 = vpop.f32.mrf.mxu0 }
0x2603   :  { %1576 = vrot.lane.b32.xlu1 %v1574_v42, %s4140_s22  ;;  %v3380_v43 = vmul.f32 -1.442695, %v1567_v41 }
0x2604   :  { %v1564_v35 = vpop.f32.mrf.mxu0 }
0x2605   :  { %4025 = vpow2.f32 %v3380_v43 }
0x2606   :  { %v3734_v36 = vpop.f32.mrf.mxu0 }
0x2612   :  { %v4026_v53 = vpop.eup %4025 }
0x2613   :  { %v1571_v47 = vadd.f32 1.0, %v4026_v53 }
0x2615   :  { %4027 = vrcp.f32 %v1571_v47 }
0x2622   :  { %v4028_v38 = vpop.eup %4027 }
0x2623   :  { %v1586_v60 = vsub.f32 1.0, %v4028_v38  ;;  %v1592_v46 = vmul.f32 %v4028_v38, %v4561_v27 }
0x2675   :  { %v1577_v55 = vpop.permute.xlu1 %1576 }
0x2676   :  { %v1579_v56 = vmul.f32 %v4028_v38, %v1577_v55 }
0x2678   :  { %1581 = vrot.lane.b32.xlu0 %v1579_v56, %s4140_s22 }
0x26ea   :  { %v1582_v45 = vpop.permute.xlu0 %1581 }
0x26eb   :  { %v1584_v6 = vadd.f32 %v1582_v45, %v296_v40 }
0x26ed   :  { %4029 = vtanh.f32 %v1584_v6  ;;  %v304_v6 = vadd.f32 %v4578_v39, %v4446_v50 }
0x26fa   :  { %v4030_v57 = vpop.eup %4029 }
0x26fb   :  { %1588 = vrot.lane.b32.xlu1 %v4030_v57, %s4143_s26 }
0x276d   :  { %v1589_v61 = vpop.permute.xlu1 %1588 }
0x276e   :  { %v1591_v62 = vmul.f32 %v1589_v61, %v1586_v60 }
0x2770   :  { %v4585_v0 = vadd.f32 %v1592_v46, %v1591_v62 }
0x2772   :  { %v1602_v1 = vpack.c.bf16 %v4585_v0, %v4585_v0 }
0x2774   :  { %1604 = vrot.lane.b32.xlu0 %v1602_v1, %s4143_s26 }
0x27e6   :  { %v1605_v2 = vpop.permute.xlu0 %1604 }
0x27e7   :  { %3740 = vmatmul.mubr.msk.bf16.vlgmr.msra.gmra.mxu1 %vm421_vm2, %v1605_v2 }
0x27e8   :  { %3752 = vmatpush3.bf16.msra.mxu1 %v4503_v37  ;;  %3755 = vmatprep.mubr.msk.bf16.mxu1 %vm4141_vm1, %v4139_v4 }
0x27e9   :  { %3753 = vmatprep.subr.bf16.mxu1 %v4139_v4 }
0x27ec   :  { %3754 = vmatpush3.bf16.msra.mxu1 %v4531_v9 }
0x27ed   :  { %3767 = vmatprep.subr.bf16.mxu1 %v4139_v4 }
0x28a7   :  { %v1643_v44 = vpop.f32.mrf.mxu1 }
0x28a8   :  { %v1656_v5 = vadd.f32 %v1643_v44, %v4275_v26  ;;  %v1649_v11 = vadd.f32 %v1643_v44, %v299_v10 }
0x28a9   :  { %v3741_v7 = vpop.f32.mrf.mxu1 }
0x28aa   :  { %1658 = vrot.lane.b32.xlu1 %v1656_v5, %s4140_s22  ;;  %v3382_v13 = vmul.f32 -1.442695, %v1649_v11 }
0x28ab   :  { %v1646_v8 = vpop.f32.mrf.mxu1 }
0x28ac   :  { %4031 = vpow2.f32 %v3382_v13 }
0x28ad   :  { %v3742_v58 = vpop.f32.mrf.mxu1 }
0x28b9   :  { %v4032_v63 = vpop.eup %4031 }
0x28ba   :  { %v1653_v34 = vadd.f32 1.0, %v4032_v63 }
0x28bc   :  { %4033 = vrcp.f32 %v1653_v34 }
0x28c9   :  { %v4034_v49 = vpop.eup %4033 }
0x28ca   :  { %v1668_v35 = vsub.f32 1.0, %v4034_v49  ;;  %v1674_v48 = vmul.f32 %v4034_v49, %v4585_v0 }
0x291c   :  { %v1659_v28 = vpop.permute.xlu1 %1658 }
0x291d   :  { %v1661_v29 = vmul.f32 %v4034_v49, %v1659_v28 }
0x291f   :  { %1663 = vrot.lane.b32.xlu0 %v1661_v29, %s4140_s22 }
0x2991   :  { %v1664_v30 = vpop.permute.xlu0 %1663 }
0x2992   :  { %v1666_v42 = vadd.f32 %v1664_v30, %v299_v10 }
0x2994   :  { %4035 = vtanh.f32 %v1666_v42  ;;  %v307_v42 = vadd.f32 %v4578_v39, %v4450_v52 }
0x29a1   :  { %v4036_v31 = vpop.eup %4035 }
0x29a2   :  { %1670 = vrot.lane.b32.xlu1 %v4036_v31, %s4143_s26 }
0x2a14   :  { %v1671_v36 = vpop.permute.xlu1 %1670 }
0x2a15   :  { %v1673_v40 = vmul.f32 %v1671_v36, %v1668_v35 }
0x2a17   :  { %v4604_v41 = vadd.f32 %v1674_v48, %v1673_v40 }
0x2a19   :  { %v1684_v43 = vpack.c.bf16 %v4604_v41, %v4604_v41 }
0x2a1b   :  { %1686 = vrot.lane.b32.xlu0 %v1684_v43, %s4143_s26 }
0x2a8d   :  { %v1687_v53 = vpop.permute.xlu0 %1686 }
0x2a8e   :  { %3748 = vmatmul.mubr.msk.bf16.vlgmr.msra.gmra.mxu0 %vm421_vm2, %v1687_v53 }
0x2a8f   :  { %3760 = vmatpush3.bf16.msra.mxu0 %v4503_v37  ;;  %3763 = vmatprep.mubr.msk.bf16.mxu0 %vm4141_vm1, %v4139_v4 }
0x2a90   :  { %3761 = vmatprep.subr.bf16.mxu0 %v4139_v4 }
0x2a93   :  { %3762 = vmatpush3.bf16.msra.mxu0 %v4531_v9 }
0x2a94   :  { %3775 = vmatprep.subr.bf16.mxu0 %v4139_v4 }
0x2b4e   :  { %v1725_v47 = vpop.f32.mrf.mxu0 }
0x2b4f   :  { %v1738_v38 = vadd.f32 %v1725_v47, %v4275_v26  ;;  %v1731_v57 = vadd.f32 %v1725_v47, %v304_v6 }
0x2b50   :  { %v3749_v55 = vpop.f32.mrf.mxu0 }
0x2b51   :  { %1740 = vrot.lane.b32.xlu1 %v1738_v38, %s4140_s22  ;;  %v3384_v60 = vmul.f32 -1.442695, %v1731_v57 }
0x2b52   :  { %v1728_v56 = vpop.f32.mrf.mxu0 }
0x2b53   :  { %4037 = vpow2.f32 %v3384_v60 }
0x2b54   :  { %v3750_v45 = vpop.f32.mrf.mxu0 }
0x2b60   :  { %v4038_v61 = vpop.eup %4037 }
0x2b61   :  { %v1735_v46 = vadd.f32 1.0, %v4038_v61 }
0x2b63   :  { %4039 = vrcp.f32 %v1735_v46 }
0x2b70   :  { %v4040_v62 = vpop.eup %4039 }
0x2b71   :  { %v1750_v8 = vsub.f32 1.0, %v4040_v62  ;;  %v1756_v50 = vmul.f32 %v4040_v62, %v4604_v41 }
0x2bc3   :  { %v1741_v1 = vpop.permute.xlu1 %1740 }
0x2bc4   :  { %v1743_v2 = vmul.f32 %v4040_v62, %v1741_v1 }
0x2bc6   :  { %1745 = vrot.lane.b32.xlu0 %v1743_v2, %s4140_s22 }
0x2c38   :  { %v1746_v44 = vpop.permute.xlu0 %1745 }
0x2c39   :  { %v1748_v5 = vadd.f32 %v1746_v44, %v304_v6 }
0x2c3b   :  { %4041 = vtanh.f32 %v1748_v5  ;;  %v312_v5 = vadd.f32 %v4578_v39, %v4444_v32 }
0x2c48   :  { %v4042_v7 = vpop.eup %4041 }
0x2c49   :  { %1752 = vrot.lane.b32.xlu1 %v4042_v7, %s4143_s26 }
0x2cbb   :  { %v1753_v58 = vpop.permute.xlu1 %1752 }
0x2cbc   :  { %v1755_v10 = vmul.f32 %v1753_v58, %v1750_v8 }
0x2cbe   :  { %v4623_v11 = vadd.f32 %v1756_v50, %v1755_v10 }
0x2cc0   :  { %v1766_v13 = vpack.c.bf16 %v4623_v11, %v4623_v11 }
0x2cc2   :  { %1768 = vrot.lane.b32.xlu0 %v1766_v13, %s4143_s26 }
0x2d34   :  { %v1769_v63 = vpop.permute.xlu0 %1768 }
0x2d35   :  { %3756 = vmatmul.mubr.msk.bf16.vlgmr.msra.gmra.mxu1 %vm421_vm2, %v1769_v63 }
0x2d36   :  { %3768 = vmatpush3.bf16.msra.mxu1 %v4503_v37  ;;  %3771 = vmatprep.mubr.msk.bf16.mxu1 %vm4141_vm1, %v4139_v4 }
0x2d37   :  { %3769 = vmatprep.subr.bf16.mxu1 %v4139_v4 }
0x2d3a   :  { %3770 = vmatpush3.bf16.msra.mxu1 %v4531_v9 }
0x2d3b   :  { %3783 = vmatprep.subr.bf16.mxu1 %v4139_v4 }
0x2df5   :  { %v1807_v34 = vpop.f32.mrf.mxu1 }
0x2df6   :  { %v1820_v49 = vadd.f32 %v1807_v34, %v4275_v26  ;;  %v1813_v31 = vadd.f32 %v1807_v34, %v307_v42 }
0x2df7   :  { %v3757_v28 = vpop.f32.mrf.mxu1 }
0x2df8   :  { %1822 = vrot.lane.b32.xlu1 %v1820_v49, %s4140_s22  ;;  %v3386_v35 = vmul.f32 -1.442695, %v1813_v31 }
0x2df9   :  { %v1810_v29 = vpop.f32.mrf.mxu1 }
0x2dfa   :  { %4043 = vpow2.f32 %v3386_v35 }
0x2dfb   :  { %v3758_v30 = vpop.f32.mrf.mxu1 }
0x2e07   :  { %v4044_v36 = vpop.eup %4043 }
0x2e08   :  { %v1817_v48 = vadd.f32 1.0, %v4044_v36 }
0x2e0a   :  { %4045 = vrcp.f32 %v1817_v48 }
0x2e17   :  { %v4046_v40 = vpop.eup %4045 }
0x2e18   :  { %v1832_v56 = vsub.f32 1.0, %v4046_v40  ;;  %v1838_v52 = vmul.f32 %v4046_v40, %v4623_v11 }
0x2e6a   :  { %v1823_v43 = vpop.permute.xlu1 %1822 }
0x2e6b   :  { %v1825_v53 = vmul.f32 %v4046_v40, %v1823_v43 }
0x2e6d   :  { %1827 = vrot.lane.b32.xlu0 %v1825_v53, %s4140_s22 }
0x2edf   :  { %v1828_v47 = vpop.permute.xlu0 %1827 }
0x2ee0   :  { %v1830_v38 = vadd.f32 %v1828_v47, %v307_v42 }
0x2ee2   :  { %4047 = vtanh.f32 %v1830_v38  ;;  %v315_v38 = vadd.f32 %v4578_v39, %v4448_v51 }
0x2eef   :  { %v4048_v55 = vpop.eup %4047 }
0x2ef0   :  { %1834 = vrot.lane.b32.xlu1 %v4048_v55, %s4143_s26 }
0x2f62   :  { %v1835_v45 = vpop.permute.xlu1 %1834 }
0x2f63   :  { %v1837_v6 = vmul.f32 %v1835_v45, %v1832_v56 }
0x2f65   :  { %v4642_v57 = vadd.f32 %v1838_v52, %v1837_v6 }
0x2f67   :  { %v1848_v60 = vpack.c.bf16 %v4642_v57, %v4642_v57 }
0x2f69   :  { %1850 = vrot.lane.b32.xlu0 %v1848_v60, %s4143_s26 }
0x2fdb   :  { %v1851_v61 = vpop.permute.xlu0 %1850 }
0x2fdc   :  { %3764 = vmatmul.mubr.msk.bf16.vlgmr.msra.gmra.mxu0 %vm421_vm2, %v1851_v61 }
0x2fdd   :  { %3776 = vmatpush3.bf16.msra.mxu0 %v4503_v37  ;;  %3779 = vmatprep.mubr.msk.bf16.mxu0 %vm4141_vm1, %v4139_v4 }
0x2fde   :  { %3777 = vmatprep.subr.bf16.mxu0 %v4139_v4 }
0x2fe1   :  { %3778 = vmatpush3.bf16.msra.mxu0 %v4531_v9 }
0x2fe2   :  { %3791 = vmatprep.subr.bf16.mxu0 %v4139_v4 }
0x309c   :  { %v1889_v46 = vpop.f32.mrf.mxu0 }
0x309d   :  { %v1902_v62 = vadd.f32 %v1889_v46, %v4275_v26  ;;  %v1895_v7 = vadd.f32 %v1889_v46, %v312_v5 }
0x309e   :  { %v3765_v1 = vpop.f32.mrf.mxu0 }
0x309f   :  { %1904 = vrot.lane.b32.xlu1 %v1902_v62, %s4140_s22  ;;  %v3388_v8 = vmul.f32 -1.442695, %v1895_v7 }
0x30a0   :  { %v1892_v2 = vpop.f32.mrf.mxu0 }
0x30a1   :  { %4049 = vpow2.f32 %v3388_v8 }
0x30a2   :  { %v3766_v44 = vpop.f32.mrf.mxu0 }
0x30ae   :  { %v4050_v58 = vpop.eup %4049 }
0x30af   :  { %v1899_v50 = vadd.f32 1.0, %v4050_v58 }
0x30b1   :  { %4051 = vrcp.f32 %v1899_v50 }
0x30be   :  { %v4052_v10 = vpop.eup %4051 }
0x30bf   :  { %v1914_v29 = vsub.f32 1.0, %v4052_v10  ;;  %v1920_v32 = vmul.f32 %v4052_v10, %v4642_v57 }
0x3111   :  { %v1905_v13 = vpop.permute.xlu1 %1904 }
0x3112   :  { %v1907_v63 = vmul.f32 %v4052_v10, %v1905_v13 }
0x3114   :  { %1909 = vrot.lane.b32.xlu0 %v1907_v63, %s4140_s22 }
0x3186   :  { %v1910_v34 = vpop.permute.xlu0 %1909 }
0x3187   :  { %v1912_v49 = vadd.f32 %v1910_v34, %v312_v5 }
0x3189   :  { %4053 = vtanh.f32 %v1912_v49  ;;  %v320_v49 = vadd.f32 %v4578_v39, %v4253_v15 }
0x3196   :  { %v4054_v28 = vpop.eup %4053 }
0x3197   :  { %1916 = vrot.lane.b32.xlu1 %v4054_v28, %s4143_s26 }
0x3209   :  { %v1917_v30 = vpop.permute.xlu1 %1916 }
0x320a   :  { %v1919_v42 = vmul.f32 %v1917_v30, %v1914_v29 }
0x320c   :  { %v4661_v31 = vadd.f32 %v1920_v32, %v1919_v42 }
0x320e   :  { %v1930_v35 = vpack.c.bf16 %v4661_v31, %v4661_v31 }
0x3210   :  { %1932 = vrot.lane.b32.xlu0 %v1930_v35, %s4143_s26 }
0x3282   :  { %v1933_v36 = vpop.permute.xlu0 %1932 }
0x3283   :  { %3772 = vmatmul.mubr.msk.bf16.vlgmr.msra.gmra.mxu1 %vm421_vm2, %v1933_v36 }
0x3284   :  { %3784 = vmatpush3.bf16.msra.mxu1 %v4503_v37  ;;  %3787 = vmatprep.mubr.msk.bf16.mxu1 %vm4141_vm1, %v4139_v4 }
0x3285   :  { %3785 = vmatprep.subr.bf16.mxu1 %v4139_v4 }
0x3288   :  { %3786 = vmatpush3.bf16.msra.mxu1 %v4531_v9 }
0x3289   :  { %3799 = vmatprep.subr.bf16.mxu1 %v4139_v4 }
0x3343   :  { %v1971_v48 = vpop.f32.mrf.mxu1 }
0x3344   :  { %v1984_v40 = vadd.f32 %v1971_v48, %v4275_v26  ;;  %v1977_v55 = vadd.f32 %v1971_v48, %v315_v38 }
0x3345   :  { %v3773_v43 = vpop.f32.mrf.mxu1 }
0x3346   :  { %1986 = vrot.lane.b32.xlu1 %v1984_v40, %s4140_s22  ;;  %v3390_v56 = vmul.f32 -1.442695, %v1977_v55 }
0x3347   :  { %v1974_v53 = vpop.f32.mrf.mxu1 }
0x3348   :  { %4055 = vpow2.f32 %v3390_v56 }
0x3349   :  { %v3774_v47 = vpop.f32.mrf.mxu1 }
0x3355   :  { %v4056_v45 = vpop.eup %4055 }
0x3356   :  { %v1981_v52 = vadd.f32 1.0, %v4056_v45 }
0x3358   :  { %4057 = vrcp.f32 %v1981_v52 }
0x3365   :  { %v4058_v6 = vpop.eup %4057 }
0x3366   :  { %v1996_v2 = vsub.f32 1.0, %v4058_v6  ;;  %v2002_v51 = vmul.f32 %v4058_v6, %v4661_v31 }
0x33b8   :  { %v1987_v60 = vpop.permute.xlu1 %1986 }
0x33b9   :  { %v1989_v61 = vmul.f32 %v4058_v6, %v1987_v60 }
0x33bb   :  { %1991 = vrot.lane.b32.xlu0 %v1989_v61, %s4140_s22 }
0x342d   :  { %v1992_v46 = vpop.permute.xlu0 %1991 }
0x342e   :  { %v1994_v62 = vadd.f32 %v1992_v46, %v315_v38 }
0x3430   :  { %4059 = vtanh.f32 %v1994_v62  ;;  %v323_v62 = vadd.f32 %v4578_v39, %v4257_v17 }
0x343d   :  { %v4060_v1 = vpop.eup %4059 }
0x343e   :  { %1998 = vrot.lane.b32.xlu1 %v4060_v1, %s4143_s26 }
0x34b0   :  { %v1999_v44 = vpop.permute.xlu1 %1998 }
0x34b1   :  { %v2001_v5 = vmul.f32 %v1999_v44, %v1996_v2 }
0x34b3   :  { %v4680_v7 = vadd.f32 %v2002_v51, %v2001_v5 }
0x34b5   :  { %v2012_v8 = vpack.c.bf16 %v4680_v7, %v4680_v7 }
0x34b7   :  { %2014 = vrot.lane.b32.xlu0 %v2012_v8, %s4143_s26 }
0x3529   :  { %v2015_v58 = vpop.permute.xlu0 %2014 }
0x352a   :  { %3780 = vmatmul.mubr.msk.bf16.vlgmr.msra.gmra.mxu0 %vm421_vm2, %v2015_v58 }
0x352b   :  { %3792 = vmatpush3.bf16.msra.mxu0 %v4503_v37  ;;  %3795 = vmatprep.mubr.msk.bf16.mxu0 %vm4141_vm1, %v4139_v4 }
0x352c   :  { %3793 = vmatprep.subr.bf16.mxu0 %v4139_v4 }
0x352f   :  { %3794 = vmatpush3.bf16.msra.mxu0 %v4531_v9 }
0x3530   :  { %3807 = vmatprep.subr.bf16.mxu0 %v4139_v4 }
0x35ea   :  { %v2053_v50 = vpop.f32.mrf.mxu0 }
0x35eb   :  { %v2066_v10 = vadd.f32 %v2053_v50, %v4275_v26  ;;  %v2059_v28 = vadd.f32 %v2053_v50, %v320_v49 }
0x35ec   :  { %v3781_v13 = vpop.f32.mrf.mxu0 }
0x35ed   :  { %2068 = vrot.lane.b32.xlu1 %v2066_v10, %s4140_s22  ;;  %v3392_v29 = vmul.f32 -1.442695, %v2059_v28 }
0x35ee   :  { %v2056_v63 = vpop.f32.mrf.mxu0 }
0x35ef   :  { %4061 = vpow2.f32 %v3392_v29 }
0x35f0   :  { %v3782_v34 = vpop.f32.mrf.mxu0 }
0x35fc   :  { %v4062_v30 = vpop.eup %4061 }
0x35fd   :  { %v2063_v32 = vadd.f32 1.0, %v4062_v30 }
0x35ff   :  { %4063 = vrcp.f32 %v2063_v32 }
0x360c   :  { %v4064_v42 = vpop.eup %4063 }
0x360d   :  { %v2078_v53 = vsub.f32 1.0, %v4064_v42  ;;  %v2084_v15 = vmul.f32 %v4064_v42, %v4680_v7 }
0x365f   :  { %v2069_v35 = vpop.permute.xlu1 %2068 }
0x3660   :  { %v2071_v36 = vmul.f32 %v4064_v42, %v2069_v35 }
0x3662   :  { %2073 = vrot.lane.b32.xlu0 %v2071_v36, %s4140_s22 }
0x36d4   :  { %v2074_v48 = vpop.permute.xlu0 %2073 }
0x36d5   :  { %v2076_v40 = vadd.f32 %v2074_v48, %v320_v49 }
0x36d7   :  { %4065 = vtanh.f32 %v2076_v40  ;;  %v328_v40 = vadd.f32 %v4578_v39, %v4251_v14 }
0x36e4   :  { %v4066_v43 = vpop.eup %4065 }
0x36e5   :  { %2080 = vrot.lane.b32.xlu1 %v4066_v43, %s4143_s26 }
0x3757   :  { %v2081_v47 = vpop.permute.xlu1 %2080 }
0x3758   :  { %v2083_v38 = vmul.f32 %v2081_v47, %v2078_v53 }
0x375a   :  { %v4699_v55 = vadd.f32 %v2084_v15, %v2083_v38 }
0x375c   :  { %v2094_v56 = vpack.c.bf16 %v4699_v55, %v4699_v55 }
0x375e   :  { %2096 = vrot.lane.b32.xlu0 %v2094_v56, %s4143_s26 }
0x37d0   :  { %v2097_v45 = vpop.permute.xlu0 %2096 }
0x37d1   :  { %3788 = vmatmul.mubr.msk.bf16.vlgmr.msra.gmra.mxu1 %vm421_vm2, %v2097_v45 }
0x37d2   :  { %3800 = vmatpush3.bf16.msra.mxu1 %v4503_v37  ;;  %3803 = vmatprep.mubr.msk.bf16.mxu1 %vm4141_vm1, %v4139_v4 }
0x37d3   :  { %3801 = vmatprep.subr.bf16.mxu1 %v4139_v4 }
0x37d6   :  { %3802 = vmatpush3.bf16.msra.mxu1 %v4531_v9 }
0x37d7   :  { %3815 = vmatprep.subr.bf16.mxu1 %v4139_v4 }
0x3891   :  { %v2135_v52 = vpop.f32.mrf.mxu1 }
0x3892   :  { %v2148_v6 = vadd.f32 %v2135_v52, %v4275_v26  ;;  %v2141_v1 = vadd.f32 %v2135_v52, %v323_v62 }
0x3893   :  { %v3789_v60 = vpop.f32.mrf.mxu1 }
0x3894   :  { %2150 = vrot.lane.b32.xlu1 %v2148_v6, %s4140_s22  ;;  %v3394_v2 = vmul.f32 -1.442695, %v2141_v1 }
0x3895   :  { %v2138_v61 = vpop.f32.mrf.mxu1 }
0x3896   :  { %4067 = vpow2.f32 %v3394_v2 }
0x3897   :  { %v3790_v46 = vpop.f32.mrf.mxu1 }
0x38a3   :  { %v4068_v44 = vpop.eup %4067 }
0x38a4   :  { %v2145_v51 = vadd.f32 1.0, %v4068_v44 }
0x38a6   :  { %4069 = vrcp.f32 %v2145_v51 }
0x38b3   :  { %v4070_v5 = vpop.eup %4069 }
0x38b4   :  { %v2160_v63 = vsub.f32 1.0, %v4070_v5  ;;  %v2166_v17 = vmul.f32 %v4070_v5, %v4699_v55 }
0x3906   :  { %v2151_v8 = vpop.permute.xlu1 %2150 }
0x3907   :  { %v2153_v58 = vmul.f32 %v4070_v5, %v2151_v8 }
0x3909   :  { %2155 = vrot.lane.b32.xlu0 %v2153_v58, %s4140_s22 }
0x397b   :  { %v2156_v50 = vpop.permute.xlu0 %2155 }
0x397c   :  { %v2158_v10 = vadd.f32 %v2156_v50, %v323_v62 }
0x397e   :  { %4071 = vtanh.f32 %v2158_v10  ;;  %v331_v10 = vadd.f32 %v4578_v39, %v4255_v16 }
0x398b   :  { %v4072_v13 = vpop.eup %4071 }
0x398c   :  { %2162 = vrot.lane.b32.xlu1 %v4072_v13, %s4143_s26 }
0x39fe   :  { %v2163_v34 = vpop.permute.xlu1 %2162 }
0x39ff   :  { %v2165_v49 = vmul.f32 %v2163_v34, %v2160_v63 }
0x3a01   :  { %v4718_v28 = vadd.f32 %v2166_v17, %v2165_v49 }
0x3a03   :  { %v2176_v29 = vpack.c.bf16 %v4718_v28, %v4718_v28 }
0x3a05   :  { %2178 = vrot.lane.b32.xlu0 %v2176_v29, %s4143_s26 }
0x3a77   :  { %v2179_v30 = vpop.permute.xlu0 %2178 }
0x3a78   :  { %3796 = vmatmul.mubr.msk.bf16.vlgmr.msra.gmra.mxu0 %vm421_vm2, %v2179_v30 }
0x3a79   :  { %3808 = vmatpush3.bf16.msra.mxu0 %v4503_v37  ;;  %3811 = vmatprep.mubr.msk.bf16.mxu0 %vm4141_vm1, %v4139_v4 }
0x3a7a   :  { %3809 = vmatprep.subr.bf16.mxu0 %v4139_v4 }
0x3a7d   :  { %3810 = vmatpush3.bf16.msra.mxu0 %v4531_v9 }
0x3a7e   :  { %3823 = vmatprep.subr.bf16.mxu0 %v4139_v4 }
0x3b38   :  { %v2217_v32 = vpop.f32.mrf.mxu0 }
0x3b39   :  { %v2230_v42 = vadd.f32 %v2217_v32, %v4275_v26  ;;  %v2223_v43 = vadd.f32 %v2217_v32, %v328_v40 }
0x3b3a   :  { %v3797_v35 = vpop.f32.mrf.mxu0 }
0x3b3b   :  { %2232 = vrot.lane.b32.xlu1 %v2230_v42, %s4140_s22  ;;  %v3396_v53 = vmul.f32 -1.442695, %v2223_v43 }
0x3b3c   :  { %v2220_v36 = vpop.f32.mrf.mxu0 }
0x3b3d   :  { %4073 = vpow2.f32 %v3396_v53 }
0x3b3e   :  { %v3798_v48 = vpop.f32.mrf.mxu0 }
0x3b4a   :  { %v4074_v47 = vpop.eup %4073 }
0x3b4b   :  { %v2227_v15 = vadd.f32 1.0, %v4074_v47 }
0x3b4d   :  { %4075 = vrcp.f32 %v2227_v15 }
0x3b5a   :  { %v4076_v38 = vpop.eup %4075 }
0x3b5b   :  { %v2242_v61 = vsub.f32 1.0, %v4076_v38  ;;  %v2248_v14 = vmul.f32 %v4076_v38, %v4718_v28 }
0x3bad   :  { %v2233_v56 = vpop.permute.xlu1 %2232 }
0x3bae   :  { %v2235_v45 = vmul.f32 %v4076_v38, %v2233_v56 }
0x3bb0   :  { %2237 = vrot.lane.b32.xlu0 %v2235_v45, %s4140_s22 }
0x3c22   :  { %v2238_v52 = vpop.permute.xlu0 %2237 }
0x3c23   :  { %v2240_v6 = vadd.f32 %v2238_v52, %v328_v40 }
0x3c25   :  { %4077 = vtanh.f32 %v2240_v6  ;;  %v336_v6 = vadd.f32 %v4578_v39, %v4261_v19 }
0x3c32   :  { %v4078_v60 = vpop.eup %4077 }
0x3c33   :  { %2244 = vrot.lane.b32.xlu1 %v4078_v60, %s4143_s26 }
0x3ca5   :  { %v2245_v46 = vpop.permute.xlu1 %2244 }
0x3ca6   :  { %v2247_v62 = vmul.f32 %v2245_v46, %v2242_v61 }
0x3ca8   :  { %v4737_v1 = vadd.f32 %v2248_v14, %v2247_v62 }
0x3caa   :  { %v2258_v2 = vpack.c.bf16 %v4737_v1, %v4737_v1 }
0x3cac   :  { %2260 = vrot.lane.b32.xlu0 %v2258_v2, %s4143_s26 }
0x3d1e   :  { %v2261_v44 = vpop.permute.xlu0 %2260 }
0x3d1f   :  { %3804 = vmatmul.mubr.msk.bf16.vlgmr.msra.gmra.mxu1 %vm421_vm2, %v2261_v44 }
0x3d20   :  { %3816 = vmatpush3.bf16.msra.mxu1 %v4503_v37  ;;  %3819 = vmatprep.mubr.msk.bf16.mxu1 %vm4141_vm1, %v4139_v4 }
0x3d21   :  { %3817 = vmatprep.subr.bf16.mxu1 %v4139_v4 }
0x3d24   :  { %3818 = vmatpush3.bf16.msra.mxu1 %v4531_v9 }
0x3d25   :  { %3831 = vmatprep.subr.bf16.mxu1 %v4139_v4 }
0x3ddf   :  { %v2299_v51 = vpop.f32.mrf.mxu1 }
0x3de0   :  { %v2312_v5 = vadd.f32 %v2299_v51, %v4275_v26  ;;  %v2305_v13 = vadd.f32 %v2299_v51, %v331_v10 }
0x3de1   :  { %v3805_v8 = vpop.f32.mrf.mxu1 }
0x3de2   :  { %2314 = vrot.lane.b32.xlu1 %v2312_v5, %s4140_s22  ;;  %v3398_v63 = vmul.f32 -1.442695, %v2305_v13 }
0x3de3   :  { %v2302_v58 = vpop.f32.mrf.mxu1 }
0x3de4   :  { %4079 = vpow2.f32 %v3398_v63 }
0x3de5   :  { %v3806_v50 = vpop.f32.mrf.mxu1 }
0x3df1   :  { %v4080_v34 = vpop.eup %4079 }
0x3df2   :  { %v2309_v17 = vadd.f32 1.0, %v4080_v34 }
0x3df4   :  { %4081 = vrcp.f32 %v2309_v17 }
0x3e01   :  { %v4082_v49 = vpop.eup %4081 }
0x3e02   :  { %v2324_v36 = vsub.f32 1.0, %v4082_v49  ;;  %v2330_v16 = vmul.f32 %v4082_v49, %v4737_v1 }
0x3e54   :  { %v2315_v29 = vpop.permute.xlu1 %2314 }
0x3e55   :  { %v2317_v30 = vmul.f32 %v4082_v49, %v2315_v29 }
0x3e57   :  { %2319 = vrot.lane.b32.xlu0 %v2317_v30, %s4140_s22 }
0x3ec9   :  { %v2320_v32 = vpop.permute.xlu0 %2319 }
0x3eca   :  { %v2322_v42 = vadd.f32 %v2320_v32, %v331_v10 }
0x3ecc   :  { %4083 = vtanh.f32 %v2322_v42 }
0x3ed9   :  { %v4084_v35 = vpop.eup %4083 }
0x3eda   :  { %2326 = vrot.lane.b32.xlu1 %v4084_v35, %s4143_s26 }
0x3f4c   :  { %v2327_v48 = vpop.permute.xlu1 %2326 }
0x3f4d   :  { %v2329_v40 = vmul.f32 %v2327_v48, %v2324_v36 }
0x3f4f   :  { %v4756_v43 = vadd.f32 %v2330_v16, %v2329_v40 }
0x3f51   :  { %v2340_v53 = vpack.c.bf16 %v4756_v43, %v4756_v43 }
0x3f53   :  { %2342 = vrot.lane.b32.xlu0 %v2340_v53, %s4143_s26 }
0x3fc5   :  { %v2343_v47 = vpop.permute.xlu0 %2342 }
0x3fc6   :  { %3812 = vmatmul.mubr.msk.bf16.vlgmr.msra.gmra.mxu0 %vm421_vm2, %v2343_v47 }
0x3fc7   :  { %3824 = vmatpush3.bf16.msra.mxu0 %v4503_v37  ;;  %3827 = vmatprep.mubr.msk.bf16.mxu0 %vm4141_vm1, %v4139_v4 }
0x3fc8   :  { %3825 = vmatprep.subr.bf16.mxu0 %v4139_v4 }
0x3fcb   :  { %3826 = vmatpush3.bf16.msra.mxu0 %v4531_v9 }
0x3fcc   :  { %3839 = vmatprep.subr.bf16.mxu0 %v4139_v4 }
0x4086   :  { %v2381_v15 = vpop.f32.mrf.mxu0 }
0x4087   :  { %v2394_v38 = vadd.f32 %v2381_v15, %v4275_v26  ;;  %v2387_v60 = vadd.f32 %v2381_v15, %v336_v6 }
0x4088   :  { %v3813_v56 = vpop.f32.mrf.mxu0 }
0x4089   :  { %2396 = vrot.lane.b32.xlu1 %v2394_v38, %s4140_s22  ;;  %v3400_v61 = vmul.f32 -1.442695, %v2387_v60 }
0x408a   :  { %v2384_v45 = vpop.f32.mrf.mxu0 }
0x408b   :  { %4085 = vpow2.f32 %v3400_v61 }
0x408c   :  { %v3814_v52 = vpop.f32.mrf.mxu0 }
0x4098   :  { %v4086_v46 = vpop.eup %4085 }
0x4099   :  { %v2391_v14 = vadd.f32 1.0, %v4086_v46  ;;  %v4803_v46 = vld [vmem:[%s5148_s3 + $0x8] sm:$0xff]  }
0x409b   :  { %4087 = vrcp.f32 %v2391_v14 }
0x40a8   :  { %v4088_v62 = vpop.eup %4087 }
0x40a9   :  { %v2406_v58 = vsub.f32 1.0, %v4088_v62  ;;  %v2412_v19 = vmul.f32 %v4088_v62, %v4756_v43 }
0x40fb   :  { %v2397_v2 = vpop.permute.xlu1 %2396 }
0x40fc   :  { %v2399_v44 = vmul.f32 %v4088_v62, %v2397_v2 }
0x40fe   :  { %2401 = vrot.lane.b32.xlu0 %v2399_v44, %s4140_s22 }
0x4170   :  { %v2402_v51 = vpop.permute.xlu0 %2401 }
0x4171   :  { %v2404_v5 = vadd.f32 %v2402_v51, %v336_v6 }
0x4173   :  { %4089 = vtanh.f32 %v2404_v5  ;;  %v344_v5 = vadd.f32 %v4578_v39, %v4259_v18 }
0x4180   :  { %v4090_v8 = vpop.eup %4089 }
0x4181   :  { %2408 = vrot.lane.b32.xlu1 %v4090_v8, %s4143_s26 }
0x41f3   :  { %v2409_v50 = vpop.permute.xlu1 %2408 }
0x41f4   :  { %v2411_v10 = vmul.f32 %v2409_v50, %v2406_v58 }
0x41f6   :  { %v4775_v13 = vadd.f32 %v2412_v19, %v2411_v10 }
0x41f8   :  { %v2422_v63 = vpack.c.bf16 %v4775_v13, %v4775_v13 }
0x41fa   :  { %2424 = vrot.lane.b32.xlu0 %v2422_v63, %s4143_s26 }
0x426c   :  { %v2425_v34 = vpop.permute.xlu0 %2424 }
0x426d   :  { %3820 = vmatmul.mubr.msk.bf16.vlgmr.msra.gmra.mxu1 %vm421_vm2, %v2425_v34 }
0x426e   :  { %3832 = vmatpush3.bf16.msra.mxu1 %v4503_v37  ;;  %3835 = vmatprep.mubr.msk.bf16.mxu1 %vm4141_vm1, %v4139_v4  ;;  %v339_v37 = vadd.f32 %v4578_v39, %v4265_v21 }
0x426f   :  { %3833 = vmatprep.subr.bf16.mxu1 %v4139_v4 }
0x4272   :  { %3834 = vmatpush3.bf16.msra.mxu1 %v4531_v9 }
0x4273   :  { %3847 = vmatprep.subr.bf16.mxu1 %v4139_v4 }
0x432d   :  { %v2463_v17 = vpop.f32.mrf.mxu1 }
0x432e   :  { %v2476_v49 = vadd.f32 %v2463_v17, %v4275_v26  ;;  %v2469_v42 = vadd.f32 %v2463_v17, %v339_v37 }
0x432f   :  { %v3821_v29 = vpop.f32.mrf.mxu1 }
0x4330   :  { %2478 = vrot.lane.b32.xlu1 %v2476_v49, %s4140_s22  ;;  %v3402_v35 = vmul.f32 -1.442695, %v2469_v42 }
0x4331   :  { %v2466_v30 = vpop.f32.mrf.mxu1 }
0x4332   :  { %4091 = vpow2.f32 %v3402_v35 }
0x4333   :  { %v3822_v32 = vpop.f32.mrf.mxu1 }
0x433f   :  { %v4092_v36 = vpop.eup %4091 }
0x4340   :  { %v2473_v48 = vadd.f32 1.0, %v4092_v36  ;;  %v4831_v36 = vld [vmem:[%s5148_s3] sm:$0xff]  }
0x4342   :  { %4093 = vrcp.f32 %v2473_v48 }
0x434f   :  { %v4094_v16 = vpop.eup %4093 }
0x4350   :  { %v2488_v56 = vsub.f32 1.0, %v4094_v16  ;;  %v2494_v21 = vmul.f32 %v4094_v16, %v4775_v13 }
0x43a2   :  { %v2479_v40 = vpop.permute.xlu1 %2478 }
0x43a3   :  { %v2481_v53 = vmul.f32 %v4094_v16, %v2479_v40 }
0x43a5   :  { %2483 = vrot.lane.b32.xlu0 %v2481_v53, %s4140_s22 }
0x4417   :  { %v2484_v47 = vpop.permute.xlu0 %2483 }
0x4418   :  { %v2486_v15 = vadd.f32 %v2484_v47, %v339_v37 }
0x441a   :  { %4095 = vtanh.f32 %v2486_v15  ;;  %v347_v15 = vadd.f32 %v4578_v39, %v4263_v20 }
0x4427   :  { %v4096_v38 = vpop.eup %4095 }
0x4428   :  { %2490 = vrot.lane.b32.xlu1 %v4096_v38, %s4143_s26 }
0x449a   :  { %v2491_v45 = vpop.permute.xlu1 %2490 }
0x449b   :  { %v2493_v52 = vmul.f32 %v2491_v45, %v2488_v56 }
0x449d   :  { %v4794_v6 = vadd.f32 %v2494_v21, %v2493_v52 }
0x449f   :  { %v2504_v60 = vpack.c.bf16 %v4794_v6, %v4794_v6 }
0x44a1   :  { %2506 = vrot.lane.b32.xlu0 %v2504_v60, %s4143_s26 }
0x4513   :  { %v2507_v61 = vpop.permute.xlu0 %2506 }
0x4514   :  { %3828 = vmatmul.mubr.msk.bf16.vlgmr.msra.gmra.mxu0 %vm421_vm2, %v2507_v61 }
0x4515   :  { %3840 = vmatpush3.bf16.msra.mxu0 %v4803_v46  ;;  %3843 = vmatprep.mubr.msk.bf16.mxu0 %vm4141_vm1, %v4139_v4 }
0x4516   :  { %3841 = vmatprep.subr.bf16.mxu0 %v4139_v4 }
0x4519   :  { %3842 = vmatpush3.bf16.msra.mxu0 %v4531_v9 }
0x451a   :  { %3855 = vmatprep.subr.bf16.mxu0 %v4139_v4 }
0x45d4   :  { %v2545_v14 = vpop.f32.mrf.mxu0 }
0x45d5   :  { %v2558_v62 = vadd.f32 %v2545_v14, %v4275_v26  ;;  %v2551_v8 = vadd.f32 %v2545_v14, %v344_v5 }
0x45d6   :  { %v3829_v2 = vpop.f32.mrf.mxu0 }
0x45d7   :  { %2560 = vrot.lane.b32.xlu1 %v2558_v62, %s4140_s22  ;;  %v3404_v58 = vmul.f32 -1.442695, %v2551_v8 }
0x45d8   :  { %v2548_v44 = vpop.f32.mrf.mxu0 }
0x45d9   :  { %4097 = vpow2.f32 %v3404_v58 }
0x45da   :  { %v3830_v51 = vpop.f32.mrf.mxu0 }
0x45e6   :  { %v4098_v50 = vpop.eup %4097 }
0x45e7   :  { %v2555_v19 = vadd.f32 1.0, %v4098_v50 }
0x45e9   :  { %4099 = vrcp.f32 %v2555_v19 }
0x45f6   :  { %v4100_v9 = vpop.eup %4099 }
0x45f7   :  { %v2570_v29 = vsub.f32 1.0, %v4100_v9  ;;  %v2576_v18 = vmul.f32 %v4100_v9, %v4794_v6 }
0x4649   :  { %v2561_v10 = vpop.permute.xlu1 %2560 }
0x464a   :  { %v2563_v63 = vmul.f32 %v4100_v9, %v2561_v10 }
0x464c   :  { %2565 = vrot.lane.b32.xlu0 %v2563_v63, %s4140_s22 }
0x46be   :  { %v2566_v34 = vpop.permute.xlu0 %2565 }
0x46bf   :  { %v2568_v17 = vadd.f32 %v2566_v34, %v344_v5 }
0x46c1   :  { %4101 = vtanh.f32 %v2568_v17  ;;  %v352_v17 = vadd.f32 %v4578_v39, %v4269_v23 }
0x46ce   :  { %v4102_v49 = vpop.eup %4101 }
0x46cf   :  { %2572 = vrot.lane.b32.xlu1 %v4102_v49, %s4143_s26 }
0x4741   :  { %v2573_v30 = vpop.permute.xlu1 %2572 }
0x4742   :  { %v2575_v32 = vmul.f32 %v2573_v30, %v2570_v29 }
0x4744   :  { %v4818_v37 = vadd.f32 %v2576_v18, %v2575_v32 }
0x4746   :  { %v2586_v42 = vpack.c.bf16 %v4818_v37, %v4818_v37 }
0x4748   :  { %2588 = vrot.lane.b32.xlu0 %v2586_v42, %s4143_s26 }
0x47ba   :  { %v2589_v35 = vpop.permute.xlu0 %2588 }
0x47bb   :  { %3836 = vmatmul.mubr.msk.bf16.vlgmr.msra.gmra.mxu1 %vm421_vm2, %v2589_v35 }
0x47bc   :  { %3848 = vmatpush3.bf16.msra.mxu1 %v4803_v46  ;;  %3851 = vmatprep.mubr.msk.bf16.mxu1 %vm4141_vm1, %v4139_v4 }
0x47bd   :  { %3849 = vmatprep.subr.bf16.mxu1 %v4139_v4 }
0x47c0   :  { %3850 = vmatpush3.bf16.msra.mxu1 %v4831_v36 }
0x47c1   :  { %3863 = vmatprep.subr.bf16.mxu1 %v4139_v4 }
0x487b   :  { %v2627_v48 = vpop.f32.mrf.mxu1 }
0x487c   :  { %v2640_v16 = vadd.f32 %v2627_v48, %v4275_v26  ;;  %v2633_v38 = vadd.f32 %v2627_v48, %v347_v15 }
0x487d   :  { %v3837_v40 = vpop.f32.mrf.mxu1 }
0x487e   :  { %2642 = vrot.lane.b32.xlu1 %v2640_v16, %s4140_s22  ;;  %v3406_v56 = vmul.f32 -1.442695, %v2633_v38 }
0x487f   :  { %v2630_v53 = vpop.f32.mrf.mxu1 }
0x4880   :  { %4103 = vpow2.f32 %v3406_v56 }
0x4881   :  { %v3838_v47 = vpop.f32.mrf.mxu1 }
0x488d   :  { %v4104_v45 = vpop.eup %4103 }
0x488e   :  { %v2637_v21 = vadd.f32 1.0, %v4104_v45 }
0x4890   :  { %4105 = vrcp.f32 %v2637_v21 }
0x489d   :  { %v4106_v52 = vpop.eup %4105 }
0x489e   :  { %v2652_v44 = vsub.f32 1.0, %v4106_v52  ;;  %v2658_v20 = vmul.f32 %v4106_v52, %v4818_v37 }
0x48f0   :  { %v2643_v60 = vpop.permute.xlu1 %2642 }
0x48f1   :  { %v2645_v61 = vmul.f32 %v4106_v52, %v2643_v60 }
0x48f3   :  { %2647 = vrot.lane.b32.xlu0 %v2645_v61, %s4140_s22 }
0x4965   :  { %v2648_v14 = vpop.permute.xlu0 %2647 }
0x4966   :  { %v2650_v62 = vadd.f32 %v2648_v14, %v347_v15  ;;  %v4876_v14 = vld [vmem:[%s5150_s2] ss:$0 sm:$0xff] }
0x4968   :  { %4107 = vtanh.f32 %v2650_v62 }
0x4975   :  { %v4108_v2 = vpop.eup %4107 }
0x4976   :  { %2654 = vrot.lane.b32.xlu1 %v4108_v2, %s4143_s26 }
0x49e8   :  { %v2655_v51 = vpop.permute.xlu1 %2654 }
0x49e9   :  { %v2657_v5 = vmul.f32 %v2655_v51, %v2652_v44 }
0x49eb   :  { %v4842_v8 = vadd.f32 %v2658_v20, %v2657_v5 }
0x49ed   :  { %v2668_v58 = vpack.c.bf16 %v4842_v8, %v4842_v8 }
0x49ef   :  { %2670 = vrot.lane.b32.xlu0 %v2668_v58, %s4143_s26 }
0x4a61   :  { %v2671_v50 = vpop.permute.xlu0 %2670 }
0x4a62   :  { %3844 = vmatmul.mubr.msk.bf16.vlgmr.msra.gmra.mxu0 %vm421_vm2, %v2671_v50 }
0x4a63   :  { %3856 = vmatpush3.bf16.msra.mxu0 %v4803_v46  ;;  %3859 = vmatprep.mubr.msk.bf16.mxu0 %vm4141_vm1, %v4139_v4 }
0x4a64   :  { %3857 = vmatprep.subr.bf16.mxu0 %v4139_v4 }
0x4a67   :  { %3858 = vmatpush3.bf16.msra.mxu0 %v4831_v36 }
0x4b22   :  { %v2709_v19 = vpop.f32.mrf.mxu0 }
0x4b23   :  { %v2722_v9 = vadd.f32 %v2709_v19, %v4275_v26  ;;  %v2715_v49 = vadd.f32 %v2709_v19, %v352_v17 }
0x4b24   :  { %v3845_v10 = vpop.f32.mrf.mxu0 }
0x4b25   :  { %2724 = vrot.lane.b32.xlu1 %v2722_v9, %s4140_s22  ;;  %v3408_v29 = vmul.f32 -1.442695, %v2715_v49 }
0x4b26   :  { %v2712_v63 = vpop.f32.mrf.mxu0 }
0x4b27   :  { %4109 = vpow2.f32 %v3408_v29 }
0x4b28   :  { %v3846_v34 = vpop.f32.mrf.mxu0 }
0x4b34   :  { %v4110_v30 = vpop.eup %4109 }
0x4b35   :  { %v2719_v18 = vadd.f32 1.0, %v4110_v30 }
0x4b37   :  { %4111 = vrcp.f32 %v2719_v18 }
0x4b44   :  { %v4112_v32 = vpop.eup %4111 }
0x4b45   :  { %v2734_v53 = vsub.f32 1.0, %v4112_v32  ;;  %v2740_v23 = vmul.f32 %v4112_v32, %v4842_v8 }
0x4b97   :  { %v2725_v42 = vpop.permute.xlu1 %2724 }
0x4b98   :  { %v2727_v35 = vmul.f32 %v4112_v32, %v2725_v42  ;;  %v360_v42 = vadd.f32 %v4876_v14, %v4267_v22 }
0x4b9a   :  { %2729 = vrot.lane.b32.xlu0 %v2727_v35, %s4140_s22 }
0x4c0c   :  { %v2730_v48 = vpop.permute.xlu0 %2729 }
0x4c0d   :  { %v2732_v16 = vadd.f32 %v2730_v48, %v352_v17 }
0x4c0f   :  { %4113 = vtanh.f32 %v2732_v16 }
0x4c1c   :  { %v4114_v40 = vpop.eup %4113 }
0x4c1d   :  { %2736 = vrot.lane.b32.xlu1 %v4114_v40, %s4143_s26 }
0x4c8f   :  { %v2737_v47 = vpop.permute.xlu1 %2736 }
0x4c90   :  { %v2739_v39 = vmul.f32 %v2737_v47, %v2734_v53 }
0x4c92   :  { %v4860_v15 = vadd.f32 %v2740_v23, %v2739_v39 }
0x4c94   :  { %v2750_v38 = vpack.c.bf16 %v4860_v15, %v4860_v15 }
0x4c96   :  { %2752 = vrot.lane.b32.xlu0 %v2750_v38, %s4143_s26 }
0x4d08   :  { %v2753_v56 = vpop.permute.xlu0 %2752 }
0x4d09   :  { %3852 = vmatmul.mubr.msk.bf16.vlgmr.msra.gmra.mxu1 %vm421_vm2, %v2753_v56 }
0x4d0a   :  { %3864 = vmatpush3.bf16.msra.mxu1 %v4803_v46  ;;  %3867 = vmatprep.mubr.msk.bf16.mxu1 %vm4141_vm1, %v4139_v4  ;;  %v355_v46 = vadd.f32 %v4876_v14, %v4273_v25 }
0x4d0b   :  { %3865 = vmatprep.subr.bf16.mxu1 %v4139_v4 }
0x4d0e   :  { %3866 = vmatpush3.bf16.msra.mxu1 %v4831_v36 }
0x4dc9   :  { %v2791_v45 = vpop.f32.mrf.mxu1 }
0x4dca   :  { %v2804_v21 = vadd.f32 %v2791_v45, %v4275_v26  ;;  %v2797_v62 = vadd.f32 %v2791_v45, %v355_v46 }
0x4dcb   :  { %v3853_v52 = vpop.f32.mrf.mxu1 }
0x4dcc   :  { %2806 = vrot.lane.b32.xlu1 %v2804_v21, %s4140_s22  ;;  %v3410_v4 = vmul.f32 -1.442695, %v2797_v62 }
0x4dcd   :  { %v2794_v60 = vpop.f32.mrf.mxu1 }
0x4dce   :  { %4115 = vpow2.f32 %v3410_v4 }
0x4dcf   :  { %v3854_v61 = vpop.f32.mrf.mxu1 }
0x4ddb   :  { %v4116_v36 = vpop.eup %4115 }
0x4ddc   :  { %v2801_v2 = vadd.f32 1.0, %v4116_v36 }
0x4dde   :  { %4117 = vrcp.f32 %v2801_v2 }
0x4deb   :  { %v4118_v44 = vpop.eup %4117 }
0x4dec   :  { %v2816_v19 = vsub.f32 1.0, %v4118_v44  ;;  %v2822_v25 = vmul.f32 %v4118_v44, %v4860_v15 }
0x4e3e   :  { %v2807_v51 = vpop.permute.xlu1 %2806 }
0x4e3f   :  { %v2809_v20 = vmul.f32 %v4118_v44, %v2807_v51  ;;  %v363_v51 = vadd.f32 %v4876_v14, %v4271_v24 }
0x4e41   :  { %2811 = vrot.lane.b32.xlu0 %v2809_v20, %s4140_s22 }
0x4eb3   :  { %v2812_v5 = vpop.permute.xlu0 %2811 }
0x4eb4   :  { %v2814_v58 = vadd.f32 %v2812_v5, %v355_v46 }
0x4eb6   :  { %4119 = vtanh.f32 %v2814_v58 }
0x4ec3   :  { %v4120_v50 = vpop.eup %4119 }
0x4ec4   :  { %2818 = vrot.lane.b32.xlu1 %v4120_v50, %s4143_s26 }
0x4f36   :  { %v2819_v9 = vpop.permute.xlu1 %2818 }
0x4f37   :  { %v2821_v10 = vmul.f32 %v2819_v9, %v2816_v19 }
0x4f39   :  { %v4883_v63 = vadd.f32 %v2822_v25, %v2821_v10 }
0x4f3b   :  { %v2832_v34 = vpack.c.bf16 %v4883_v63, %v4883_v63 }
0x4f3d   :  { %2834 = vrot.lane.b32.xlu0 %v2832_v34, %s4143_s26 }
0x4faf   :  { %v2835_v17 = vpop.permute.xlu0 %2834 }
0x4fb0   :  { %3860 = vmatmul.mubr.msk.bf16.vlgmr.msra.gmra.mxu0 %vm421_vm2, %v2835_v17 }
0x5070   :  { %v2873_v49 = vpop.f32.mrf.mxu0 }
0x5071   :  { %v2886_v29 = vadd.f32 %v2873_v49, %v4275_v26  ;;  %v2879_v35 = vadd.f32 %v2873_v49, %v360_v42 }
0x5072   :  { %v3861_v30 = vpop.f32.mrf.mxu0 }
0x5073   :  { %2888 = vrot.lane.b32.xlu1 %v2886_v29, %s4140_s22  ;;  %v3412_v48 = vmul.f32 -1.442695, %v2879_v35 }
0x5074   :  { %v2876_v18 = vpop.f32.mrf.mxu0 }
0x5075   :  { %4121 = vpow2.f32 %v3412_v48 }
0x5076   :  { %v3862_v32 = vpop.f32.mrf.mxu0 }
0x5082   :  { %v4122_v16 = vpop.eup %4121 }
0x5083   :  { %v2883_v40 = vadd.f32 1.0, %v4122_v16 }
0x5085   :  { %4123 = vrcp.f32 %v2883_v40 }
0x5092   :  { %v4124_v53 = vpop.eup %4123 }
0x5093   :  { %v2898_v45 = vsub.f32 1.0, %v4124_v53  ;;  %v2904_v22 = vmul.f32 %v4124_v53, %v4883_v63 }
0x50e5   :  { %v2889_v47 = vpop.permute.xlu1 %2888 }
0x50e6   :  { %v2891_v23 = vmul.f32 %v4124_v53, %v2889_v47 }
0x50e8   :  { %2893 = vrot.lane.b32.xlu0 %v2891_v23, %s4140_s22 }
0x515a   :  { %v2894_v39 = vpop.permute.xlu0 %2893 }
0x515b   :  { %v2896_v38 = vadd.f32 %v2894_v39, %v360_v42 }
0x515d   :  { %4125 = vtanh.f32 %v2896_v38 }
0x516a   :  { %v4126_v56 = vpop.eup %4125 }
0x516b   :  { %2900 = vrot.lane.b32.xlu1 %v4126_v56, %s4143_s26 }
0x51dd   :  { %v2901_v21 = vpop.permute.xlu1 %2900 }
0x51de   :  { %v2903_v52 = vmul.f32 %v2901_v21, %v2898_v45 }
0x51e0   :  { %v4896_v60 = vadd.f32 %v2904_v22, %v2903_v52 }
0x51e2   :  { %v2914_v61 = vpack.c.bf16 %v4896_v60, %v4896_v60 }
0x51e4   :  { %2916 = vrot.lane.b32.xlu0 %v2914_v61, %s4143_s26 }
0x5256   :  { %v2917_v46 = vpop.permute.xlu0 %2916 }
0x5257   :  { %3868 = vmatmul.mubr.msk.bf16.vlgmr.msra.gmra.mxu1 %vm421_vm2, %v2917_v46 }
0x5317   :  { %v2955_v62 = vpop.f32.mrf.mxu1 }
0x5318   :  { %v2968_v4 = vadd.f32 %v2955_v62, %v4275_v26  ;;  %v2961_v20 = vadd.f32 %v2955_v62, %v363_v51 }
0x5319   :  { %v3869_v36 = vpop.f32.mrf.mxu1 }
0x531a   :  { %2970 = vrot.lane.b32.xlu1 %v2968_v4, %s4140_s22  ;;  %v3414_v5 = vmul.f32 -1.442695, %v2961_v20 }
0x531b   :  { %v2958_v2 = vpop.f32.mrf.mxu1 }
0x531c   :  { %4127 = vpow2.f32 %v3414_v5 }
0x531d   :  { %v3870_v44 = vpop.f32.mrf.mxu1 }
0x5329   :  { %v4128_v58 = vpop.eup %4127 }
0x532a   :  { %v2965_v50 = vadd.f32 1.0, %v4128_v58 }
0x532c   :  { %4129 = vrcp.f32 %v2965_v50 }
0x5339   :  { %v4906_v19 = vpop.eup %4129 }
0x538c   :  { %v2971_v9 = vpop.permute.xlu1 %2970 }
0x538d   :  { %v2973_v25 = vmul.f32 %v4906_v19, %v2971_v9 }
0x538f   :  { %2975 = vrot.lane.b32.xlu0 %v2973_v25, %s4140_s22 }
0x5393   :  { %1104 = vrot.lane.b32.xlu0 %v4457_v12, %s4143_s26 }
0x5397   :  { %1267 = vrot.lane.b32.xlu0 %v4494_v33, %s4143_s26  ;;  %v3021_v33 = vld [vmem:[%s5151_s5 + $0x18] sm:$0xff] }
0x5398   :  { %3871 = vmatprep.subr.mxu0 %v3021_v33 }
0x5399   :  { %3872 = vmatpush3.msra.mxu0 %v3021_v33 }
0x539b   :  { %1431 = vrot.lane.b32.xlu0 %v4542_v54, %s4143_s26 }
0x539f   :  { %1595 = vrot.lane.b32.xlu0 %v4585_v0, %s4143_s26  ;;  %v3020_v0 = vld [vmem:[%s5151_s5 + $0x10] sm:$0xff] }
0x53a0   :  { %3873 = vmatprep.subr.mxu0 %v3020_v0 }
0x53a1   :  { %3874 = vmatpush3.msra.mxu0 %v3020_v0 }
0x53a3   :  { %1759 = vrot.lane.b32.xlu0 %v4623_v11, %s4143_s26  ;;  %v3019_v11 = vld [vmem:[%s5151_s5 + $0x8] sm:$0xff] }
0x53a4   :  { %3875 = vmatprep.subr.mxu0 %v3019_v11 }
0x53a5   :  { %3876 = vmatpush3.msra.mxu0 %v3019_v11 }
0x53a7   :  { %1923 = vrot.lane.b32.xlu0 %v4661_v31, %s4143_s26 }
0x53ab   :  { %2087 = vrot.lane.b32.xlu0 %v4699_v55, %s4143_s26 }
0x53af   :  { %2251 = vrot.lane.b32.xlu0 %v4737_v1, %s4143_s26  ;;  %v3018_v1 = vld [vmem:[%s5151_s5] sm:$0xff] }
0x53b0   :  { %3877 = vmatprep.subr.mxu0 %v3018_v1 }
0x53b1   :  { %3878 = vmatpush3.msra.mxu0 %v3018_v1 }
0x53b3   :  { %2415 = vrot.lane.b32.xlu0 %v4775_v13, %s4143_s26 }
0x53b7   :  { %2579 = vrot.lane.b32.xlu0 %v4818_v37, %s4143_s26 }
0x53bb   :  { %2743 = vrot.lane.b32.xlu0 %v4860_v15, %s4143_s26 }
0x53bf   :  { %2907 = vrot.lane.b32.xlu0 %v4896_v60, %s4143_s26 }
0x5401   :  { %v2976_v24 = vpop.permute.xlu0 %2975 }
0x5402   :  { %v2978_v26 = vadd.f32 %v2976_v24, %v363_v51 }
0x5404   :  { %4131 = vtanh.f32 %v2978_v26 }
0x5405   :  { %v1105_v12 = vpop.permute.xlu0 %1104 }
0x5406   :  { %1107 = vst.msk [vmem:[#allocation3] sm:$0xff] %vm421_vm2, %v1105_v12 }
0x5409   :  { %v1268_v54 = vpop.permute.xlu0 %1267 }
0x540a   :  { %1271 = vst.msk [vmem:[#allocation3 + $0x10] sm:$0xff] %vm421_vm2, %v1268_v54 }
0x540d   :  { %v1432_v31 = vpop.permute.xlu0 %1431  ;;  %v2994_v55 = vld [vmem:[#allocation3] sm:$0xff] }
0x540e   :  { %1435 = vst.msk [vmem:[#allocation3 + $0x20] sm:$0xff] %vm421_vm2, %v1432_v31  ;;  %3879 = vmatprep.mubr.msk.f32.mxu0 %vm421_vm2, %v2994_v55 }
0x5411   :  { %v4132_v13 = vpop.eup %4131  ;;  %v1596_v37 = vpop.permute.xlu0 %1595  ;;  %v2996_v30 = vld [vmem:[#allocation3 + $0x10] sm:$0xff] }
0x5412   :  { %1599 = vst.msk [vmem:[#allocation3 + $0x30] sm:$0xff] %vm421_vm2, %v1596_v37  ;;  %2982 = vrot.lane.b32.xlu1 %v4132_v13, %s4143_s26 }
0x5415   :  { %v1760_v15 = vpop.permute.xlu0 %1759  ;;  %v2998_v42 = vld [vmem:[#allocation3 + $0x20] sm:$0xff] }
0x5416   :  { %1763 = vst.msk [vmem:[#allocation3 + $0x40] sm:$0xff] %vm421_vm2, %v1760_v15  ;;  %1185 = vrot.lane.b32.xlu1 %v4475_v59, %s4143_s26 }
0x5419   :  { %v1924_v14 = vpop.permute.xlu0 %1923  ;;  %v3000_v16 = vld [vmem:[#allocation3 + $0x30] sm:$0xff] }
0x541a   :  { %1927 = vst.msk [vmem:[#allocation3 + $0x50] sm:$0xff] %vm421_vm2, %v1924_v14  ;;  %1349 = vrot.lane.b32.xlu1 %v4518_v3, %s4143_s26 }
0x541d   :  { %v2088_v10 = vpop.permute.xlu0 %2087  ;;  %v3002_v47 = vld [vmem:[#allocation3 + $0x40] sm:$0xff] }
0x541e   :  { %2091 = vst.msk [vmem:[#allocation3 + $0x60] sm:$0xff] %vm421_vm2, %v2088_v10  ;;  %1513 = vrot.lane.b32.xlu1 %v4561_v27, %s4143_s26 }
0x5421   :  { %v2252_v34 = vpop.permute.xlu0 %2251  ;;  %v3004_v38 = vld [vmem:[#allocation3 + $0x50] sm:$0xff] }
0x5422   :  { %2255 = vst.msk [vmem:[#allocation3 + $0x70] sm:$0xff] %vm421_vm2, %v2252_v34  ;;  %1677 = vrot.lane.b32.xlu1 %v4604_v41, %s4143_s26  ;;  %v2980_v41 = vsub.f32 1.0, %v4906_v19 }
0x5425   :  { %v2416_v17 = vpop.permute.xlu0 %2415  ;;  %v3006_v21 = vld [vmem:[#allocation3 + $0x60] sm:$0xff] }
0x5426   :  { %2419 = vst.msk [vmem:[#allocation3 + $0x80] sm:$0xff] %vm421_vm2, %v2416_v17  ;;  %1841 = vrot.lane.b32.xlu1 %v4642_v57, %s4143_s26 }
0x5429   :  { %v2580_v59 = vpop.permute.xlu0 %2579 }
0x542a   :  { %2583 = vst.msk [vmem:[#allocation3 + $0x90] sm:$0xff] %vm421_vm2, %v2580_v59  ;;  %2005 = vrot.lane.b32.xlu1 %v4680_v7, %s4143_s26  ;;  %v2986_v7 = vmul.f32 %v4906_v19, %v4896_v60  ;;  %v3008_v60 = vld [vmem:[#allocation3 + $0x70] sm:$0xff] }
0x542d   :  { %v2744_v3 = vpop.permute.xlu0 %2743  ;;  %v3010_v62 = vld [vmem:[#allocation3 + $0x80] sm:$0xff] }
0x542e   :  { %2747 = vst.msk [vmem:[#allocation3 + $0xa0] sm:$0xff] %vm421_vm2, %v2744_v3  ;;  %2169 = vrot.lane.b32.xlu1 %v4718_v28, %s4143_s26 }
0x5431   :  { %v2908_v27 = vpop.permute.xlu0 %2907  ;;  %v3012_v2 = vld [vmem:[#allocation3 + $0x90] sm:$0xff] }
0x5432   :  { %2911 = vst.msk [vmem:[#allocation3 + $0xb0] sm:$0xff] %vm421_vm2, %v2908_v27  ;;  %2333 = vrot.lane.b32.xlu1 %v4756_v43, %s4143_s26  ;;  %v12_v43 = vstv %s5152_s6 }
0x5433   :  { %13 = vst [vmem:[#allocation4] sm:$0x1] %v12_v43 }
0x5435   :  { %v3014_v51 = vld [vmem:[#allocation3 + $0xa0] sm:$0xff] }
0x5436   :  { %2497 = vrot.lane.b32.xlu1 %v4794_v6, %s4143_s26 }
0x5439   :  { %v3016_v5 = vld [vmem:[#allocation3 + $0xb0] sm:$0xff] }
0x543a   :  { %2661 = vrot.lane.b32.xlu1 %v4842_v8, %s4143_s26  ;;  %v5024_v19 = vld [vmem:[#allocation4] ss:$0 sm:$0xff] }
0x543e   :  { %2825 = vrot.lane.b32.xlu1 %v4883_v63, %s4143_s26 }
0x5484   :  { %v2983_v57 = vpop.permute.xlu1 %2982 }
0x5485   :  { %v2985_v28 = vmul.f32 %v2983_v57, %v2980_v41 }
0x5487   :  { %v2987_v49 = vadd.f32 %v2986_v7, %v2985_v28 }
0x5488   :  { %v1186_v6 = vpop.permute.xlu1 %1185 }
0x5489   :  { %1189 = vst.msk [vmem:[#allocation3 + $0x8] sm:$0xff] %vm421_vm2, %v1186_v6  ;;  %2989 = vrot.lane.b32.xlu1 %v2987_v49, %s4143_s26 }
0x548c   :  { %v1350_v8 = vpop.permute.xlu1 %1349 }
0x548d   :  { %1353 = vst.msk [vmem:[#allocation3 + $0x18] sm:$0xff] %vm421_vm2, %v1350_v8 }
0x5490   :  { %v1514_v63 = vpop.permute.xlu1 %1513  ;;  %v2995_v29 = vld [vmem:[#allocation3 + $0x8] sm:$0xff] }
0x5491   :  { %1517 = vst.msk [vmem:[#allocation3 + $0x28] sm:$0xff] %vm421_vm2, %v1514_v63  ;;  %3880 = vmatmul.mubr.msk.f32.vlgmr.msra.gmra.mxu0 %vm421_vm2, %v2995_v29 }
0x5492   :  { %3882 = vmatprep.mubr.msk.f32.mxu0 %vm421_vm2, %v2996_v30 }
0x5494   :  { %v1678_v18 = vpop.permute.xlu1 %1677  ;;  %v2997_v32 = vld [vmem:[#allocation3 + $0x18] sm:$0xff] }
0x5495   :  { %1681 = vst.msk [vmem:[#allocation3 + $0x38] sm:$0xff] %vm421_vm2, %v1678_v18  ;;  %3883 = vmatmul.mubr.msk.f32.gmra.mxu0 %vm421_vm2, %v2997_v32 }
0x5496   :  { %3885 = vmatprep.mubr.msk.f32.mxu0 %vm421_vm2, %v2998_v42 }
0x5498   :  { %v1842_v35 = vpop.permute.xlu1 %1841  ;;  %v2999_v48 = vld [vmem:[#allocation3 + $0x28] sm:$0xff] }
0x5499   :  { %1845 = vst.msk [vmem:[#allocation3 + $0x48] sm:$0xff] %vm421_vm2, %v1842_v35  ;;  %3886 = vmatmul.mubr.msk.f32.gmra.mxu0 %vm421_vm2, %v2999_v48 }
0x549a   :  { %3888 = vmatprep.mubr.msk.f32.mxu0 %vm421_vm2, %v3000_v16 }
0x549c   :  { %v2006_v40 = vpop.permute.xlu1 %2005  ;;  %v3001_v53 = vld [vmem:[#allocation3 + $0x38] sm:$0xff] }
0x549d   :  { %2009 = vst.msk [vmem:[#allocation3 + $0x58] sm:$0xff] %vm421_vm2, %v2006_v40  ;;  %3889 = vmatmul.mubr.msk.f32.gmra.mxu0 %vm421_vm2, %v3001_v53 }
0x549e   :  { %3891 = vmatprep.mubr.msk.f32.mxu0 %vm421_vm2, %v3002_v47 }
0x54a0   :  { %v2170_v23 = vpop.permute.xlu1 %2169  ;;  %v3003_v39 = vld [vmem:[#allocation3 + $0x48] sm:$0xff] }
0x54a1   :  { %2173 = vst.msk [vmem:[#allocation3 + $0x68] sm:$0xff] %vm421_vm2, %v2170_v23  ;;  %3892 = vmatmul.mubr.msk.f32.gmra.mxu0 %vm421_vm2, %v3003_v39 }
0x54a2   :  { %3894 = vmatprep.mubr.msk.f32.mxu0 %vm421_vm2, %v3004_v38 }
0x54a4   :  { %v2334_v56 = vpop.permute.xlu1 %2333  ;;  %v3005_v45 = vld [vmem:[#allocation3 + $0x58] sm:$0xff] }
0x54a5   :  { %2337 = vst.msk [vmem:[#allocation3 + $0x78] sm:$0xff] %vm421_vm2, %v2334_v56  ;;  %3895 = vmatmul.mubr.msk.f32.gmra.mxu0 %vm421_vm2, %v3005_v45 }
0x54a6   :  { %3897 = vmatprep.mubr.msk.f32.mxu0 %vm421_vm2, %v3006_v21 }
0x54a8   :  { %v2498_v22 = vpop.permute.xlu1 %2497  ;;  %v3007_v52 = vld [vmem:[#allocation3 + $0x68] sm:$0xff] }
0x54a9   :  { %2501 = vst.msk [vmem:[#allocation3 + $0x88] sm:$0xff] %vm421_vm2, %v2498_v22  ;;  %3898 = vmatmul.mubr.msk.f32.gmra.mxu0 %vm421_vm2, %v3007_v52 }
0x54aa   :  { %3900 = vmatprep.mubr.msk.f32.mxu0 %vm421_vm2, %v3008_v60 }
0x54ac   :  { %v2662_v61 = vpop.permute.xlu1 %2661  ;;  %v3009_v46 = vld [vmem:[#allocation3 + $0x78] sm:$0xff] }
0x54ad   :  { %2665 = vst.msk [vmem:[#allocation3 + $0x98] sm:$0xff] %vm421_vm2, %v2662_v61  ;;  %3901 = vmatmul.mubr.msk.f32.gmra.mxu0 %vm421_vm2, %v3009_v46 }
0x54ae   :  { %3903 = vmatprep.mubr.msk.f32.mxu0 %vm421_vm2, %v3010_v62 }
0x54b0   :  { %v2826_v4 = vpop.permute.xlu1 %2825  ;;  %v3011_v36 = vld [vmem:[#allocation3 + $0x88] sm:$0xff] }
0x54b1   :  { %2829 = vst.msk [vmem:[#allocation3 + $0xa8] sm:$0xff] %vm421_vm2, %v2826_v4  ;;  %3904 = vmatmul.mubr.msk.f32.gmra.mxu0 %vm421_vm2, %v3011_v36 }
0x54b2   :  { %3906 = vmatprep.mubr.msk.f32.mxu0 %vm421_vm2, %v3012_v2 }
0x54b4   :  { %v3013_v44 = vld [vmem:[#allocation3 + $0x98] sm:$0xff] }
0x54b5   :  { %3907 = vmatmul.mubr.msk.f32.gmra.mxu0 %vm421_vm2, %v3013_v44 }
0x54b6   :  { %3909 = vmatprep.mubr.msk.f32.mxu0 %vm421_vm2, %v3014_v51 }
0x54b8   :  { %v3015_v20 = vld [vmem:[#allocation3 + $0xa8] sm:$0xff] }
0x54b9   :  { %3910 = vmatmul.mubr.msk.f32.gmra.mxu0 %vm421_vm2, %v3015_v20 }
0x54ba   :  { %3912 = vmatprep.mubr.msk.f32.mxu0 %vm421_vm2, %v3016_v5 }
0x54fb   :  { %v2990_v58 = vpop.permute.xlu1 %2989 }
0x54fc   :  { %2993 = vst.msk [vmem:[#allocation3 + $0xb8] sm:$0xff] %vm421_vm2, %v2990_v58 }
0x5503   :  { %v3017_v50 = vld [vmem:[#allocation3 + $0xb8] sm:$0xff] }
0x5504   :  { %3913 = vmatmul.mubr.msk.f32.gmra.mxu0 %vm421_vm2, %v3017_v50 }
0x5551   :  { %v3881_v9 = vpop.f32.mrf.mxu0 }
0x5552   :  { %v3173_v25 = vadd.f32 %v3881_v9, %v5024_v19 }
0x5553   :  { %v3167_v24 = vpop.f32.mrf.mxu0 }
0x5554   :  { %3288 = vst.msk [vmem:[%s5153_s7 + $0x8] sm:$0xff] %vm3286_vm3, %v3173_v25  ;;  %v3168_v26 = vadd.f32 %v5024_v19, %v3167_v24 }
0x5555   :  { %v3884_v12 = vpop.f32.mrf.mxu0 }
0x5556   :  { %3287 = vst.msk [vmem:[%s5153_s7] sm:$0xff] %vm3286_vm3, %v3168_v26  ;;  %v3183_v33 = vadd.f32 %v3884_v12, %v5024_v19 }
0x5557   :  { %v3177_v54 = vpop.f32.mrf.mxu0 }
0x5558   :  { %3290 = vst.msk [vmem:[%s5153_s7 + $0x18] sm:$0xff] %vm3286_vm3, %v3183_v33  ;;  %v3178_v0 = vadd.f32 %v5024_v19, %v3177_v54 }
0x5559   :  { %v3887_v11 = vpop.f32.mrf.mxu0 }
0x555a   :  { %3289 = vst.msk [vmem:[%s5153_s7 + $0x10] sm:$0xff] %vm3286_vm3, %v3178_v0  ;;  %v3193_v31 = vadd.f32 %v3887_v11, %v5024_v19 }
0x555b   :  { %v3187_v55 = vpop.f32.mrf.mxu0 }
0x555c   :  { %3292 = vst.msk [vmem:[%s5153_s7 + $0x28] sm:$0xff] %vm3286_vm3, %v3193_v31  ;;  %v3188_v1 = vadd.f32 %v5024_v19, %v3187_v55 }
0x555d   :  { %v3890_v13 = vpop.f32.mrf.mxu0 }
0x555e   :  { %3291 = vst.msk [vmem:[%s5153_s7 + $0x20] sm:$0xff] %vm3286_vm3, %v3188_v1  ;;  %v3203_v37 = vadd.f32 %v3890_v13, %v5024_v19 }
0x555f   :  { %v3197_v15 = vpop.f32.mrf.mxu0 }
0x5560   :  { %3294 = vst.msk [vmem:[%s5153_s7 + $0x38] sm:$0xff] %vm3286_vm3, %v3203_v37  ;;  %v3198_v14 = vadd.f32 %v5024_v19, %v3197_v15 }
0x5561   :  { %v3893_v10 = vpop.f32.mrf.mxu0 }
0x5562   :  { %3293 = vst.msk [vmem:[%s5153_s7 + $0x30] sm:$0xff] %vm3286_vm3, %v3198_v14  ;;  %v3213_v34 = vadd.f32 %v3893_v10, %v5024_v19 }
0x5563   :  { %v3207_v17 = vpop.f32.mrf.mxu0 }
0x5564   :  { %3296 = vst.msk [vmem:[%s5153_s7 + $0x48] sm:$0xff] %vm3286_vm3, %v3213_v34  ;;  %v3208_v59 = vadd.f32 %v5024_v19, %v3207_v17 }
0x5565   :  { %v3896_v3 = vpop.f32.mrf.mxu0 }
0x5566   :  { %3295 = vst.msk [vmem:[%s5153_s7 + $0x40] sm:$0xff] %vm3286_vm3, %v3208_v59  ;;  %v3223_v27 = vadd.f32 %v3896_v3, %v5024_v19 }
0x5567   :  { %v3217_v41 = vpop.f32.mrf.mxu0 }
0x5568   :  { %3298 = vst.msk [vmem:[%s5153_s7 + $0x58] sm:$0xff] %vm3286_vm3, %v3223_v27  ;;  %v3218_v57 = vadd.f32 %v5024_v19, %v3217_v41 }
0x5569   :  { %v3899_v7 = vpop.f32.mrf.mxu0 }
0x556a   :  { %3297 = vst.msk [vmem:[%s5153_s7 + $0x50] sm:$0xff] %vm3286_vm3, %v3218_v57  ;;  %v3233_v28 = vadd.f32 %v3899_v7, %v5024_v19 }
0x556b   :  { %v3227_v43 = vpop.f32.mrf.mxu0 }
0x556c   :  { %3300 = vst.msk [vmem:[%s5153_s7 + $0x68] sm:$0xff] %vm3286_vm3, %v3233_v28  ;;  %v3228_v49 = vadd.f32 %v5024_v19, %v3227_v43 }
0x556d   :  { %v3902_v6 = vpop.f32.mrf.mxu0 }
0x556e   :  { %3299 = vst.msk [vmem:[%s5153_s7 + $0x60] sm:$0xff] %vm3286_vm3, %v3228_v49  ;;  %v3243_v8 = vadd.f32 %v3902_v6, %v5024_v19 }
0x556f   :  { %v3237_v63 = vpop.f32.mrf.mxu0 }
0x5570   :  { %3302 = vst.msk [vmem:[%s5153_s7 + $0x78] sm:$0xff] %vm3286_vm3, %v3243_v8  ;;  %v3238_v29 = vadd.f32 %v5024_v19, %v3237_v63 }
0x5571   :  { %v3905_v30 = vpop.f32.mrf.mxu0 }
0x5572   :  { %3301 = vst.msk [vmem:[%s5153_s7 + $0x70] sm:$0xff] %vm3286_vm3, %v3238_v29  ;;  %v3253_v18 = vadd.f32 %v3905_v30, %v5024_v19 }
0x5573   :  { %v3247_v32 = vpop.f32.mrf.mxu0 }
0x5574   :  { %3304 = vst.msk [vmem:[%s5153_s7 + $0x88] sm:$0xff] %vm3286_vm3, %v3253_v18  ;;  %v3248_v42 = vadd.f32 %v5024_v19, %v3247_v32 }
0x5575   :  { %v3908_v35 = vpop.f32.mrf.mxu0 }
0x5576   :  { %3303 = vst.msk [vmem:[%s5153_s7 + $0x80] sm:$0xff] %vm3286_vm3, %v3248_v42  ;;  %v3263_v48 = vadd.f32 %v3908_v35, %v5024_v19 }
0x5577   :  { %v3257_v16 = vpop.f32.mrf.mxu0 }
0x5578   :  { %3306 = vst.msk [vmem:[%s5153_s7 + $0x98] sm:$0xff] %vm3286_vm3, %v3263_v48  ;;  %v3258_v40 = vadd.f32 %v5024_v19, %v3257_v16 }
0x5579   :  { %v3911_v53 = vpop.f32.mrf.mxu0 }
0x557a   :  { %3305 = vst.msk [vmem:[%s5153_s7 + $0x90] sm:$0xff] %vm3286_vm3, %v3258_v40  ;;  %v3273_v47 = vadd.f32 %v3911_v53, %v5024_v19 }
0x557b   :  { %v3267_v23 = vpop.f32.mrf.mxu0 }
0x557c   :  { %3308 = vst.msk [vmem:[%s5153_s7 + $0xa8] sm:$0xff] %vm3286_vm3, %v3273_v47  ;;  %v3268_v39 = vadd.f32 %v5024_v19, %v3267_v23 }
0x557e   :  { %3307 = vst.msk [vmem:[%s5153_s7 + $0xa0] sm:$0xff] %vm3286_vm3, %v3268_v39 }
0x55c4   :  { %v3914_v38 = vpop.f32.mrf.mxu0 }
0x55c5   :  { %v3283_v56 = vadd.f32 %v3914_v38, %v5024_v19 }
0x55c6   :  { %v3277_v45 = vpop.f32.mrf.mxu0 }
0x55c7   :  { %3310 = vst.msk [vmem:[%s5153_s7 + $0xb8] sm:$0xff] %vm3286_vm3, %v3283_v56  ;;  %v3278_v21 = vadd.f32 %v5024_v19, %v3277_v45 }
0x55c9   :  { %3309 = vst.msk [vmem:[%s5153_s7 + $0xb0] sm:$0xff] %vm3286_vm3, %v3278_v21 }

</bundles_post_ra>
